<compile_context>
chip_gen: v5e
topology: v5e:2x2
jax: 0.10.0
libtpu: 0.0.40
codegen_flags: <defaults>
</compile_context>

<pallas_src>
import functools

import jax
import jax.numpy as jnp
from jax.experimental import pallas as pl
from jax.experimental.pallas import tpu as pltpu

f32 = jnp.float32
bf16 = jnp.bfloat16


# ------------------------------------------------------------------ fused kernel
def _sk_rdb_kernel(x_ref, bw_ref, cb_ref, du_ref, pa_ref, fc0_ref, fc1_ref,
                   idw_ref, idb_ref, lffw_ref, lffb_ref,
                   out_ref, u_ref, res_ref, *, inv_hw):
    l = pl.program_id(1)
    last = pl.num_programs(1) - 1
    H, WC = u_ref.shape

    # ---- l == 0 : load the image and compute the identity-conv residual once.
    #      Both stay resident in VMEM for the whole layer chain.
    @pl.when(l == 0)
    def _():
        x0 = x_ref[0]                                             # (H, W*C) f32
        u_ref[...] = x0
        res_ref[...] = (jnp.dot(x0.astype(bf16), idw_ref[...],
                                preferred_element_type=f32) + idb_ref[...])

    # ---- DenseLayer l : 3x3 conv (3 banded matmuls, lane-dense) + ReLU -------
    u = u_ref[...]                                                # (H, W*C) f32
    uh = u.astype(bf16)
    zrow = jnp.zeros((1, WC), bf16)
    up = jnp.concatenate([zrow, uh, zrow], axis=0)                # (H+2, W*C)

    acc = jnp.dot(up[0:H, :], bw_ref[0, 0], preferred_element_type=f32)
    acc = acc + jnp.dot(up[1:H + 1, :], bw_ref[0, 1], preferred_element_type=f32)
    acc = acc + jnp.dot(up[2:H + 2, :], bw_ref[0, 2], preferred_element_type=f32)
    v = jnp.maximum(acc + cb_ref[0], 0.0)                         # (H, W*C) f32

    # ---- SKFF gate (global average pool folded into the tiled du weights) ----
    colmean = jnp.sum(u + v, axis=0, keepdims=True) * inv_hw      # (1, W*C)
    z = jnp.dot(colmean.astype(bf16), du_ref[0],
                preferred_element_type=f32)                       # (1, d)
    z = jnp.where(z >= 0.0, z, pa_ref[0] * z)                     # PReLU
    zh = z.astype(bf16)
    l0 = jnp.dot(zh, fc0_ref[0], preferred_element_type=f32)      # (1, W*C)
    l1 = jnp.dot(zh, fc1_ref[0], preferred_element_type=f32)
    m = jnp.maximum(l0, l1)
    e0 = jnp.exp(l0 - m)
    e1 = jnp.exp(l1 - m)
    inv = pl.reciprocal(e0 + e1, approx=True)                     # EUP slot
    u_new = u * (e0 * inv) + v * (e1 * inv)                       # (H, W*C)

    @pl.when(l < last)
    def _():
        u_ref[...] = u_new

    # ---- last layer: LFF 1x1 conv + residual add, one lane-dense store -------
    @pl.when(l == last)
    def _():
        y = jnp.dot(u_new.astype(bf16), lffw_ref[...],
                    preferred_element_type=f32) + lffb_ref[...]
        out_ref[0] = (res_ref[...] + y).astype(out_ref.dtype)


# --------------------------------------------------------------------- forward
def sk_rdb_forward(x_nchw, params):
    """SK_RDB forward.  x_nchw: (B, C, H, W) f32.  Returns (B, G, H, W) f32."""
    B, C, H, W = x_nchw.shape
    G = params["id_w"].shape[0]
    L = len(params["layers"])
    WC, WG = W * C, W * G

    # single layout pass in: NCHW -> NHWC -> lane-dense (B, H, W*C) (free view)
    x = jnp.transpose(x_nchw, (0, 2, 3, 1)).reshape(B, H, WC)

    # -- banded conv weights: fold the dx shifts / zero W-padding into (WC, WC)
    eye_shift = [jnp.eye(W, k=1 - dx, dtype=f32) for dx in range(3)]

    def banded(conv_w):                      # (Cout, Cin, 3, 3) -> (3, WC, WC)
        wt = jnp.transpose(conv_w, (2, 3, 1, 0))                  # (3,3,Cin,Cout)
        return jnp.stack([
            sum(jnp.kron(eye_shift[dx], wt[dy, dx]) for dx in range(3))
            for dy in range(3)])

    layers = params["layers"]
    bw = jnp.stack([banded(lp["conv_w"]) for lp in layers]).astype(bf16)          # (L,3,WC,WC)
    cb = jnp.stack([jnp.tile(lp["conv_b"], W).reshape(1, WC) for lp in layers]).astype(f32)
    du = jnp.stack([jnp.tile(lp["du_w"].T, (W, 1)) for lp in layers]).astype(bf16)  # (L,WC,d)
    pa = jnp.stack([lp["prelu_a"].reshape(1, 1) for lp in layers]).astype(f32)      # (L,1,1)
    fc0 = jnp.stack([jnp.tile(lp["fc0_w"].T, (1, W)) for lp in layers]).astype(bf16)  # (L,d,WC)
    fc1 = jnp.stack([jnp.tile(lp["fc1_w"].T, (1, W)) for lp in layers]).astype(bf16)

    # block-diagonal 1x1 convs operating directly on the lane-dense layout
    idw = jnp.kron(jnp.eye(W, dtype=f32), params["id_w"].T).astype(bf16)   # (WC, WG)
    idb = jnp.tile(params["id_b"], W).reshape(1, WG).astype(f32)
    lffw = jnp.kron(jnp.eye(W, dtype=f32), params["lff_w"].T).astype(bf16)
    lffb = jnp.tile(params["lff_b"], W).reshape(1, WG).astype(f32)

    def layer_spec(shape):
        nd = len(shape)
        return pl.BlockSpec((1,) + tuple(shape[1:]),
                            lambda b, l, nd=nd: (l,) + (0,) * (nd - 1))

    def const_spec(shape):
        nd = len(shape)
        return pl.BlockSpec(tuple(shape), lambda b, l, nd=nd: (0,) * nd)

    grid_spec = pltpu.PrefetchScalarGridSpec(
        num_scalar_prefetch=0,
        grid=(B, L),
        in_specs=[
            pl.BlockSpec((1, H, WC), lambda b, l: (b, 0, 0)),      # x (read at l==0)
            layer_spec(bw.shape), layer_spec(cb.shape), layer_spec(du.shape),
            layer_spec(pa.shape), layer_spec(fc0.shape), layer_spec(fc1.shape),
            const_spec(idw.shape), const_spec(idb.shape),
            const_spec(lffw.shape), const_spec(lffb.shape),
        ],
        out_specs=pl.BlockSpec((1, H, WG), lambda b, l: (b, 0, 0)),
        scratch_shapes=[pltpu.VMEM((H, WC), f32),    # u   (carried across layers)
                        pltpu.VMEM((H, WG), f32)],   # res (identity 1x1 conv)
    )

    out = pl.pallas_call(
        functools.partial(_sk_rdb_kernel, inv_hw=1.0 / float(H * W)),
        out_shape=jax.ShapeDtypeStruct((B, H, WG), x_nchw.dtype),
        grid_spec=grid_spec,
        compiler_params=pltpu.CompilerParams(
            dimension_semantics=("parallel", "arbitrary")),
    )(x, bw, cb, du, pa, fc0, fc1, idw, idb, lffw, lffb)

    # single layout pass out: lane-dense -> NHWC -> NCHW
    return jnp.transpose(out.reshape(B, H, W, G), (0, 3, 1, 2))


# ---------------------------------------------------------------- pure-JAX reference
def _ref_forward(x, p):
    def conv1x1(v, w, b=None):
        y = jnp.einsum("nchw,oc->nohw", v.astype(bf16), w.astype(bf16),
                       preferred_element_type=f32)
        if b is not None:
            y = y + b[None, :, None, None]
        return y

    res = conv1x1(x, p["id_w"], p["id_b"])
    u = x
    for lp in p["layers"]:
        v = jax.lax.conv_general_dilated(
            u.astype(bf16), lp["conv_w"].astype(bf16), (1, 1), "SAME",
            dimension_numbers=("NCHW", "OIHW", "NCHW"),
            preferred_element_type=f32)
        v = jnp.maximum(v + lp["conv_b"][None, :, None, None], 0.0)
        s = jnp.mean(u + v, axis=(2, 3), keepdims=True)
        z = conv1x1(s, lp["du_w"])
        z = jnp.where(z >= 0, z, lp["prelu_a"] * z)
        l0 = conv1x1(z, lp["fc0_w"])
        l1 = conv1x1(z, lp["fc1_w"])
        att = jax.nn.softmax(jnp.stack([l0, l1], axis=1), axis=1)
        u = att[:, 0] * u + att[:, 1] * v
    return res + conv1x1(u, p["lff_w"], p["lff_b"])


if __name__ == "__main__":
    # SK_RDB(in_channels=32, growth_rate=32, num_layers=2) on (B, C, H, W) = (2, 32, 16, 16)
    B, C, G, H, W = 2, 32, 32, 16, 16
    num_layers = 2
    d = max(C // 8, 4)

    keys = iter(jax.random.split(jax.random.PRNGKey(0), 32))

    def rnd(shape, scale=0.1):
        return jax.random.normal(next(keys), shape, dtype=jnp.float32) * scale

    params = {
        "id_w": rnd((G, C)), "id_b": rnd((G,)),
        "lff_w": rnd((G, C)), "lff_b": rnd((G,)),
        "layers": [
            {"conv_w": rnd((C, C, 3, 3)), "conv_b": rnd((C,)),
             "du_w": rnd((d, C)), "prelu_a": jnp.array(0.25, jnp.float32),
             "fc0_w": rnd((C, d)), "fc1_w": rnd((C, d))}
            for _ in range(num_layers)
        ],
    }
    x = rnd((B, C, H, W), scale=1.0)

    fwd = jax.jit(sk_rdb_forward)
    out = fwd(x, params)
    jax.block_until_ready(out)

    ref = _ref_forward(x, params)
    assert out.shape == (B, G, H, W)
    # Both paths use bf16 matmul operands with f32 accumulation; tolerance covers
    # rounding-order differences between the fused-banded-matmul path and the
    # reference conv pipeline.
    assert jnp.allclose(out, ref, atol=5e-3, rtol=5e-3), float(jnp.max(jnp.abs(out - ref)))
    print("KERNEL_OK")
</pallas_src>

<mosaic_0001>
module attributes {stable_mosaic.version = 11 : i64} {
  func.func @_sk_rdb_kernel(%arg0: i32, %arg1: i32, %arg2: memref<1x16x512xf32, #tpu.memory_space<vmem>>, %arg3: memref<1x3x512x512xbf16, #tpu.memory_space<vmem>>, %arg4: memref<1x1x512xf32, #tpu.memory_space<vmem>>, %arg5: memref<1x512x4xbf16, #tpu.memory_space<vmem>>, %arg6: memref<1x1x1xf32, #tpu.memory_space<vmem>>, %arg7: memref<1x4x512xbf16, #tpu.memory_space<vmem>>, %arg8: memref<1x4x512xbf16, #tpu.memory_space<vmem>>, %arg9: memref<512x512xbf16, #tpu.memory_space<vmem>>, %arg10: memref<1x512xf32, #tpu.memory_space<vmem>>, %arg11: memref<512x512xbf16, #tpu.memory_space<vmem>>, %arg12: memref<1x512xf32, #tpu.memory_space<vmem>>, %arg13: memref<1x16x512xf32, #tpu.memory_space<vmem>>, %arg14: memref<16x512xf32, #tpu.memory_space<vmem>>, %arg15: memref<16x512xf32, #tpu.memory_space<vmem>>) attributes {dimension_semantics = [#tpu.dimension_semantics<parallel>, #tpu.dimension_semantics<arbitrary>], iteration_bounds = array<i64: 2, 2>, scalar_prefetch = 0 : i64, scratch_operands = 2 : i64, tpu.core_type = #tpu.core_type<tc>, window_params = [{transform_indices = @transform_0, window_bounds = array<i64: 1, 16, 512>}, {transform_indices = @transform_1, window_bounds = array<i64: 1, 3, 512, 512>}, {transform_indices = @transform_2, window_bounds = array<i64: 1, 1, 512>}, {transform_indices = @transform_3, window_bounds = array<i64: 1, 512, 4>}, {transform_indices = @transform_4, window_bounds = array<i64: 1, 1, 1>}, {transform_indices = @transform_5, window_bounds = array<i64: 1, 4, 512>}, {transform_indices = @transform_6, window_bounds = array<i64: 1, 4, 512>}, {pipeline_mode = #tpu.pipeline_mode<synchronous>, transform_indices = @transform_7, window_bounds = array<i64: 512, 512>}, {pipeline_mode = #tpu.pipeline_mode<synchronous>, transform_indices = @transform_8, window_bounds = array<i64: 1, 512>}, {pipeline_mode = #tpu.pipeline_mode<synchronous>, transform_indices = @transform_9, window_bounds = array<i64: 512, 512>}, {pipeline_mode = #tpu.pipeline_mode<synchronous>, transform_indices = @transform_10, window_bounds = array<i64: 1, 512>}, {transform_indices = @transform_11, window_bounds = array<i64: 1, 16, 512>}]} {
    %c0_i32 = arith.constant 0 : i32
    %0 = arith.cmpi eq, %arg1, %c0_i32 : i32
    %1 = arith.extui %0 : i1 to i32
    %c0_i32_0 = arith.constant 0 : i32
    %2 = arith.cmpi ne, %1, %c0_i32_0 : i32
    scf.if %2 {
      %c0_40 = arith.constant 0 : index
      %c0_41 = arith.constant 0 : index
      %c0_42 = arith.constant 0 : index
      %70 = vector.load %arg2[%c0_40, %c0_41, %c0_42] : memref<1x16x512xf32, #tpu.memory_space<vmem>>, vector<1x16x512xf32>
      %71 = vector.shape_cast %70 : vector<1x16x512xf32> to vector<16x512xf32>
      %c0_43 = arith.constant 0 : index
      %c0_44 = arith.constant 0 : index
      %72 = vector.load %arg14[%c0_43, %c0_44] : memref<16x512xf32, #tpu.memory_space<vmem>>, vector<16x512xf32>
      tpu.vector_store %arg14[%c0_43, %c0_44], %71 {strides = array<i32>} : memref<16x512xf32, #tpu.memory_space<vmem>>, vector<16x512xf32>,
      %73 = arith.truncf %71 : vector<16x512xf32> to vector<16x512xbf16>
      %c0_45 = arith.constant 0 : index
      %c0_46 = arith.constant 0 : index
      %74 = vector.load %arg9[%c0_45, %c0_46] : memref<512x512xbf16, #tpu.memory_space<vmem>>, vector<512x512xbf16>
      %cst_47 = arith.constant dense<0.000000e+00> : vector<16x512xf32>
      %75 = tpu.matmul %73, %74, %cst_47 {dimension_numbers = #tpu.dot_dimension_numbers<[1], [0], [0], [1], [0, 0, 1, 1], [], []>} : vector<16x512xbf16>, vector<512x512xbf16>, vector<16x512xf32> -> vector<16x512xf32>
      %c0_48 = arith.constant 0 : index
      %c0_49 = arith.constant 0 : index
      %76 = vector.load %arg10[%c0_48, %c0_49] : memref<1x512xf32, #tpu.memory_space<vmem>>, vector<1x512xf32>
      %77 = vector.broadcast %76 : vector<1x512xf32> to vector<16x512xf32>
      %78 = arith.addf %75, %77 : vector<16x512xf32>
      %c0_50 = arith.constant 0 : index
      %c0_51 = arith.constant 0 : index
      %79 = vector.load %arg15[%c0_50, %c0_51] : memref<16x512xf32, #tpu.memory_space<vmem>>, vector<16x512xf32>
      tpu.vector_store %arg15[%c0_50, %c0_51], %78 {strides = array<i32>} : memref<16x512xf32, #tpu.memory_space<vmem>>, vector<16x512xf32>,
    } else {
    }
    %c0 = arith.constant 0 : index
    %c0_1 = arith.constant 0 : index
    %3 = vector.load %arg14[%c0, %c0_1] : memref<16x512xf32, #tpu.memory_space<vmem>>, vector<16x512xf32>
    %4 = arith.truncf %3 : vector<16x512xf32> to vector<16x512xbf16>
    %cst = arith.constant 0.000000e+00 : bf16
    %5 = vector.broadcast %cst : bf16 to vector<1x512xbf16>
    %6 = tpu.concatenate %5, %4, %5 in 0 : vector<1x512xbf16>, vector<16x512xbf16>, vector<1x512xbf16> -> vector<18x512xbf16>
    %7 = vector.extract_strided_slice %6 {offsets = [0, 0], sizes = [16, 512], strides = [1, 1]} : vector<18x512xbf16> to vector<16x512xbf16>
    %c0_2 = arith.constant 0 : index
    %c0_3 = arith.constant 0 : index
    %c0_4 = arith.constant 0 : index
    %c0_5 = arith.constant 0 : index
    %8 = vector.load %arg3[%c0_2, %c0_3, %c0_4, %c0_5] : memref<1x3x512x512xbf16, #tpu.memory_space<vmem>>, vector<1x1x512x512xbf16>
    %9 = vector.shape_cast %8 : vector<1x1x512x512xbf16> to vector<512x512xbf16>
    %cst_6 = arith.constant dense<0.000000e+00> : vector<16x512xf32>
    %10 = tpu.matmul %7, %9, %cst_6 {dimension_numbers = #tpu.dot_dimension_numbers<[1], [0], [0], [1], [0, 0, 1, 1], [], []>} : vector<16x512xbf16>, vector<512x512xbf16>, vector<16x512xf32> -> vector<16x512xf32>
    %11 = vector.extract_strided_slice %6 {offsets = [1, 0], sizes = [16, 512], strides = [1, 1]} : vector<18x512xbf16> to vector<16x512xbf16>
    %c0_7 = arith.constant 0 : index
    %c1 = arith.constant 1 : index
    %c0_8 = arith.constant 0 : index
    %c0_9 = arith.constant 0 : index
    %12 = vector.load %arg3[%c0_7, %c1, %c0_8, %c0_9] : memref<1x3x512x512xbf16, #tpu.memory_space<vmem>>, vector<1x1x512x512xbf16>
    %13 = vector.shape_cast %12 : vector<1x1x512x512xbf16> to vector<512x512xbf16>
    %cst_10 = arith.constant dense<0.000000e+00> : vector<16x512xf32>
    %14 = tpu.matmul %11, %13, %cst_10 {dimension_numbers = #tpu.dot_dimension_numbers<[1], [0], [0], [1], [0, 0, 1, 1], [], []>} : vector<16x512xbf16>, vector<512x512xbf16>, vector<16x512xf32> -> vector<16x512xf32>
    %15 = arith.addf %10, %14 : vector<16x512xf32>
    %16 = vector.extract_strided_slice %6 {offsets = [2, 0], sizes = [16, 512], strides = [1, 1]} : vector<18x512xbf16> to vector<16x512xbf16>
    %c0_11 = arith.constant 0 : index
    %c2 = arith.constant 2 : index
    %c0_12 = arith.constant 0 : index
    %c0_13 = arith.constant 0 : index
    %17 = vector.load %arg3[%c0_11, %c2, %c0_12, %c0_13] : memref<1x3x512x512xbf16, #tpu.memory_space<vmem>>, vector<1x1x512x512xbf16>
    %18 = vector.shape_cast %17 : vector<1x1x512x512xbf16> to vector<512x512xbf16>
    %cst_14 = arith.constant dense<0.000000e+00> : vector<16x512xf32>
    %19 = tpu.matmul %16, %18, %cst_14 {dimension_numbers = #tpu.dot_dimension_numbers<[1], [0], [0], [1], [0, 0, 1, 1], [], []>} : vector<16x512xbf16>, vector<512x512xbf16>, vector<16x512xf32> -> vector<16x512xf32>
    %20 = arith.addf %15, %19 : vector<16x512xf32>
    %c0_15 = arith.constant 0 : index
    %c0_16 = arith.constant 0 : index
    %c0_17 = arith.constant 0 : index
    %21 = vector.load %arg4[%c0_15, %c0_16, %c0_17] : memref<1x1x512xf32, #tpu.memory_space<vmem>>, vector<1x1x512xf32>
    %22 = vector.shape_cast %21 : vector<1x1x512xf32> to vector<1x512xf32>
    %23 = vector.broadcast %22 : vector<1x512xf32> to vector<16x512xf32>
    %24 = arith.addf %20, %23 : vector<16x512xf32>
    %cst_18 = arith.constant 0.000000e+00 : f32
    %25 = vector.broadcast %cst_18 : f32 to vector<16x512xf32>
    %26 = arith.maximumf %24, %25 : vector<16x512xf32>
    %27 = arith.addf %3, %26 : vector<16x512xf32>
    %cst_19 = arith.constant dense<0.000000e+00> : vector<512xf32>
    %28 = vector.multi_reduction <add>, %27, %cst_19 [0] : vector<16x512xf32> to vector<512xf32>
    %29 = vector.shape_cast %28 : vector<512xf32> to vector<1x512xf32>
    %cst_20 = arith.constant 3.906250e-03 : f32
    %30 = vector.broadcast %cst_20 : f32 to vector<1x512xf32>
    %31 = arith.mulf %29, %30 : vector<1x512xf32>
    %32 = arith.truncf %31 : vector<1x512xf32> to vector<1x512xbf16>
    %c0_21 = arith.constant 0 : index
    %c0_22 = arith.constant 0 : index
    %c0_23 = arith.constant 0 : index
    %33 = vector.load %arg5[%c0_21, %c0_22, %c0_23] : memref<1x512x4xbf16, #tpu.memory_space<vmem>>, vector<1x512x4xbf16>
    %34 = vector.shape_cast %33 : vector<1x512x4xbf16> to vector<512x4xbf16>
    %cst_24 = arith.constant dense<0.000000e+00> : vector<1x4xf32>
    %35 = tpu.matmul %32, %34, %cst_24 {dimension_numbers = #tpu.dot_dimension_numbers<[1], [0], [0], [1], [0, 0, 1, 1], [], []>} : vector<1x512xbf16>, vector<512x4xbf16>, vector<1x4xf32> -> vector<1x4xf32>
    %cst_25 = arith.constant 0.000000e+00 : f32
    %36 = vector.broadcast %cst_25 : f32 to vector<1x4xf32>
    %37 = arith.cmpf oge, %35, %36 : vector<1x4xf32>
    %c0_26 = arith.constant 0 : index
    %c0_27 = arith.constant 0 : index
    %c0_28 = arith.constant 0 : index
    %38 = vector.load %arg6[%c0_26, %c0_27, %c0_28] : memref<1x1x1xf32, #tpu.memory_space<vmem>>, vector<1x1x1xf32>
    %39 = vector.shape_cast %38 : vector<1x1x1xf32> to vector<1x1xf32>
    %40 = vector.broadcast %39 : vector<1x1xf32> to vector<1x4xf32>
    %41 = arith.mulf %40, %35 : vector<1x4xf32>
    %42 = arith.select %37, %35, %41 : vector<1x4xi1>, vector<1x4xf32>
    %43 = arith.truncf %42 : vector<1x4xf32> to vector<1x4xbf16>
    %c0_29 = arith.constant 0 : index
    %c0_30 = arith.constant 0 : index
    %c0_31 = arith.constant 0 : index
    %44 = vector.load %arg7[%c0_29, %c0_30, %c0_31] : memref<1x4x512xbf16, #tpu.memory_space<vmem>>, vector<1x4x512xbf16>
    %45 = vector.shape_cast %44 : vector<1x4x512xbf16> to vector<4x512xbf16>
    %cst_32 = arith.constant dense<0.000000e+00> : vector<1x512xf32>
    %46 = tpu.matmul %43, %45, %cst_32 {dimension_numbers = #tpu.dot_dimension_numbers<[1], [0], [0], [1], [0, 0, 1, 1], [], []>} : vector<1x4xbf16>, vector<4x512xbf16>, vector<1x512xf32> -> vector<1x512xf32>
    %c0_33 = arith.constant 0 : index
    %c0_34 = arith.constant 0 : index
    %c0_35 = arith.constant 0 : index
    %47 = vector.load %arg8[%c0_33, %c0_34, %c0_35] : memref<1x4x512xbf16, #tpu.memory_space<vmem>>, vector<1x4x512xbf16>
    %48 = vector.shape_cast %47 : vector<1x4x512xbf16> to vector<4x512xbf16>
    %cst_36 = arith.constant dense<0.000000e+00> : vector<1x512xf32>
    %49 = tpu.matmul %43, %48, %cst_36 {dimension_numbers = #tpu.dot_dimension_numbers<[1], [0], [0], [1], [0, 0, 1, 1], [], []>} : vector<1x4xbf16>, vector<4x512xbf16>, vector<1x512xf32> -> vector<1x512xf32>
    %50 = arith.maximumf %46, %49 : vector<1x512xf32>
    %51 = arith.subf %46, %50 : vector<1x512xf32>
    %52 = math.exp %51 : vector<1x512xf32>
    %53 = arith.subf %49, %50 : vector<1x512xf32>
    %54 = math.exp %53 : vector<1x512xf32>
    %55 = arith.addf %52, %54 : vector<1x512xf32>
    %56 = tpu.reciprocal %55 {approx = true} : vector<1x512xf32> -> vector<1x512xf32>
    %57 = arith.mulf %52, %56 : vector<1x512xf32>
    %58 = vector.broadcast %57 : vector<1x512xf32> to vector<16x512xf32>
    %59 = arith.mulf %3, %58 : vector<16x512xf32>
    %60 = arith.mulf %54, %56 : vector<1x512xf32>
    %61 = vector.broadcast %60 : vector<1x512xf32> to vector<16x512xf32>
    %62 = arith.mulf %26, %61 : vector<16x512xf32>
    %63 = arith.addf %59, %62 : vector<16x512xf32>
    %c1_i32 = arith.constant 1 : i32
    %64 = arith.cmpi slt, %arg1, %c1_i32 : i32
    %65 = arith.extui %64 : i1 to i32
    %c0_i32_37 = arith.constant 0 : i32
    %66 = arith.cmpi ne, %65, %c0_i32_37 : i32
    scf.if %66 {
      %c0_40 = arith.constant 0 : index
      %c0_41 = arith.constant 0 : index
      %70 = vector.load %arg14[%c0_40, %c0_41] : memref<16x512xf32, #tpu.memory_space<vmem>>, vector<16x512xf32>
      tpu.vector_store %arg14[%c0_40, %c0_41], %63 {strides = array<i32>} : memref<16x512xf32, #tpu.memory_space<vmem>>, vector<16x512xf32>,
    } else {
    }
    %c1_i32_38 = arith.constant 1 : i32
    %67 = arith.cmpi eq, %arg1, %c1_i32_38 : i32
    %68 = arith.extui %67 : i1 to i32
    %c0_i32_39 = arith.constant 0 : i32
    %69 = arith.cmpi ne, %68, %c0_i32_39 : i32
    scf.if %69 {
      %70 = arith.truncf %63 : vector<16x512xf32> to vector<16x512xbf16>
      %c0_40 = arith.constant 0 : index
      %c0_41 = arith.constant 0 : index
      %71 = vector.load %arg11[%c0_40, %c0_41] : memref<512x512xbf16, #tpu.memory_space<vmem>>, vector<512x512xbf16>
      %cst_42 = arith.constant dense<0.000000e+00> : vector<16x512xf32>
      %72 = tpu.matmul %70, %71, %cst_42 {dimension_numbers = #tpu.dot_dimension_numbers<[1], [0], [0], [1], [0, 0, 1, 1], [], []>} : vector<16x512xbf16>, vector<512x512xbf16>, vector<16x512xf32> -> vector<16x512xf32>
      %c0_43 = arith.constant 0 : index
      %c0_44 = arith.constant 0 : index
      %73 = vector.load %arg12[%c0_43, %c0_44] : memref<1x512xf32, #tpu.memory_space<vmem>>, vector<1x512xf32>
      %74 = vector.broadcast %73 : vector<1x512xf32> to vector<16x512xf32>
      %75 = arith.addf %72, %74 : vector<16x512xf32>
      %c0_45 = arith.constant 0 : index
      %c0_46 = arith.constant 0 : index
      %76 = vector.load %arg15[%c0_45, %c0_46] : memref<16x512xf32, #tpu.memory_space<vmem>>, vector<16x512xf32>
      %77 = arith.addf %76, %75 : vector<16x512xf32>
      %c0_47 = arith.constant 0 : index
      %c0_48 = arith.constant 0 : index
      %c0_49 = arith.constant 0 : index
      %78 = vector.load %arg13[%c0_47, %c0_48, %c0_49] : memref<1x16x512xf32, #tpu.memory_space<vmem>>, vector<1x16x512xf32>
      %79 = vector.shape_cast %78 : vector<1x16x512xf32> to vector<16x512xf32>
      %80 = vector.shape_cast %77 : vector<16x512xf32> to vector<1x16x512xf32>
      tpu.vector_store %arg13[%c0_47, %c0_48, %c0_49], %80 {strides = array<i32>} : memref<1x16x512xf32, #tpu.memory_space<vmem>>, vector<1x16x512xf32>,
    } else {
    }
    return
  }
  func.func @transform_0(%arg0: i32, %arg1: i32) -> (i32, i32, i32) {
    %c0_i32 = arith.constant 0 : i32
    %c0_i32_0 = arith.constant 0 : i32
    %c0_i32_1 = arith.constant 0 : i32
    return %arg0, %c0_i32, %c0_i32_0 : i32, i32, i32
  }
  func.func @transform_1(%arg0: i32, %arg1: i32) -> (i32, i32, i32, i32) {
    %c0_i32 = arith.constant 0 : i32
    %c0_i32_0 = arith.constant 0 : i32
    %c0_i32_1 = arith.constant 0 : i32
    %c0_i32_2 = arith.constant 0 : i32
    return %arg1, %c0_i32, %c0_i32_0, %c0_i32_1 : i32, i32, i32, i32
  }
  func.func @transform_2(%arg0: i32, %arg1: i32) -> (i32, i32, i32) {
    %c0_i32 = arith.constant 0 : i32
    %c0_i32_0 = arith.constant 0 : i32
    %c0_i32_1 = arith.constant 0 : i32
    return %arg1, %c0_i32, %c0_i32_0 : i32, i32, i32
  }
  func.func @transform_3(%arg0: i32, %arg1: i32) -> (i32, i32, i32) {
    %c0_i32 = arith.constant 0 : i32
    %c0_i32_0 = arith.constant 0 : i32
    %c0_i32_1 = arith.constant 0 : i32
    return %arg1, %c0_i32, %c0_i32_0 : i32, i32, i32
  }
  func.func @transform_4(%arg0: i32, %arg1: i32) -> (i32, i32, i32) {
    %c0_i32 = arith.constant 0 : i32
    %c0_i32_0 = arith.constant 0 : i32
    %c0_i32_1 = arith.constant 0 : i32
    return %arg1, %c0_i32, %c0_i32_0 : i32, i32, i32
  }
  func.func @transform_5(%arg0: i32, %arg1: i32) -> (i32, i32, i32) {
    %c0_i32 = arith.constant 0 : i32
    %c0_i32_0 = arith.constant 0 : i32
    %c0_i32_1 = arith.constant 0 : i32
    return %arg1, %c0_i32, %c0_i32_0 : i32, i32, i32
  }
  func.func @transform_6(%arg0: i32, %arg1: i32) -> (i32, i32, i32) {
    %c0_i32 = arith.constant 0 : i32
    %c0_i32_0 = arith.constant 0 : i32
    %c0_i32_1 = arith.constant 0 : i32
    return %arg1, %c0_i32, %c0_i32_0 : i32, i32, i32
  }
  func.func @transform_7(%arg0: i32, %arg1: i32) -> (i32, i32) {
    %c0_i32 = arith.constant 0 : i32
    %c0_i32_0 = arith.constant 0 : i32
    %c0_i32_1 = arith.constant 0 : i32
    return %c0_i32, %c0_i32_0 : i32, i32
  }
  func.func @transform_8(%arg0: i32, %arg1: i32) -> (i32, i32) {
    %c0_i32 = arith.constant 0 : i32
    %c0_i32_0 = arith.constant 0 : i32
    %c0_i32_1 = arith.constant 0 : i32
    return %c0_i32, %c0_i32_0 : i32, i32
  }
  func.func @transform_9(%arg0: i32, %arg1: i32) -> (i32, i32) {
    %c0_i32 = arith.constant 0 : i32
    %c0_i32_0 = arith.constant 0 : i32
    %c0_i32_1 = arith.constant 0 : i32
    return %c0_i32, %c0_i32_0 : i32, i32
  }
  func.func @transform_10(%arg0: i32, %arg1: i32) -> (i32, i32) {
    %c0_i32 = arith.constant 0 : i32
    %c0_i32_0 = arith.constant 0 : i32
    %c0_i32_1 = arith.constant 0 : i32
    return %c0_i32, %c0_i32_0 : i32, i32
  }
  func.func @transform_11(%arg0: i32, %arg1: i32) -> (i32, i32, i32) {
    %c0_i32 = arith.constant 0 : i32
    %c0_i32_0 = arith.constant 0 : i32
    %c0_i32_1 = arith.constant 0 : i32
    return %arg0, %c0_i32, %c0_i32_0 : i32, i32, i32
  }
}

</mosaic_0001>

<bundles_post_ra>
// kernel: tile.53
= control target key start
LH: loop header
LB: loop body
LE: loop exit
PB: predicated region body
PF: predicated region fallthrough
CT: control target
= control target key end

     0   :  { %s28_s0 = inlined_call_operand.vmem [shape: f32[32], index: 0, kind: input, shape index: {}]   ;;  %s29_s1 = inlined_call_operand.vmem [shape: f32[16,32], index: 1, kind: output, shape index: {}]  }
   0x1   :  { %v4_v0 = vld [vmem:[%s28_s0] ss:$0 sm:$0xff] }
   0x2   :  { %5 = vst [vmem:[%s29_s1] sm:$0xff] %v4_v0 }
   0x3   :  { %8 = vst [vmem:[%s29_s1 + $0x8] sm:$0xff] %v4_v0 }

// kernel: tile.58
= control target key start
LH: loop header
LB: loop body
LE: loop exit
PB: predicated region body
PF: predicated region fallthrough
CT: control target
= control target key end

     0   :  { %s56_s8 = smov 96   ;;  %s57_s11 = smov 32   ;;  %vm3_vm0 = vcmask 261120   ;;  %vm9_vm1 = vcmask 1048320   ;;  %vm15_vm2 = vcmask 785920   ;;  %vm21_vm3 = vcmask 523520   ;;  %s93_s0 = inlined_call_operand.vmem [shape: f32[16,32], index: 0, kind: input, shape index: {}]   ;;  %s94_s1 = inlined_call_operand.vmem [shape: f32[1,1,512], index: 1, kind: output, shape index: {}]  }
   0x1   :  { %v47_v0 = vld [vmem:[%s93_s0 + $0x3] ss:$4 sm:$0xf]   ;;  %v49_v1 = vld [vmem:[%s93_s0 + $0x1] ss:$4 sm:$0xf]  }
   0x2   :  { %7 = vrot.lane.b32.xlu0 %v47_v0, %s56_s8  ;;  %19 = vrot.lane.b32.xlu1 %v49_v1, %s57_s11  ;;  %v48_v2 = vld [vmem:[%s93_s0 + $0x2] ss:$4 sm:$0xf]   ;;  %s58_s14 = smov 64  }
   0x3   :  { %v2_v3 = vld [vmem:[%s93_s0] ss:$4 sm:$0xf]  }
   0x4   :  { %4 = vst.msk [vmem:[#allocation0] ss:$8 sm:$0xf] %vm3_vm0, %v2_v3  }
   0xa   :  { %13 = vrot.lane.b32.xlu0 %v48_v2, %s58_s14 }
  0x74   :  { %v8_v4 = vpop.permute.xlu0 %7   ;;  %v20_v5 = vpop.permute.xlu1 %19  }
  0x75   :  { %10 = vst.msk [vmem:[#allocation0] ss:$8 sm:$0xf] %vm9_vm1, %v8_v4  }
  0x7c   :  { %v14_v6 = vpop.permute.xlu0 %13  }
  0x7d   :  { %16 = vst.msk [vmem:[#allocation0] ss:$8 sm:$0xf] %vm15_vm2, %v14_v6  }
  0x7e   :  { %22 = vst.msk [vmem:[#allocation0] ss:$8 sm:$0xf] %vm21_vm3, %v20_v5  }
  0x85   :  { %v25_v7 = vld [vmem:[#allocation0] sm:$0x1]  ;;  %v30_v8 = vld [vmem:[#allocation0 + $0x8] sm:$0x1]  ;;  %v36_v9 = vld [vmem:[#allocation0 + $0x10] sm:$0x1] }
  0x86   :  { %28 = vst [vmem:[%s94_s1] sm:$0x1] %v25_v7  ;;  %v42_v10 = vld [vmem:[#allocation0 + $0x18] sm:$0x1] }
  0x87   :  { %50 = vst [vmem:[%s94_s1 + $0x1] sm:$0x1] %v30_v8 }
  0x88   :  { %51 = vst [vmem:[%s94_s1 + $0x2] sm:$0x1] %v36_v9 }
  0x89   :  { %52 = vst [vmem:[%s94_s1 + $0x3] sm:$0x1] %v42_v10 }

// kernel: tile.94
= control target key start
LH: loop header
LB: loop body
LE: loop exit
PB: predicated region body
PF: predicated region fallthrough
CT: control target
= control target key end

     0   :  { %s56_s8 = smov 96   ;;  %s57_s11 = smov 32   ;;  %vm3_vm0 = vcmask 261120   ;;  %vm9_vm1 = vcmask 1048320   ;;  %vm15_vm2 = vcmask 785920   ;;  %vm21_vm3 = vcmask 523520   ;;  %s93_s0 = inlined_call_operand.vmem [shape: f32[16,32], index: 0, kind: input, shape index: {}]   ;;  %s94_s1 = inlined_call_operand.vmem [shape: f32[1,512], index: 1, kind: output, shape index: {}]  }
   0x1   :  { %v47_v0 = vld [vmem:[%s93_s0 + $0x3] ss:$4 sm:$0xf]   ;;  %v49_v1 = vld [vmem:[%s93_s0 + $0x1] ss:$4 sm:$0xf]  }
   0x2   :  { %7 = vrot.lane.b32.xlu0 %v47_v0, %s56_s8  ;;  %19 = vrot.lane.b32.xlu1 %v49_v1, %s57_s11  ;;  %v48_v2 = vld [vmem:[%s93_s0 + $0x2] ss:$4 sm:$0xf]   ;;  %s58_s14 = smov 64  }
   0x3   :  { %v2_v3 = vld [vmem:[%s93_s0] ss:$4 sm:$0xf]  }
   0x4   :  { %4 = vst.msk [vmem:[#allocation0] ss:$8 sm:$0xf] %vm3_vm0, %v2_v3  }
   0xa   :  { %13 = vrot.lane.b32.xlu0 %v48_v2, %s58_s14 }
  0x74   :  { %v8_v4 = vpop.permute.xlu0 %7   ;;  %v20_v5 = vpop.permute.xlu1 %19  }
  0x75   :  { %10 = vst.msk [vmem:[#allocation0] ss:$8 sm:$0xf] %vm9_vm1, %v8_v4  }
  0x7c   :  { %v14_v6 = vpop.permute.xlu0 %13  }
  0x7d   :  { %16 = vst.msk [vmem:[#allocation0] ss:$8 sm:$0xf] %vm15_vm2, %v14_v6  }
  0x7e   :  { %22 = vst.msk [vmem:[#allocation0] ss:$8 sm:$0xf] %vm21_vm3, %v20_v5  }
  0x85   :  { %v25_v7 = vld [vmem:[#allocation0] sm:$0x1]  ;;  %v30_v8 = vld [vmem:[#allocation0 + $0x8] sm:$0x1]  ;;  %v36_v9 = vld [vmem:[#allocation0 + $0x10] sm:$0x1] }
  0x86   :  { %28 = vst [vmem:[%s94_s1] sm:$0x1] %v25_v7  ;;  %v42_v10 = vld [vmem:[#allocation0 + $0x18] sm:$0x1] }
  0x87   :  { %50 = vst [vmem:[%s94_s1 + $0x1] sm:$0x1] %v30_v8 }
  0x88   :  { %51 = vst [vmem:[%s94_s1 + $0x2] sm:$0x1] %v36_v9 }
  0x89   :  { %52 = vst [vmem:[%s94_s1 + $0x3] sm:$0x1] %v42_v10 }

// kernel: sk_rdb_forward.1
= control target key start
LH: loop header
LB: loop body
LE: loop exit
PB: predicated region body
PF: predicated region fallthrough
CT: control target
= control target key end

     0   :  { %s10296_s17 = smov 0   ;;  %s10298_s18 = smov 0   ;;  %s13278_s0 = inlined_call_operand.vmem [shape: f32[2,16,512], index: 0, kind: input, shape index: {}]   ;;  %s13279_s1 = inlined_call_operand.vmem [shape: bf16[2,3,512,512], index: 1, kind: input, shape index: {}]   ;;  %s13280_s2 = inlined_call_operand.vmem [shape: f32[2,1,512], index: 2, kind: input, shape index: {}]   ;;  %s13281_s3 = inlined_call_operand.vmem [shape: bf16[2,512,4], index: 3, kind: input, shape index: {}]   ;;  %s13282_s4 = inlined_call_operand.vmem [shape: f32[2,1,1], index: 4, kind: input, shape index: {}]   ;;  %s13283_s5 = inlined_call_operand.vmem [shape: bf16[2,4,512], index: 5, kind: input, shape index: {}]   ;;  %s13284_s6 = inlined_call_operand.vmem [shape: bf16[2,4,512], index: 6, kind: input, shape index: {}]   ;;  %s13285_s7 = inlined_call_operand.vmem [shape: bf16[512,512], index: 7, kind: input, shape index: {}]   ;;  %s13286_s8 = inlined_call_operand.vmem [shape: f32[1,512], index: 8, kind: input, shape index: {}]   ;;  %s13287_s9 = inlined_call_operand.vmem [shape: bf16[512,512], index: 9, kind: input, shape index: {}]   ;;  %s13288_s10 = inlined_call_operand.vmem [shape: f32[1,512], index: 10, kind: input, shape index: {}]   ;;  %s13289_s11 = inlined_call_operand.vmem [shape: f32[2,16,512], index: 11, kind: output, shape index: {}]  }
   0x1   :  { %13294 = sst [smem:[#allocation9_spill]] %s13278_s0  ;;  %s10300_s19 = smov 0  }
   0x2   :  { %13295 = sst [smem:[#allocation10_spill]] %s13287_s9  ;;  %s10302_s20 = smov 0  }
   0x3   :  { %13296 = sst [smem:[#allocation11_spill]] %s13288_s10  ;;  %s10304_s21 = smov 0  }
   0x4 LB: > { %13297 = sst [smem:[#allocation4_spill]] %s10225_s19  ;;  %s30_s22 = sadd.s32 1, %s10225_s19  ;;  %s10233_s21 = sphi %s10304_s21, %s21_s21   ;;  %s10229_s20 = sphi %s10302_s20, %s13311_s20   ;;  %s10225_s19 = sphi %s10300_s19, %s13310_s19   ;;  %s10221_s18 = sphi %s10298_s18, %s13309_s18   ;;  %s10217_s17 = sphi %s10296_s17, %s13308_s17  }
   0x5   : > { %13298 = sst [smem:[#allocation5_spill]] %s10229_s20  ;;  %s33_s23 = sadd.s32 1, %s10229_s20 }
   0x6   : > { %13299 = sst [smem:[#allocation6_spill]] %s10233_s21  ;;  %p31_p0 = scmp.ge.s32.totalorder %s30_s22, 2 }
   0x7   : > { %p6473_p1 = scmp.ge.s32.totalorder %s10233_s21, 1  ;;  %p406_p2 = scmp.lt.s32.totalorder %s10233_s21, 5 }
   0x8   : > { %s13313_s22 = smov (%p31_p0, %s30_s22), 0  ;;  %s13315_s23 = smov (!%p31_p0, %s33_s23), %s10229_s20 }
   0x9   : > { %13300 = sst [smem:[#allocation7_spill]] %s13313_s22  ;;  %p407_p3 = pnand %p6473_p1, %p406_p2 }
   0xa   : > { %p35_p4 = scmp.ge.s32.totalorder %s13315_s23, 2  ;;  %p473_p5 = scmp.lt.s32.totalorder (!%p407_p3), %s10221_s18, 1 }
   0xb   : > { %410 = sbr.rel (%p407_p3) target bundleno = 1481 (0x5c9), region = 64  ;;  %p478_p6 = scmp.lt.s32.totalorder (!%p407_p3), %s10217_s17, 1 }
   0xc   : > { %s13317_s23 = smov (%p35_p4, %s13315_s23), 0  ;;  %s13302_s0 = sld [smem:[#allocation9_spill]] (!%p407_p3) }
   0xd   : > { %13301 = sst [smem:[#allocation8_spill]] %s13317_s23  ;;  %p6486_p7 = scmp.ne.s32.totalorder (!%p407_p3), %s10217_s17, 0 }
  0x10   : > { %s13319_s18 = smov (!%p473_p5, %s10221_s18), 1 }
  0x11   : > { %s10330_s24 = scalar_select %p478_p6, %s10217_s17, 1 }
  0x12   : > { %s9443_s25 = sshll.u32 %s13319_s18, 6 }
  0x13   : > { %s10335_s28 = scalar_lea.vmem %s13302_s0, %s9443_s25  ;;  %s10120_s29 = smul.u32 3072, %s10330_s24 }
  0x14   : > { %s6477_s30 = sshll.u32 %s10330_s24, 2  ;;  %s9444_s12 = sshll.u32 %s10330_s24, 8 }
  0x15   : > { %s10343_s15 = scalar_lea.vmem %s13279_s1, %s10120_s29  ;;  %s10348_s22 = scalar_lea.vmem %s13280_s2, %s6477_s30 }
  0x16   : > { %s10353_s19 = scalar_lea.vmem %s13281_s3, %s9444_s12  ;;  %s494_s0 = scalar_lea.vmem %s13282_s4, %s10330_s24 }
  0x17   : > { %s9445_s21 = sshll.u32 %s10330_s24, 3  ;;  %s10363_s29 = scalar_lea.vmem %s13289_s11, %s9443_s25 }
  0x18   : > { %s10368_s23 = scalar_lea.vmem %s13283_s5, %s9445_s21  ;;  %s10373_s20 = scalar_lea.vmem %s13284_s6, %s9445_s21 }
  0x19   : > { %514 = sbr.rel (%p6486_p7) target bundleno = 307 (0x133), region = 68 }
  0x1e   : > { %v6601_v0 = vld [vmem:[%s13285_s7 + $0xe0] sm:$0xf]  ;;  %v9478_v1 = vld [vmem:[%s13285_s7 + $0xec] sm:$0xf0] }
  0x1f   : > { %v6729_v2 = vld [vmem:[%s13285_s7 + $0x1e0] sm:$0xf]  ;;  %v6602_v3 = vor.u32 %v9478_v1, %v6601_v0  ;;  %v9510_v4 = vld [vmem:[%s13285_s7 + $0x1ec] sm:$0xf0] }
  0x20   : > { %v6857_v5 = vld [vmem:[%s13285_s7 + $0x2e0] sm:$0xf]  ;;  %v9542_v6 = vld [vmem:[%s13285_s7 + $0x2ec] sm:$0xf0]  ;;  %v6730_v7 = vor.u32 %v9510_v4, %v6729_v2 }
  0x21   : > { %v6858_v8 = vor.u32 %v9542_v6, %v6857_v5  ;;  %v6985_v9 = vld [vmem:[%s13285_s7 + $0x3e0] sm:$0xf]  ;;  %v9574_v10 = vld [vmem:[%s13285_s7 + $0x3ec] sm:$0xf0]  ;;  %1313 = vmatpush.bf16.msra.mxu0 %v6602_v3 }
  0x22   : > { %v6585_v11 = vld [vmem:[%s13285_s7 + $0xc0] sm:$0xf]  ;;  %v6986_v12 = vor.u32 %v9574_v10, %v6985_v9  ;;  %v9474_v13 = vld [vmem:[%s13285_s7 + $0xcc] sm:$0xf0]  ;;  %1327 = vmatpush.bf16.msra.mxu1 %v6730_v7 }
  0x23   : > { %v6713_v14 = vld [vmem:[%s13285_s7 + $0x1c0] sm:$0xf]  ;;  %v9506_v15 = vld [vmem:[%s13285_s7 + $0x1cc] sm:$0xf0]  ;;  %1341 = vmatpush.bf16.msra.mxu2 %v6858_v8  ;;  %v6586_v16 = vor.u32 %v9474_v13, %v6585_v11 }
  0x24   : > { %v6714_v17 = vor.u32 %v9506_v15, %v6713_v14  ;;  %v6841_v18 = vld [vmem:[%s13285_s7 + $0x2c0] sm:$0xf]  ;;  %v9538_v19 = vld [vmem:[%s13285_s7 + $0x2cc] sm:$0xf0]  ;;  %1355 = vmatpush.bf16.msra.mxu3 %v6986_v12 }
  0x25   : > { %v6969_v20 = vld [vmem:[%s13285_s7 + $0x3c0] sm:$0xf]  ;;  %v6842_v21 = vor.u32 %v9538_v19, %v6841_v18  ;;  %v9570_v22 = vld [vmem:[%s13285_s7 + $0x3cc] sm:$0xf0]  ;;  %1314 = vmatpush.bf16.msra.mxu0 %v6586_v16 }
  0x26   : > { %v6569_v23 = vld [vmem:[%s13285_s7 + $0xa0] sm:$0xf]  ;;  %v9470_v24 = vld [vmem:[%s13285_s7 + $0xac] sm:$0xf0]  ;;  %v6970_v25 = vor.u32 %v9570_v22, %v6969_v20  ;;  %1328 = vmatpush.bf16.msra.mxu1 %v6714_v17 }
  0x27   : > { %v6697_v26 = vld [vmem:[%s13285_s7 + $0x1a0] sm:$0xf]  ;;  %v9502_v27 = vld [vmem:[%s13285_s7 + $0x1ac] sm:$0xf0]  ;;  %v6570_v29 = vor.u32 %v9470_v24, %v6569_v23  ;;  %1342 = vmatpush.bf16.msra.mxu2 %v6842_v21 }
  0x28   : > { %v6825_v28 = vld [vmem:[%s13285_s7 + $0x2a0] sm:$0xf]  ;;  %v9534_v30 = vld [vmem:[%s13285_s7 + $0x2ac] sm:$0xf0]  ;;  %v6698_v33 = vor.u32 %v9502_v27, %v6697_v26  ;;  %1356 = vmatpush.bf16.msra.mxu3 %v6970_v25 }
  0x29   : > { %v6953_v31 = vld [vmem:[%s13285_s7 + $0x3a0] sm:$0xf]  ;;  %v9566_v32 = vld [vmem:[%s13285_s7 + $0x3ac] sm:$0xf0]  ;;  %v6826_v34 = vor.u32 %v9534_v30, %v6825_v28  ;;  %1315 = vmatpush.bf16.msra.mxu0 %v6570_v29  ;;  %v9476_v28 = vld [vmem:[%s13285_s7 + $0xe4] sm:$0xf] }
  0x2a   : > { %v6553_v35 = vld [vmem:[%s13285_s7 + $0x80] sm:$0xf]  ;;  %v9466_v36 = vld [vmem:[%s13285_s7 + $0x8c] sm:$0xf0]  ;;  %v6954_v38 = vor.u32 %v9566_v32, %v6953_v31  ;;  %1329 = vmatpush.bf16.msra.mxu1 %v6698_v33  ;;  %v6603_v29 = vld [vmem:[%s13285_s7 + $0xf0] sm:$0xf0] }
  0x2b   : > { %v6681_v37 = vld [vmem:[%s13285_s7 + $0x180] sm:$0xf]  ;;  %v9498_v39 = vld [vmem:[%s13285_s7 + $0x18c] sm:$0xf0]  ;;  %v6554_v44 = vor.u32 %v9466_v36, %v6553_v35  ;;  %1343 = vmatpush.bf16.msra.mxu2 %v6826_v34  ;;  %v9508_v30 = vld [vmem:[%s13285_s7 + $0x1e4] sm:$0xf] }
  0x2c   : > { %v6809_v40 = vld [vmem:[%s13285_s7 + $0x280] sm:$0xf]  ;;  %v9530_v41 = vld [vmem:[%s13285_s7 + $0x28c] sm:$0xf0]  ;;  %v6682_v45 = vor.u32 %v9498_v39, %v6681_v37  ;;  %1357 = vmatpush.bf16.msra.mxu3 %v6954_v38  ;;  %v6731_v32 = vld [vmem:[%s13285_s7 + $0x1f0] sm:$0xf0] }
  0x2d   : > { %v6937_v42 = vld [vmem:[%s13285_s7 + $0x380] sm:$0xf]  ;;  %v9562_v43 = vld [vmem:[%s13285_s7 + $0x38c] sm:$0xf0]  ;;  %v6810_v46 = vor.u32 %v9530_v41, %v6809_v40  ;;  %1316 = vmatpush.bf16.msra.mxu0 %v6554_v44  ;;  %v9540_v33 = vld [vmem:[%s13285_s7 + $0x2e4] sm:$0xf]  ;;  %v6606_v40 = vor.u32 %v9476_v28, %v6603_v29  ;;  %v6734_v41 = vor.u32 %v9508_v30, %v6731_v32 }
  0x2e   : > { %v6537_v47 = vld [vmem:[%s13285_s7 + $0x60] sm:$0xf]  ;;  %v9462_v48 = vld [vmem:[%s13285_s7 + $0x6c] sm:$0xf0]  ;;  %v6938_v50 = vor.u32 %v9562_v43, %v6937_v42  ;;  %1330 = vmatpush.bf16.msra.mxu1 %v6682_v45  ;;  %v6859_v34 = vld [vmem:[%s13285_s7 + $0x2f0] sm:$0xf0] }
  0x2f   : > { %v6665_v49 = vld [vmem:[%s13285_s7 + $0x160] sm:$0xf]  ;;  %v9494_v51 = vld [vmem:[%s13285_s7 + $0x16c] sm:$0xf0]  ;;  %v6538_v56 = vor.u32 %v9462_v48, %v6537_v47  ;;  %1344 = vmatpush.bf16.msra.mxu2 %v6810_v46  ;;  %v9572_v37 = vld [vmem:[%s13285_s7 + $0x3e4] sm:$0xf]  ;;  %v6862_v42 = vor.u32 %v9540_v33, %v6859_v34 }
  0x30   : > { %v6793_v52 = vld [vmem:[%s13285_s7 + $0x260] sm:$0xf]  ;;  %v9526_v53 = vld [vmem:[%s13285_s7 + $0x26c] sm:$0xf0]  ;;  %v6666_v57 = vor.u32 %v9494_v51, %v6665_v49  ;;  %1358 = vmatpush.bf16.msra.mxu3 %v6938_v50  ;;  %v6987_v38 = vld [vmem:[%s13285_s7 + $0x3f0] sm:$0xf0] }
  0x31   : > { %v6921_v54 = vld [vmem:[%s13285_s7 + $0x360] sm:$0xf]  ;;  %v9558_v55 = vld [vmem:[%s13285_s7 + $0x36c] sm:$0xf0]  ;;  %v6794_v58 = vor.u32 %v9526_v53, %v6793_v52  ;;  %1317 = vmatpush.bf16.msra.mxu0 %v6538_v56  ;;  %v9472_v43 = vld [vmem:[%s13285_s7 + $0xc4] sm:$0xf]  ;;  %v6990_v46 = vor.u32 %v9572_v37, %v6987_v38 }
  0x32   : > { %v6521_v59 = vld [vmem:[%s13285_s7 + $0x40] sm:$0xf]  ;;  %v9458_v60 = vld [vmem:[%s13285_s7 + $0x4c] sm:$0xf0]  ;;  %v6922_v62 = vor.u32 %v9558_v55, %v6921_v54  ;;  %1331 = vmatpush.bf16.msra.mxu1 %v6666_v57  ;;  %v6587_v44 = vld [vmem:[%s13285_s7 + $0xd0] sm:$0xf0] }
  0x33   : > { %v6649_v61 = vld [vmem:[%s13285_s7 + $0x140] sm:$0xf]  ;;  %v9490_v63 = vld [vmem:[%s13285_s7 + $0x14c] sm:$0xf0]  ;;  %v6522_v4 = vor.u32 %v9458_v60, %v6521_v59  ;;  %1345 = vmatpush.bf16.msra.mxu2 %v6794_v58  ;;  %v9504_v45 = vld [vmem:[%s13285_s7 + $0x1c4] sm:$0xf]  ;;  %v6590_v52 = vor.u32 %v9472_v43, %v6587_v44 }
  0x34   : > { %v6777_v0 = vld [vmem:[%s13285_s7 + $0x240] sm:$0xf]  ;;  %v9522_v1 = vld [vmem:[%s13285_s7 + $0x24c] sm:$0xf0]  ;;  %v6650_v5 = vor.u32 %v9490_v63, %v6649_v61  ;;  %1359 = vmatpush.bf16.msra.mxu3 %v6922_v62  ;;  %v6715_v47 = vld [vmem:[%s13285_s7 + $0x1d0] sm:$0xf0] }
  0x35   : > { %v6905_v2 = vld [vmem:[%s13285_s7 + $0x340] sm:$0xf]  ;;  %v9554_v3 = vld [vmem:[%s13285_s7 + $0x34c] sm:$0xf0]  ;;  %v6778_v6 = vor.u32 %v9522_v1, %v6777_v0  ;;  %1318 = vmatpush.bf16.msra.mxu0 %v6522_v4  ;;  %v9536_v48 = vld [vmem:[%s13285_s7 + $0x2c4] sm:$0xf]  ;;  %v6718_v54 = vor.u32 %v9504_v45, %v6715_v47 }
  0x36   : > { %v6505_v7 = vld [vmem:[%s13285_s7 + $0x20] sm:$0xf]  ;;  %v9454_v8 = vld [vmem:[%s13285_s7 + $0x2c] sm:$0xf0]  ;;  %v6906_v10 = vor.u32 %v9554_v3, %v6905_v2  ;;  %1332 = vmatpush.bf16.msra.mxu1 %v6650_v5  ;;  %v6843_v49 = vld [vmem:[%s13285_s7 + $0x2d0] sm:$0xf0] }
  0x37   : > { %v6633_v9 = vld [vmem:[%s13285_s7 + $0x120] sm:$0xf]  ;;  %v9486_v11 = vld [vmem:[%s13285_s7 + $0x12c] sm:$0xf0]  ;;  %v6506_v16 = vor.u32 %v9454_v8, %v6505_v7  ;;  %1346 = vmatpush.bf16.msra.mxu2 %v6778_v6  ;;  %v9568_v50 = vld [vmem:[%s13285_s7 + $0x3c4] sm:$0xf]  ;;  %v6846_v55 = vor.u32 %v9536_v48, %v6843_v49 }
  0x38   : > { %v6761_v12 = vld [vmem:[%s13285_s7 + $0x220] sm:$0xf]  ;;  %v9518_v13 = vld [vmem:[%s13285_s7 + $0x22c] sm:$0xf0]  ;;  %v6634_v19 = vor.u32 %v9486_v11, %v6633_v9  ;;  %1360 = vmatpush.bf16.msra.mxu3 %v6906_v10  ;;  %v6971_v51 = vld [vmem:[%s13285_s7 + $0x3d0] sm:$0xf0] }
  0x39   : > { %v6889_v14 = vld [vmem:[%s13285_s7 + $0x320] sm:$0xf]  ;;  %v9550_v15 = vld [vmem:[%s13285_s7 + $0x32c] sm:$0xf0]  ;;  %v6762_v20 = vor.u32 %v9518_v13, %v6761_v12  ;;  %1319 = vmatpush.bf16.msra.mxu0 %v6506_v16  ;;  %v9468_v53 = vld [vmem:[%s13285_s7 + $0xa4] sm:$0xf]  ;;  %v6974_v59 = vor.u32 %v9568_v50, %v6971_v51 }
  0x3a   : > { %v6489_v17 = vld [vmem:[%s13285_s7] sm:$0xf]  ;;  %v9450_v18 = vld [vmem:[%s13285_s7 + $0xc] sm:$0xf0]  ;;  %v6890_v24 = vor.u32 %v9550_v15, %v6889_v14  ;;  %1333 = vmatpush.bf16.msra.mxu1 %v6634_v19  ;;  %v6571_v56 = vld [vmem:[%s13285_s7 + $0xb0] sm:$0xf0] }
  0x3b   : > { %v6617_v21 = vld [vmem:[%s13285_s7 + $0x100] sm:$0xf]  ;;  %v9482_v22 = vld [vmem:[%s13285_s7 + $0x10c] sm:$0xf0]  ;;  %v6490_v31 = vor.u32 %v9450_v18, %v6489_v17  ;;  %1347 = vmatpush.bf16.msra.mxu2 %v6762_v20  ;;  %v9500_v57 = vld [vmem:[%s13285_s7 + $0x1a4] sm:$0xf]  ;;  %v6574_v2 = vor.u32 %v9468_v53, %v6571_v56 }
  0x3c   : > { %v6745_v23 = vld [vmem:[%s13285_s7 + $0x200] sm:$0xf]  ;;  %v9514_v25 = vld [vmem:[%s13285_s7 + $0x20c] sm:$0xf0]  ;;  %v6618_v35 = vor.u32 %v9482_v22, %v6617_v21  ;;  %1361 = vmatpush.bf16.msra.mxu3 %v6890_v24  ;;  %v6699_v58 = vld [vmem:[%s13285_s7 + $0x1b0] sm:$0xf0] }
  0x3d   : > { %v6873_v26 = vld [vmem:[%s13285_s7 + $0x300] sm:$0xf]  ;;  %v9546_v27 = vld [vmem:[%s13285_s7 + $0x30c] sm:$0xf0]  ;;  %v6746_v36 = vor.u32 %v9514_v25, %v6745_v23  ;;  %1320 = vmatpush.bf16.msra.mxu0 %v6490_v31  ;;  %v9532_v60 = vld [vmem:[%s13285_s7 + $0x2a4] sm:$0xf]  ;;  %v6702_v7 = vor.u32 %v9500_v57, %v6699_v58 }
  0x3e   : > { %v6874_v39 = vor.u32 %v9546_v27, %v6873_v26  ;;  %1334 = vmatpush.bf16.msra.mxu1 %v6618_v35  ;;  %v6827_v61 = vld [vmem:[%s13285_s7 + $0x2b0] sm:$0xf0]  ;;  %v9564_v62 = vld [vmem:[%s13285_s7 + $0x3a4] sm:$0xf]  ;;  %v518_v12 = vld [vmem:[%s10335_s28 + $0x18] sm:$0xff] }
  0x3f   : > { %1348 = vmatpush.bf16.msra.mxu2 %v6746_v36  ;;  %v6955_v63 = vld [vmem:[%s13285_s7 + $0x3b0] sm:$0xf0]  ;;  %v9464_v0 = vld [vmem:[%s13285_s7 + $0x84] sm:$0xf]  ;;  %v6830_v8 = vor.u32 %v9532_v60, %v6827_v61  ;;  %v522_v17 = vld [vmem:[%s10335_s28 + $0x38] sm:$0xff]  ;;  %526 = vst [vmem:[#allocation2 + $0x10] sm:$0xff] %v518_v12 }
  0x40   : > { %1362 = vmatpush.bf16.msra.mxu3 %v6874_v39  ;;  %v6555_v1 = vld [vmem:[%s13285_s7 + $0x90] sm:$0xf0]  ;;  %v9496_v3 = vld [vmem:[%s13285_s7 + $0x184] sm:$0xf]  ;;  %v6958_v13 = vor.u32 %v9564_v62, %v6955_v63  ;;  %v10675_v20 = vpack.c.bf16 %v522_v17, %v518_v12  ;;  %v516_v21 = vld [vmem:[%s10335_s28 + $0x8] sm:$0xff]  ;;  %530 = vst [vmem:[#allocation2 + $0x38] sm:$0xff] %v522_v17 }
  0x41   : > { %1369 = vmatpush.bf16.msrb.mxu0 %v6606_v40  ;;  %v6683_v4 = vld [vmem:[%s13285_s7 + $0x190] sm:$0xf0]  ;;  %v515_v10 = vld [vmem:[%s10335_s28] sm:$0xff]  ;;  %v6558_v22 = vor.u32 %v9464_v0, %v6555_v1  ;;  %v520_v25 = vld [vmem:[%s10335_s28 + $0x28] sm:$0xff]  ;;  %524 = vst [vmem:[#allocation2] sm:$0xff] %v516_v21 }
  0x42   : > { %1383 = vmatpush.bf16.msrb.mxu1 %v6734_v41  ;;  %v517_v5 = vld [vmem:[%s10335_s28 + $0x10] sm:$0xff]  ;;  %v519_v11 = vld [vmem:[%s10335_s28 + $0x20] sm:$0xff]  ;;  %523 = vst [vmem:[#allocation2 + $0x30] sm:$0xff] %v515_v10  ;;  %v6686_v26 = vor.u32 %v9496_v3, %v6683_v4  ;;  %v10691_v30 = vpack.c.bf16 %v520_v25, %v516_v21  ;;  %v9575_v21 = vld [vmem:[%s13285_s7 + $0x3f4] sm:$0xf0] }
  0x43   : > { %1397 = vmatpush.bf16.msrb.mxu2 %v6862_v42  ;;  %v521_v6 = vld [vmem:[%s10335_s28 + $0x30] sm:$0xff]  ;;  %525 = vst [vmem:[#allocation2 + $0x18] sm:$0xff] %v517_v5  ;;  %v9528_v14 = vld [vmem:[%s13285_s7 + $0x284] sm:$0xf]  ;;  %v10665_v16 = vpack.c.bf16 %v519_v11, %v515_v10  ;;  %1363 = vmatmul.bf16.vlgmr.msra.gmra.mxu3 %v10675_v20  ;;  %v9479_v10 = vld [vmem:[%s13285_s7 + $0xf4] sm:$0xf0] }
  0x44   : > { %1411 = vmatpush.bf16.msrb.mxu3 %v6990_v46  ;;  %v10654_v9 = vpack.c.bf16 %v521_v6, %v517_v5  ;;  %v6811_v15 = vld [vmem:[%s13285_s7 + $0x290] sm:$0xf0]  ;;  %529 = vst [vmem:[#allocation2 + $0x28] sm:$0xff] %v521_v6  ;;  %v9560_v18 = vld [vmem:[%s13285_s7 + $0x384] sm:$0xf]  ;;  %1335 = vmatmul.bf16.vlgmr.msra.gmra.mxu1 %v10691_v30 }
  0x45   : > { %1370 = vmatpush.bf16.msrb.mxu0 %v6590_v52  ;;  %v6939_v19 = vld [vmem:[%s13285_s7 + $0x390] sm:$0xf0]  ;;  %v9460_v23 = vld [vmem:[%s13285_s7 + $0x64] sm:$0xf]  ;;  %527 = vst [vmem:[#allocation2 + $0x8] sm:$0xff] %v519_v11  ;;  %v6814_v27 = vor.u32 %v9528_v14, %v6811_v15 }
  0x46   : > { %1384 = vmatpush.bf16.msrb.mxu1 %v6718_v54  ;;  %1349 = vmatmul.bf16.vlgmr.msra.gmra.mxu2 %v10654_v9  ;;  %v6539_v24 = vld [vmem:[%s13285_s7 + $0x70] sm:$0xf0]  ;;  %v9492_v28 = vld [vmem:[%s13285_s7 + $0x164] sm:$0xf]  ;;  %v6942_v31 = vor.u32 %v9560_v18, %v6939_v19  ;;  %528 = vst [vmem:[#allocation2 + $0x20] sm:$0xff] %v520_v25 }
  0x47   : > { %1398 = vmatpush.bf16.msrb.mxu2 %v6846_v55  ;;  %v6667_v29 = vld [vmem:[%s13285_s7 + $0x170] sm:$0xf0]  ;;  %v9524_v32 = vld [vmem:[%s13285_s7 + $0x264] sm:$0xf]  ;;  %1321 = vmatmul.bf16.vlgmr.msra.gmra.mxu0 %v10665_v16  ;;  %v6542_v36 = vor.u32 %v9460_v23, %v6539_v24  ;;  %v6737_v11 = vld [vmem:[%s13285_s7 + $0x1e8] sm:$0xf] }
  0x48   : > { %1412 = vmatpush.bf16.msrb.mxu3 %v6974_v59  ;;  %v6795_v33 = vld [vmem:[%s13285_s7 + $0x270] sm:$0xf0]  ;;  %v9556_v34 = vld [vmem:[%s13285_s7 + $0x364] sm:$0xf]  ;;  %v6670_v37 = vor.u32 %v9492_v28, %v6667_v29  ;;  %v6865_v14 = vld [vmem:[%s13285_s7 + $0x2e8] sm:$0xf] }
  0x49   : > { %1371 = vmatpush.bf16.msrb.mxu0 %v6574_v2  ;;  %v6923_v35 = vld [vmem:[%s13285_s7 + $0x370] sm:$0xf0]  ;;  %v6798_v38 = vor.u32 %v9524_v32, %v6795_v33  ;;  %v9456_v39 = vld [vmem:[%s13285_s7 + $0x44] sm:$0xf]  ;;  %v9543_v15 = vld [vmem:[%s13285_s7 + $0x2f4] sm:$0xf0] }
  0x4a   : > { %1385 = vmatpush.bf16.msrb.mxu1 %v6702_v7  ;;  %v6523_v40 = vld [vmem:[%s13285_s7 + $0x50] sm:$0xf0]  ;;  %v9488_v41 = vld [vmem:[%s13285_s7 + $0x144] sm:$0xf]  ;;  %v6926_v42 = vor.u32 %v9556_v34, %v6923_v35  ;;  %v6993_v19 = vld [vmem:[%s13285_s7 + $0x3e8] sm:$0xf]  ;;  %v6866_v25 = vor.u32 %v9543_v15, %v6865_v14 }
  0x4b   : > { %1399 = vmatpush.bf16.msrb.mxu2 %v6830_v8  ;;  %v6651_v43 = vld [vmem:[%s13285_s7 + $0x150] sm:$0xf0]  ;;  %v9520_v44 = vld [vmem:[%s13285_s7 + $0x244] sm:$0xf]  ;;  %v6526_v48 = vor.u32 %v9456_v39, %v6523_v40  ;;  %v6609_v8 = vld [vmem:[%s13285_s7 + $0xe8] sm:$0xf]  ;;  %v6994_v29 = vor.u32 %v9575_v21, %v6993_v19 }
  0x4c   : > { %1413 = vmatpush.bf16.msrb.mxu3 %v6958_v13  ;;  %v6779_v45 = vld [vmem:[%s13285_s7 + $0x250] sm:$0xf0]  ;;  %v9552_v46 = vld [vmem:[%s13285_s7 + $0x344] sm:$0xf]  ;;  %v6654_v49 = vor.u32 %v9488_v41, %v6651_v43  ;;  %v9511_v13 = vld [vmem:[%s13285_s7 + $0x1f4] sm:$0xf0]  ;;  %v6610_v23 = vor.u32 %v9479_v10, %v6609_v8 }
  0x4d   : > { %1372 = vmatpush.bf16.msrb.mxu0 %v6558_v22  ;;  %v6907_v47 = vld [vmem:[%s13285_s7 + $0x350] sm:$0xf0]  ;;  %v6782_v50 = vor.u32 %v9520_v44, %v6779_v45  ;;  %v9452_v51 = vld [vmem:[%s13285_s7 + $0x24] sm:$0xf]  ;;  %v6738_v24 = vor.u32 %v9511_v13, %v6737_v11  ;;  %v6721_v28 = vld [vmem:[%s13285_s7 + $0x1c8] sm:$0xf] }
  0x4e   : > { %1386 = vmatpush.bf16.msrb.mxu1 %v6686_v26  ;;  %v6507_v52 = vld [vmem:[%s13285_s7 + $0x30] sm:$0xf0]  ;;  %v9484_v53 = vld [vmem:[%s13285_s7 + $0x124] sm:$0xf]  ;;  %v6910_v54 = vor.u32 %v9552_v46, %v6907_v47  ;;  %v6593_v26 = vld [vmem:[%s13285_s7 + $0xc8] sm:$0xf] }
  0x4f   : > { %1400 = vmatpush.bf16.msrb.mxu2 %v6814_v27  ;;  %v6635_v55 = vld [vmem:[%s13285_s7 + $0x130] sm:$0xf0]  ;;  %v9516_v56 = vld [vmem:[%s13285_s7 + $0x224] sm:$0xf]  ;;  %v6510_v60 = vor.u32 %v9452_v51, %v6507_v52  ;;  %v9475_v27 = vld [vmem:[%s13285_s7 + $0xd4] sm:$0xf0] }
  0x50   : > { %1414 = vmatpush.bf16.msrb.mxu3 %v6942_v31  ;;  %v6763_v57 = vld [vmem:[%s13285_s7 + $0x230] sm:$0xf0]  ;;  %v9548_v58 = vld [vmem:[%s13285_s7 + $0x324] sm:$0xf]  ;;  %v6638_v63 = vor.u32 %v9484_v53, %v6635_v55  ;;  %v9507_v31 = vld [vmem:[%s13285_s7 + $0x1d4] sm:$0xf0] }
  0x51   : > { %1373 = vmatpush.bf16.msrb.mxu0 %v6542_v36  ;;  %v6891_v59 = vld [vmem:[%s13285_s7 + $0x330] sm:$0xf0]  ;;  %v9448_v61 = vld [vmem:[%s13285_s7 + $0x4] sm:$0xf]  ;;  %v6766_v0 = vor.u32 %v9516_v56, %v6763_v57  ;;  %v6849_v32 = vld [vmem:[%s13285_s7 + $0x2c8] sm:$0xf]  ;;  %v6594_v36 = vor.u32 %v9475_v27, %v6593_v26 }
  0x52   : > { %1387 = vmatpush.bf16.msrb.mxu1 %v6670_v37  ;;  %v6491_v62 = vld [vmem:[%s13285_s7 + $0x10] sm:$0xf0]  ;;  %v9480_v1 = vld [vmem:[%s13285_s7 + $0x104] sm:$0xf]  ;;  %v6894_v4 = vor.u32 %v9548_v58, %v6891_v59  ;;  %v9539_v33 = vld [vmem:[%s13285_s7 + $0x2d4] sm:$0xf0]  ;;  %v6722_v37 = vor.u32 %v9507_v31, %v6721_v28 }
  0x53   : > { %1401 = vmatpush.bf16.msrb.mxu2 %v6798_v38  ;;  %v6619_v2 = vld [vmem:[%s13285_s7 + $0x110] sm:$0xf0]  ;;  %v9512_v3 = vld [vmem:[%s13285_s7 + $0x204] sm:$0xf]  ;;  %v6494_v12 = vor.u32 %v9448_v61, %v6491_v62  ;;  %v6977_v34 = vld [vmem:[%s13285_s7 + $0x3c8] sm:$0xf]  ;;  %v6850_v38 = vor.u32 %v9539_v33, %v6849_v32 }
  0x54   : > { %1415 = vmatpush.bf16.msrb.mxu3 %v6926_v42  ;;  %v6747_v5 = vld [vmem:[%s13285_s7 + $0x210] sm:$0xf0]  ;;  %v9544_v6 = vld [vmem:[%s13285_s7 + $0x304] sm:$0xf]  ;;  %v6622_v17 = vor.u32 %v9480_v1, %v6619_v2  ;;  %v9571_v35 = vld [vmem:[%s13285_s7 + $0x3d4] sm:$0xf0] }
  0x55   : > { %1374 = vmatpush.bf16.msrb.mxu0 %v6526_v48  ;;  %v6875_v7 = vld [vmem:[%s13285_s7 + $0x310] sm:$0xf0]  ;;  %v6750_v18 = vor.u32 %v9512_v3, %v6747_v5  ;;  %v6577_v39 = vld [vmem:[%s13285_s7 + $0xa8] sm:$0xf]  ;;  %v9471_v40 = vld [vmem:[%s13285_s7 + $0xb4] sm:$0xf0]  ;;  %v6978_v42 = vor.u32 %v9571_v35, %v6977_v34 }
  0x56   : > { %1388 = vmatpush.bf16.msrb.mxu1 %v6654_v49  ;;  %v6878_v22 = vor.u32 %v9544_v6, %v6875_v7  ;;  %v6705_v41 = vld [vmem:[%s13285_s7 + $0x1a8] sm:$0xf]  ;;  %v9503_v43 = vld [vmem:[%s13285_s7 + $0x1b4] sm:$0xf0]  ;;  %v6578_v48 = vor.u32 %v9471_v40, %v6577_v39 }
  0x57   : > { %1402 = vmatpush.bf16.msrb.mxu2 %v6782_v50  ;;  %v6833_v44 = vld [vmem:[%s13285_s7 + $0x2a8] sm:$0xf]  ;;  %v9535_v45 = vld [vmem:[%s13285_s7 + $0x2b4] sm:$0xf0]  ;;  %v6706_v49 = vor.u32 %v9503_v43, %v6705_v41 }
  0x58   : > { %1416 = vmatpush.bf16.msrb.mxu3 %v6910_v54  ;;  %v6961_v46 = vld [vmem:[%s13285_s7 + $0x3a8] sm:$0xf]  ;;  %v9567_v47 = vld [vmem:[%s13285_s7 + $0x3b4] sm:$0xf0]  ;;  %v6834_v50 = vor.u32 %v9535_v45, %v6833_v44 }
  0x59   : > { %1375 = vmatpush.bf16.msrb.mxu0 %v6510_v60  ;;  %v6561_v51 = vld [vmem:[%s13285_s7 + $0x88] sm:$0xf]  ;;  %v9467_v52 = vld [vmem:[%s13285_s7 + $0x94] sm:$0xf0]  ;;  %v6962_v54 = vor.u32 %v9567_v47, %v6961_v46 }
  0x5a   : > { %1389 = vmatpush.bf16.msrb.mxu1 %v6638_v63  ;;  %v6689_v53 = vld [vmem:[%s13285_s7 + $0x188] sm:$0xf]  ;;  %v9499_v55 = vld [vmem:[%s13285_s7 + $0x194] sm:$0xf0]  ;;  %v6562_v60 = vor.u32 %v9467_v52, %v6561_v51  ;;  %v6739_v52 = vld [vmem:[%s13285_s7 + $0x1f8] sm:$0xf0] }
  0x5b   : > { %1403 = vmatpush.bf16.msrb.mxu2 %v6766_v0  ;;  %v6817_v56 = vld [vmem:[%s13285_s7 + $0x288] sm:$0xf]  ;;  %v9531_v57 = vld [vmem:[%s13285_s7 + $0x294] sm:$0xf0]  ;;  %v6690_v61 = vor.u32 %v9499_v55, %v6689_v53  ;;  %v9541_v53 = vld [vmem:[%s13285_s7 + $0x2ec] sm:$0xf] }
  0x5c   : > { %1417 = vmatpush.bf16.msrb.mxu3 %v6894_v4  ;;  %v6945_v58 = vld [vmem:[%s13285_s7 + $0x388] sm:$0xf]  ;;  %v9563_v59 = vld [vmem:[%s13285_s7 + $0x394] sm:$0xf0]  ;;  %v6818_v62 = vor.u32 %v9531_v57, %v6817_v56  ;;  %v9573_v57 = vld [vmem:[%s13285_s7 + $0x3ec] sm:$0xf] }
  0x5d   : > { %1376 = vmatpush.bf16.msrb.mxu0 %v6494_v12  ;;  %v6545_v63 = vld [vmem:[%s13285_s7 + $0x68] sm:$0xf]  ;;  %v9463_v0 = vld [vmem:[%s13285_s7 + $0x74] sm:$0xf0]  ;;  %v6946_v2 = vor.u32 %v9563_v59, %v6945_v58  ;;  %v6995_v58 = vld [vmem:[%s13285_s7 + $0x3f8] sm:$0xf0] }
  0x5e   : > { %1390 = vmatpush.bf16.msrb.mxu1 %v6622_v17  ;;  %v6673_v1 = vld [vmem:[%s13285_s7 + $0x168] sm:$0xf]  ;;  %v9495_v3 = vld [vmem:[%s13285_s7 + $0x174] sm:$0xf0]  ;;  %v6546_v8 = vor.u32 %v9463_v0, %v6545_v63  ;;  %v9473_v63 = vld [vmem:[%s13285_s7 + $0xcc] sm:$0xf] }
  0x5f   : > { %1404 = vmatpush.bf16.msrb.mxu2 %v6750_v18  ;;  %v6801_v4 = vld [vmem:[%s13285_s7 + $0x268] sm:$0xf]  ;;  %v9527_v5 = vld [vmem:[%s13285_s7 + $0x274] sm:$0xf0]  ;;  %v6674_v10 = vor.u32 %v9495_v3, %v6673_v1  ;;  %v6595_v0 = vld [vmem:[%s13285_s7 + $0xd8] sm:$0xf0] }
  0x60   : > { %1418 = vmatpush.bf16.msrb.mxu3 %v6878_v22  ;;  %1377 = vmatmul.bf16.vlgmr.msrb.gmra.mxu0 %v10665_v16  ;;  %v6929_v6 = vld [vmem:[%s13285_s7 + $0x368] sm:$0xf]  ;;  %v9559_v7 = vld [vmem:[%s13285_s7 + $0x374] sm:$0xf0]  ;;  %v6802_v11 = vor.u32 %v9527_v5, %v6801_v4  ;;  %v9505_v1 = vld [vmem:[%s13285_s7 + $0x1cc] sm:$0xf] }
  0x61   : > { %1425 = vmatpush.bf16.msra.mxu0 %v6610_v23  ;;  %1391 = vmatmul.bf16.vlgmr.msrb.gmra.mxu1 %v10691_v30  ;;  %v6529_v12 = vld [vmem:[%s13285_s7 + $0x48] sm:$0xf]  ;;  %v9459_v13 = vld [vmem:[%s13285_s7 + $0x54] sm:$0xf0]  ;;  %v6930_v15 = vor.u32 %v9559_v7, %v6929_v6  ;;  %v6723_v3 = vld [vmem:[%s13285_s7 + $0x1d8] sm:$0xf0] }
  0x62   : > { %1439 = vmatpush.bf16.msra.mxu1 %v6738_v24  ;;  %1405 = vmatmul.bf16.vlgmr.msrb.gmra.mxu2 %v10654_v9  ;;  %v6657_v14 = vld [vmem:[%s13285_s7 + $0x148] sm:$0xf]  ;;  %v9491_v17 = vld [vmem:[%s13285_s7 + $0x154] sm:$0xf0]  ;;  %v6530_v23 = vor.u32 %v9459_v13, %v6529_v12  ;;  %v9537_v4 = vld [vmem:[%s13285_s7 + $0x2cc] sm:$0xf] }
  0x63   : > { %1453 = vmatpush.bf16.msra.mxu2 %v6866_v25  ;;  %1419 = vmatmul.bf16.vlgmr.msrb.gmra.mxu3 %v10675_v20  ;;  %v6785_v18 = vld [vmem:[%s13285_s7 + $0x248] sm:$0xf]  ;;  %v9523_v19 = vld [vmem:[%s13285_s7 + $0x254] sm:$0xf0]  ;;  %v6658_v24 = vor.u32 %v9491_v17, %v6657_v14  ;;  %v6851_v5 = vld [vmem:[%s13285_s7 + $0x2d8] sm:$0xf0] }
  0x64   : > { %1467 = vmatpush.bf16.msra.mxu3 %v6994_v29  ;;  %v6913_v21 = vld [vmem:[%s13285_s7 + $0x348] sm:$0xf]  ;;  %v9555_v22 = vld [vmem:[%s13285_s7 + $0x354] sm:$0xf0]  ;;  %v6786_v25 = vor.u32 %v9523_v19, %v6785_v18  ;;  %v9569_v6 = vld [vmem:[%s13285_s7 + $0x3cc] sm:$0xf] }
  0x65   : > { %1426 = vmatpush.bf16.msra.mxu0 %v6594_v36  ;;  %v6513_v26 = vld [vmem:[%s13285_s7 + $0x28] sm:$0xf]  ;;  %v9455_v27 = vld [vmem:[%s13285_s7 + $0x34] sm:$0xf0]  ;;  %v6914_v29 = vor.u32 %v9555_v22, %v6913_v21  ;;  %v6979_v7 = vld [vmem:[%s13285_s7 + $0x3d8] sm:$0xf0] }
  0x66   : > { %1440 = vmatpush.bf16.msra.mxu1 %v6722_v37  ;;  %v6641_v28 = vld [vmem:[%s13285_s7 + $0x128] sm:$0xf]  ;;  %v9487_v31 = vld [vmem:[%s13285_s7 + $0x134] sm:$0xf0]  ;;  %v6514_v36 = vor.u32 %v9455_v27, %v6513_v26  ;;  %v9469_v12 = vld [vmem:[%s13285_s7 + $0xac] sm:$0xf] }
  0x67   : > { %1454 = vmatpush.bf16.msra.mxu2 %v6850_v38  ;;  %v6769_v32 = vld [vmem:[%s13285_s7 + $0x228] sm:$0xf]  ;;  %v9519_v33 = vld [vmem:[%s13285_s7 + $0x234] sm:$0xf0]  ;;  %v6642_v39 = vor.u32 %v9487_v31, %v6641_v28  ;;  %v6579_v13 = vld [vmem:[%s13285_s7 + $0xb8] sm:$0xf0] }
  0x68   : > { %1468 = vmatpush.bf16.msra.mxu3 %v6978_v42  ;;  %v6897_v34 = vld [vmem:[%s13285_s7 + $0x328] sm:$0xf]  ;;  %v9551_v35 = vld [vmem:[%s13285_s7 + $0x334] sm:$0xf0]  ;;  %v6770_v40 = vor.u32 %v9519_v33, %v6769_v32  ;;  %v9501_v14 = vld [vmem:[%s13285_s7 + $0x1ac] sm:$0xf] }
  0x69   : > { %1427 = vmatpush.bf16.msra.mxu0 %v6578_v48  ;;  %v6497_v37 = vld [vmem:[%s13285_s7 + $0x8] sm:$0xf]  ;;  %v9451_v38 = vld [vmem:[%s13285_s7 + $0x14] sm:$0xf0]  ;;  %v6898_v44 = vor.u32 %v9551_v35, %v6897_v34  ;;  %v9477_v48 = vld [vmem:[%s13285_s7 + $0xec] sm:$0xf] }
  0x6a   : > { %1441 = vmatpush.bf16.msra.mxu1 %v6706_v49  ;;  %v6625_v41 = vld [vmem:[%s13285_s7 + $0x108] sm:$0xf]  ;;  %v9483_v42 = vld [vmem:[%s13285_s7 + $0x114] sm:$0xf0]  ;;  %v6611_v49 = vld [vmem:[%s13285_s7 + $0xf8] sm:$0xf0]  ;;  %v6498_v51 = vor.u32 %v9451_v38, %v6497_v37 }
  0x6b   : > { %1455 = vmatpush.bf16.msra.mxu2 %v6834_v50  ;;  %v6753_v43 = vld [vmem:[%s13285_s7 + $0x208] sm:$0xf]  ;;  %v9515_v45 = vld [vmem:[%s13285_s7 + $0x214] sm:$0xf0]  ;;  %v9509_v50 = vld [vmem:[%s13285_s7 + $0x1ec] sm:$0xf]  ;;  %v6626_v55 = vor.u32 %v9483_v42, %v6625_v41 }
  0x6c   : > { %1469 = vmatpush.bf16.msra.mxu3 %v6962_v54  ;;  %v6881_v46 = vld [vmem:[%s13285_s7 + $0x308] sm:$0xf]  ;;  %v9547_v47 = vld [vmem:[%s13285_s7 + $0x314] sm:$0xf0]  ;;  %v6867_v54 = vld [vmem:[%s13285_s7 + $0x2f8] sm:$0xf0]  ;;  %v6754_v56 = vor.u32 %v9515_v45, %v6753_v43 }
  0x6d   : > { %1428 = vmatpush.bf16.msra.mxu0 %v6562_v60  ;;  %v6882_v59 = vor.u32 %v9547_v47, %v6881_v46  ;;  %v6614_v60 = vor.u32 %v9477_v48, %v6611_v49  ;;  %v6707_v17 = vld [vmem:[%s13285_s7 + $0x1b8] sm:$0xf0]  ;;  %v9533_v18 = vld [vmem:[%s13285_s7 + $0x2ac] sm:$0xf] }
  0x6e   : > { %1442 = vmatpush.bf16.msra.mxu1 %v6690_v61  ;;  %v6742_v61 = vor.u32 %v9509_v50, %v6739_v52  ;;  %v6835_v19 = vld [vmem:[%s13285_s7 + $0x2b8] sm:$0xf0]  ;;  %v9565_v21 = vld [vmem:[%s13285_s7 + $0x3ac] sm:$0xf] }
  0x6f   : > { %1456 = vmatpush.bf16.msra.mxu2 %v6818_v62  ;;  %v6870_v62 = vor.u32 %v9541_v53, %v6867_v54  ;;  %v6963_v22 = vld [vmem:[%s13285_s7 + $0x3b8] sm:$0xf0]  ;;  %v9465_v26 = vld [vmem:[%s13285_s7 + $0x8c] sm:$0xf] }
  0x70   : > { %1470 = vmatpush.bf16.msra.mxu3 %v6946_v2  ;;  %v6998_v2 = vor.u32 %v9573_v57, %v6995_v58  ;;  %v6563_v27 = vld [vmem:[%s13285_s7 + $0x98] sm:$0xf0]  ;;  %v9497_v28 = vld [vmem:[%s13285_s7 + $0x18c] sm:$0xf] }
  0x71   : > { %1429 = vmatpush.bf16.msra.mxu0 %v6546_v8  ;;  %v6598_v8 = vor.u32 %v9473_v63, %v6595_v0  ;;  %v6691_v31 = vld [vmem:[%s13285_s7 + $0x198] sm:$0xf0]  ;;  %v9529_v32 = vld [vmem:[%s13285_s7 + $0x28c] sm:$0xf] }
  0x72   : > { %1443 = vmatpush.bf16.msra.mxu1 %v6674_v10  ;;  %v6726_v10 = vor.u32 %v9505_v1, %v6723_v3  ;;  %v6819_v33 = vld [vmem:[%s13285_s7 + $0x298] sm:$0xf0]  ;;  %v9561_v34 = vld [vmem:[%s13285_s7 + $0x38c] sm:$0xf]  ;;  %v6694_v37 = vor.u32 %v9497_v28, %v6691_v31 }
  0x73   : > { %1457 = vmatpush.bf16.msra.mxu2 %v6802_v11  ;;  %v6854_v11 = vor.u32 %v9537_v4, %v6851_v5  ;;  %v6947_v35 = vld [vmem:[%s13285_s7 + $0x398] sm:$0xf0]  ;;  %v6822_v38 = vor.u32 %v9529_v32, %v6819_v33  ;;  %v9493_v41 = vld [vmem:[%s13285_s7 + $0x16c] sm:$0xf] }
  0x74   : > { %1471 = vmatpush.bf16.msra.mxu3 %v6930_v15  ;;  %v6982_v15 = vor.u32 %v9569_v6, %v6979_v7  ;;  %v6950_v42 = vor.u32 %v9561_v34, %v6947_v35  ;;  %v6675_v43 = vld [vmem:[%s13285_s7 + $0x178] sm:$0xf0]  ;;  %v9557_v46 = vld [vmem:[%s13285_s7 + $0x36c] sm:$0xf] }
  0x75   : > { %1430 = vmatpush.bf16.msra.mxu0 %v6530_v23  ;;  %v6582_v23 = vor.u32 %v9469_v12, %v6579_v13  ;;  %v6803_v45 = vld [vmem:[%s13285_s7 + $0x278] sm:$0xf0]  ;;  %v6678_v49 = vor.u32 %v9493_v41, %v6675_v43  ;;  %v9489_v53 = vld [vmem:[%s13285_s7 + $0x14c] sm:$0xf] }
  0x76   : > { %1444 = vmatpush.bf16.msra.mxu1 %v6658_v24  ;;  %v6710_v24 = vor.u32 %v9501_v14, %v6707_v17  ;;  %v6931_v47 = vld [vmem:[%s13285_s7 + $0x378] sm:$0xf0]  ;;  %v9553_v58 = vld [vmem:[%s13285_s7 + $0x34c] sm:$0xf] }
  0x77   : > { %1458 = vmatpush.bf16.msra.mxu2 %v6786_v25  ;;  %v6838_v25 = vor.u32 %v9533_v18, %v6835_v19  ;;  %v6531_v52 = vld [vmem:[%s13285_s7 + $0x58] sm:$0xf0]  ;;  %v6934_v54 = vor.u32 %v9557_v46, %v6931_v47  ;;  %v9453_v63 = vld [vmem:[%s13285_s7 + $0x2c] sm:$0xf] }
  0x78   : > { %1472 = vmatpush.bf16.msra.mxu3 %v6914_v29  ;;  %v6966_v29 = vor.u32 %v9565_v21, %v6963_v22  ;;  %v6787_v57 = vld [vmem:[%s13285_s7 + $0x258] sm:$0xf0]  ;;  %v9485_v1 = vld [vmem:[%s13285_s7 + $0x12c] sm:$0xf] }
  0x79   : > { %1431 = vmatpush.bf16.msra.mxu0 %v6514_v36  ;;  %v6566_v36 = vor.u32 %v9465_v26, %v6563_v27  ;;  %v6515_v0 = vld [vmem:[%s13285_s7 + $0x38] sm:$0xf0]  ;;  %v9517_v4 = vld [vmem:[%s13285_s7 + $0x22c] sm:$0xf]  ;;  %v11179_v27 = vld [vmem:[%s13286_s8] sm:$0xf] }
  0x7a   : > { %1445 = vmatpush.bf16.msra.mxu1 %v6642_v39  ;;  %v9461_v39 = vld [vmem:[%s13285_s7 + $0x6c] sm:$0xf]  ;;  %v6643_v3 = vld [vmem:[%s13285_s7 + $0x138] sm:$0xf0]  ;;  %v665_v28 = vperm.slane %v11179_v27, 0 }
  0x7b   : > { %1459 = vmatpush.bf16.msra.mxu2 %v6770_v40  ;;  %v6547_v40 = vld [vmem:[%s13285_s7 + $0x78] sm:$0xf0]  ;;  %v9549_v6 = vld [vmem:[%s13285_s7 + $0x32c] sm:$0xf] }
  0x7c   : > { %1473 = vmatpush.bf16.msra.mxu3 %v6898_v44  ;;  %v9525_v44 = vld [vmem:[%s13285_s7 + $0x26c] sm:$0xf]  ;;  %v6550_v48 = vor.u32 %v9461_v39, %v6547_v40  ;;  %v6771_v5 = vld [vmem:[%s13285_s7 + $0x238] sm:$0xf0] }
  0x7d   : > { %1432 = vmatpush.bf16.msra.mxu0 %v6498_v51  ;;  %v6806_v50 = vor.u32 %v9525_v44, %v6803_v45  ;;  %v9457_v51 = vld [vmem:[%s13285_s7 + $0x4c] sm:$0xf]  ;;  %v6899_v7 = vld [vmem:[%s13285_s7 + $0x338] sm:$0xf0] }
  0x7e   : > { %1446 = vmatpush.bf16.msra.mxu1 %v6626_v55  ;;  %v6659_v55 = vld [vmem:[%s13285_s7 + $0x158] sm:$0xf0]  ;;  %v9449_v12 = vld [vmem:[%s13285_s7 + $0xc] sm:$0xf] }
  0x7f   : > { %1460 = vmatpush.bf16.msra.mxu2 %v6754_v56  ;;  %v9521_v56 = vld [vmem:[%s13285_s7 + $0x24c] sm:$0xf]  ;;  %v6499_v13 = vld [vmem:[%s13285_s7 + $0x18] sm:$0xf0] }
  0x80   : > { %1474 = vmatpush.bf16.msra.mxu3 %v6882_v59  ;;  %1433 = vmatmul.bf16.vlgmr.msra.gmra.mxu0 %v10665_v16  ;;  %v6915_v59 = vld [vmem:[%s13285_s7 + $0x358] sm:$0xf0]  ;;  %v9481_v14 = vld [vmem:[%s13285_s7 + $0x10c] sm:$0xf] }
  0x81   : > { %1481 = vmatpush.bf16.msrb.mxu0 %v6614_v60  ;;  %1447 = vmatmul.bf16.vlgmr.msra.gmra.mxu1 %v10691_v30  ;;  %v6534_v60 = vor.u32 %v9457_v51, %v6531_v52  ;;  %v6627_v17 = vld [vmem:[%s13285_s7 + $0x118] sm:$0xf0]  ;;  %v9513_v18 = vld [vmem:[%s13285_s7 + $0x20c] sm:$0xf] }
  0x82   : > { %1495 = vmatpush.bf16.msrb.mxu1 %v6742_v61  ;;  %1461 = vmatmul.bf16.vlgmr.msra.gmra.mxu2 %v10654_v9  ;;  %v6662_v61 = vor.u32 %v9489_v53, %v6659_v55  ;;  %v6755_v19 = vld [vmem:[%s13285_s7 + $0x218] sm:$0xf0]  ;;  %v9545_v21 = vld [vmem:[%s13285_s7 + $0x30c] sm:$0xf] }
  0x83   : > { %1509 = vmatpush.bf16.msrb.mxu2 %v6870_v62  ;;  %1475 = vmatmul.bf16.vlgmr.msra.gmra.mxu3 %v10675_v20  ;;  %v6790_v62 = vor.u32 %v9521_v56, %v6787_v57  ;;  %v6883_v22 = vld [vmem:[%s13285_s7 + $0x318] sm:$0xf0] }
  0x84   : > { %1523 = vmatpush.bf16.msrb.mxu3 %v6998_v2  ;;  %v6918_v2 = vor.u32 %v9553_v58, %v6915_v59  ;;  %v6886_v26 = vor.u32 %v9545_v21, %v6883_v22  ;;  %v667_v59 = vperm.slane %v11179_v27, 2 }
  0x85   : > { %1482 = vmatpush.bf16.msrb.mxu0 %v6598_v8  ;;  %v6518_v8 = vor.u32 %v9453_v63, %v6515_v0 }
  0x86   : > { %1496 = vmatpush.bf16.msrb.mxu1 %v6726_v10  ;;  %v6646_v10 = vor.u32 %v9485_v1, %v6643_v3 }
  0x87   : > { %1510 = vmatpush.bf16.msrb.mxu2 %v6854_v11  ;;  %v6774_v11 = vor.u32 %v9517_v4, %v6771_v5 }
  0x88   : > { %1524 = vmatpush.bf16.msrb.mxu3 %v6982_v15  ;;  %v6902_v15 = vor.u32 %v9549_v6, %v6899_v7 }
  0x89   : > { %1483 = vmatpush.bf16.msrb.mxu0 %v6582_v23  ;;  %v6502_v23 = vor.u32 %v9449_v12, %v6499_v13  ;;  %v668_v13 = vperm.slane %v11179_v27, 3 }
  0x8a   : > { %1497 = vmatpush.bf16.msrb.mxu1 %v6710_v24  ;;  %v6630_v24 = vor.u32 %v9481_v14, %v6627_v17 }
  0x8b   : > { %1511 = vmatpush.bf16.msrb.mxu2 %v6838_v25  ;;  %v6758_v25 = vor.u32 %v9513_v18, %v6755_v19 }
  0x8c   : > { %1525 = vmatpush.bf16.msrb.mxu3 %v6966_v29 }
  0x8d   : > { %1484 = vmatpush.bf16.msrb.mxu0 %v6566_v36 }
  0x8e   : > { %1498 = vmatpush.bf16.msrb.mxu1 %v6694_v37 }
  0x8f   : > { %1512 = vmatpush.bf16.msrb.mxu2 %v6822_v38 }
  0x90   : > { %1526 = vmatpush.bf16.msrb.mxu3 %v6950_v42  ;;  %v666_v42 = vperm.slane %v11179_v27, 1 }
  0x91   : > { %1485 = vmatpush.bf16.msrb.mxu0 %v6550_v48 }
  0x92   : > { %1499 = vmatpush.bf16.msrb.mxu1 %v6678_v49 }
  0x93   : > { %1513 = vmatpush.bf16.msrb.mxu2 %v6806_v50 }
  0x94   : > { %1527 = vmatpush.bf16.msrb.mxu3 %v6934_v54 }
  0x95   : > { %1486 = vmatpush.bf16.msrb.mxu0 %v6534_v60 }
  0x96   : > { %1500 = vmatpush.bf16.msrb.mxu1 %v6662_v61 }
  0x97   : > { %1514 = vmatpush.bf16.msrb.mxu2 %v6790_v62 }
  0x98   : > { %1528 = vmatpush.bf16.msrb.mxu3 %v6918_v2 }
  0x99   : > { %1487 = vmatpush.bf16.msrb.mxu0 %v6518_v8 }
  0x9a   : > { %1501 = vmatpush.bf16.msrb.mxu1 %v6646_v10 }
  0x9b   : > { %1515 = vmatpush.bf16.msrb.mxu2 %v6774_v11 }
  0x9c   : > { %1529 = vmatpush.bf16.msrb.mxu3 %v6902_v15 }
  0x9d   : > { %1488 = vmatpush.bf16.msrb.mxu0 %v6502_v23 }
  0x9e   : > { %1502 = vmatpush.bf16.msrb.mxu1 %v6630_v24 }
  0x9f   : > { %1516 = vmatpush.bf16.msrb.mxu2 %v6758_v25 }
  0xa0   : > { %1530 = vmatpush.bf16.msrb.mxu3 %v6886_v26  ;;  %1489 = vmatmul.bf16.vlgmr.msrb.gmra.mxu0 %v10665_v16 }
  0xa1   : > { %1503 = vmatmul.bf16.vlgmr.msrb.gmra.mxu1 %v10691_v30 }
  0xa2   : > { %1517 = vmatmul.bf16.vlgmr.msrb.gmra.mxu2 %v10654_v9 }
  0xa3   : > { %1531 = vmatmul.bf16.vlgmr.msrb.gmra.mxu3 %v10675_v20 }
  0xc1   : > { %v1336_v32 = vpop.f32.mrf.mxu1 }
  0xc4   : > { %v1322_v29 = vpop.f32.mrf.mxu0 }
  0xc5   : > { %v1323_v31 = vadd.f32 %v1322_v29, %v665_v28 }
  0xc6   : > { %v1364_v16 = vpop.f32.mrf.mxu3 }
  0xc7   : > { %v1337_v33 = vadd.f32 %v1336_v32, %v1323_v31 }
  0xc9   : > { %v1350_v34 = vpop.f32.mrf.mxu2  ;;  %v1338_v9 = vpop.f32.mrf.mxu1 }
  0xca   : > { %v1351_v35 = vadd.f32 %v1350_v34, %v1337_v33 }
  0xcc   : > { %v1365_v36 = vadd.f32 %v1364_v16, %v1351_v35  ;;  %v1324_v30 = vpop.f32.mrf.mxu0 }
  0xcd   : > { %v1325_v37 = vadd.f32 %v1324_v30, %v665_v28 }
  0xce   : > { %1537 = vst [vmem:[#allocation3] sm:$0xff] %v1365_v36  ;;  %v1366_v40 = vpop.f32.mrf.mxu3 }
  0xcf   : > { %v1339_v20 = vadd.f32 %v1338_v9, %v1325_v37 }
  0xd1   : > { %v1352_v38 = vpop.f32.mrf.mxu2 }
  0xd2   : > { %v1353_v39 = vadd.f32 %v1352_v38, %v1339_v20 }
  0xd4   : > { %v1367_v41 = vadd.f32 %v1366_v40, %v1353_v39 }
  0xd6   : > { %1541 = vst [vmem:[#allocation3 + $0x28] sm:$0xff] %v1367_v41 }
  0xdd   : > { %v1378_v43 = vpop.f32.mrf.mxu0 }
  0xde   : > { %v1379_v44 = vadd.f32 %v1378_v43, %v666_v42  ;;  %v1392_v45 = vpop.f32.mrf.mxu1 }
  0xe0   : > { %v1393_v46 = vadd.f32 %v1392_v45, %v1379_v44 }
  0xe5   : > { %v1406_v47 = vpop.f32.mrf.mxu2  ;;  %v1380_v51 = vpop.f32.mrf.mxu0 }
  0xe6   : > { %v1407_v48 = vadd.f32 %v1406_v47, %v1393_v46  ;;  %v1420_v49 = vpop.f32.mrf.mxu3  ;;  %v1381_v52 = vadd.f32 %v1380_v51, %v666_v42  ;;  %v1394_v53 = vpop.f32.mrf.mxu1 }
  0xe8   : > { %v1421_v50 = vadd.f32 %v1420_v49, %v1407_v48  ;;  %v1395_v54 = vadd.f32 %v1394_v53, %v1381_v52 }
  0xea   : > { %1538 = vst [vmem:[#allocation3 + $0x18] sm:$0xff] %v1421_v50 }
  0xed   : > { %v1408_v55 = vpop.f32.mrf.mxu2 }
  0xee   : > { %v1409_v56 = vadd.f32 %v1408_v55, %v1395_v54  ;;  %v1422_v57 = vpop.f32.mrf.mxu3 }
  0xf0   : > { %v1423_v58 = vadd.f32 %v1422_v57, %v1409_v56 }
  0xf2   : > { %1542 = vst [vmem:[#allocation3 + $0x8] sm:$0xff] %v1423_v58 }
  0xfd   : > { %v1434_v60 = vpop.f32.mrf.mxu0 }
  0xfe   : > { %v1435_v61 = vadd.f32 %v1434_v60, %v667_v59  ;;  %v1448_v62 = vpop.f32.mrf.mxu1 }
 0x100   : > { %v1449_v63 = vadd.f32 %v1448_v62, %v1435_v61 }
 0x105   : > { %v1462_v0 = vpop.f32.mrf.mxu2  ;;  %v1436_v4 = vpop.f32.mrf.mxu0 }
 0x106   : > { %v1463_v1 = vadd.f32 %v1462_v0, %v1449_v63  ;;  %v1476_v2 = vpop.f32.mrf.mxu3  ;;  %v1437_v5 = vadd.f32 %v1436_v4, %v667_v59  ;;  %v1450_v6 = vpop.f32.mrf.mxu1 }
 0x108   : > { %v1477_v3 = vadd.f32 %v1476_v2, %v1463_v1  ;;  %v1451_v7 = vadd.f32 %v1450_v6, %v1437_v5 }
 0x10a   : > { %1539 = vst [vmem:[#allocation3 + $0x10] sm:$0xff] %v1477_v3 }
 0x10d   : > { %v1464_v8 = vpop.f32.mrf.mxu2 }
 0x10e   : > { %v1465_v10 = vadd.f32 %v1464_v8, %v1451_v7  ;;  %v1478_v11 = vpop.f32.mrf.mxu3 }
 0x110   : > { %v1479_v12 = vadd.f32 %v1478_v11, %v1465_v10 }
 0x112   : > { %1543 = vst [vmem:[#allocation3 + $0x30] sm:$0xff] %v1479_v12 }
 0x11d   : > { %v1490_v14 = vpop.f32.mrf.mxu0 }
 0x11e   : > { %v1491_v15 = vadd.f32 %v1490_v14, %v668_v13  ;;  %v1504_v17 = vpop.f32.mrf.mxu1 }
 0x120   : > { %v1505_v18 = vadd.f32 %v1504_v17, %v1491_v15 }
 0x125   : > { %v1518_v19 = vpop.f32.mrf.mxu2  ;;  %v1492_v23 = vpop.f32.mrf.mxu0 }
 0x126   : > { %v1519_v21 = vadd.f32 %v1518_v19, %v1505_v18  ;;  %v1532_v22 = vpop.f32.mrf.mxu3  ;;  %v1493_v25 = vadd.f32 %v1492_v23, %v668_v13  ;;  %v1506_v26 = vpop.f32.mrf.mxu1 }
 0x128   : > { %v1533_v24 = vadd.f32 %v1532_v22, %v1519_v21  ;;  %v1507_v28 = vadd.f32 %v1506_v26, %v1493_v25 }
 0x12a   : > { %1540 = vst [vmem:[#allocation3 + $0x20] sm:$0xff] %v1533_v24 }
 0x12d   : > { %v1520_v29 = vpop.f32.mrf.mxu2 }
 0x12e   : > { %v1521_v31 = vadd.f32 %v1520_v29, %v1507_v28  ;;  %v1534_v32 = vpop.f32.mrf.mxu3 }
 0x130   : > { %v1535_v33 = vadd.f32 %v1534_v32, %v1521_v31 }
 0x132   : > { %1544 = vst [vmem:[#allocation3 + $0x38] sm:$0xff] %v1535_v33 }
 0x133 PF: > { %v7241_v27 = vld [vmem:[%s10343_s15 + $0x4e0] sm:$0xf]  ;;  %v9734_v34 = vld [vmem:[%s10343_s15 + $0x4ec] sm:$0xf0]  ;;  %vm1610_vm0 = vsmask.f32 256 }
 0x134   : > { %v7369_v35 = vld [vmem:[%s10343_s15 + $0x5e0] sm:$0xf]  ;;  %v7242_v16 = vor.u32 %v9734_v34, %v7241_v27  ;;  %v9766_v36 = vld [vmem:[%s10343_s15 + $0x5ec] sm:$0xf0]  ;;  %vm1609_vm1 = vcmask 1040384   ;;  %vm3795_vm4 = vcmask 1046528  }
 0x135   : > { %v7497_v30 = vld [vmem:[%s10343_s15 + $0x6e0] sm:$0xf]  ;;  %v9798_v37 = vld [vmem:[%s10343_s15 + $0x6ec] sm:$0xf0]  ;;  %v7370_v9 = vor.u32 %v9766_v36, %v7369_v35  ;;  %vm1877_vm2 = vsmask.f32 7424  ;;  %vm11391_vm3 = vmand %vm1609_vm1, %vm1610_vm0 }
 0x136   : > { %v7498_v20 = vor.u32 %v9798_v37, %v7497_v30  ;;  %v7625_v38 = vld [vmem:[%s10343_s15 + $0x7e0] sm:$0xf]  ;;  %v9830_v39 = vld [vmem:[%s10343_s15 + $0x7ec] sm:$0xf0]  ;;  %2570 = vmatpush.bf16.msra.mxu0 %v7242_v16  ;;  %vm5084_vm5 = vcmask 1041408   ;;  %vm5080_vm7 = vcmask 31744  }
 0x137   : > { %v7225_v40 = vld [vmem:[%s10343_s15 + $0x4c0] sm:$0xf]  ;;  %v7626_v41 = vor.u32 %v9830_v39, %v7625_v38  ;;  %v9730_v42 = vld [vmem:[%s10343_s15 + $0x4cc] sm:$0xf0]  ;;  %2584 = vmatpush.bf16.msra.mxu1 %v7370_v9  ;;  %p8927_p8 = scmp.ge.s32.totalorder %s10217_s17, 1 }
 0x138   : > { %v7353_v43 = vld [vmem:[%s10343_s15 + $0x5c0] sm:$0xf]  ;;  %v9762_v44 = vld [vmem:[%s10343_s15 + $0x5cc] sm:$0xf0]  ;;  %2598 = vmatpush.bf16.msra.mxu2 %v7498_v20  ;;  %v7226_v45 = vor.u32 %v9730_v42, %v7225_v40 }
 0x139   : > { %v7354_v46 = vor.u32 %v9762_v44, %v7353_v43  ;;  %v7481_v47 = vld [vmem:[%s10343_s15 + $0x6c0] sm:$0xf]  ;;  %v9794_v48 = vld [vmem:[%s10343_s15 + $0x6cc] sm:$0xf0]  ;;  %2612 = vmatpush.bf16.msra.mxu3 %v7626_v41 }
 0x13a   : > { %v7609_v49 = vld [vmem:[%s10343_s15 + $0x7c0] sm:$0xf]  ;;  %v7482_v50 = vor.u32 %v9794_v48, %v7481_v47  ;;  %v9826_v51 = vld [vmem:[%s10343_s15 + $0x7cc] sm:$0xf0]  ;;  %2571 = vmatpush.bf16.msra.mxu0 %v7226_v45 }
 0x13b   : > { %v7209_v52 = vld [vmem:[%s10343_s15 + $0x4a0] sm:$0xf]  ;;  %v9726_v53 = vld [vmem:[%s10343_s15 + $0x4ac] sm:$0xf0]  ;;  %v7610_v54 = vor.u32 %v9826_v51, %v7609_v49  ;;  %2585 = vmatpush.bf16.msra.mxu1 %v7354_v46 }
 0x13c   : > { %v7337_v55 = vld [vmem:[%s10343_s15 + $0x5a0] sm:$0xf]  ;;  %v9758_v56 = vld [vmem:[%s10343_s15 + $0x5ac] sm:$0xf0]  ;;  %v7210_v58 = vor.u32 %v9726_v53, %v7209_v52  ;;  %2599 = vmatpush.bf16.msra.mxu2 %v7482_v50 }
 0x13d   : > { %v7465_v57 = vld [vmem:[%s10343_s15 + $0x6a0] sm:$0xf]  ;;  %v9790_v59 = vld [vmem:[%s10343_s15 + $0x6ac] sm:$0xf0]  ;;  %v7338_v62 = vor.u32 %v9758_v56, %v7337_v55  ;;  %2613 = vmatpush.bf16.msra.mxu3 %v7610_v54 }
 0x13e   : > { %v7593_v60 = vld [vmem:[%s10343_s15 + $0x7a0] sm:$0xf]  ;;  %v9822_v61 = vld [vmem:[%s10343_s15 + $0x7ac] sm:$0xf0]  ;;  %v7466_v63 = vor.u32 %v9790_v59, %v7465_v57  ;;  %2572 = vmatpush.bf16.msra.mxu0 %v7210_v58  ;;  %v9732_v57 = vld [vmem:[%s10343_s15 + $0x4e4] sm:$0xf] }
 0x13f   : > { %v7193_v0 = vld [vmem:[%s10343_s15 + $0x480] sm:$0xf]  ;;  %v9722_v1 = vld [vmem:[%s10343_s15 + $0x48c] sm:$0xf0]  ;;  %v7594_v3 = vor.u32 %v9822_v61, %v7593_v60  ;;  %2586 = vmatpush.bf16.msra.mxu1 %v7338_v62  ;;  %v7243_v58 = vld [vmem:[%s10343_s15 + $0x4f0] sm:$0xf0] }
 0x140   : > { %v7321_v2 = vld [vmem:[%s10343_s15 + $0x580] sm:$0xf]  ;;  %v9754_v4 = vld [vmem:[%s10343_s15 + $0x58c] sm:$0xf0]  ;;  %v7194_v10 = vor.u32 %v9722_v1, %v7193_v0  ;;  %2600 = vmatpush.bf16.msra.mxu2 %v7466_v63  ;;  %v9764_v59 = vld [vmem:[%s10343_s15 + $0x5e4] sm:$0xf] }
 0x141   : > { %v7449_v5 = vld [vmem:[%s10343_s15 + $0x680] sm:$0xf]  ;;  %v9786_v6 = vld [vmem:[%s10343_s15 + $0x68c] sm:$0xf0]  ;;  %v7322_v11 = vor.u32 %v9754_v4, %v7321_v2  ;;  %2614 = vmatpush.bf16.msra.mxu3 %v7594_v3  ;;  %v7371_v61 = vld [vmem:[%s10343_s15 + $0x5f0] sm:$0xf0] }
 0x142   : > { %v7577_v7 = vld [vmem:[%s10343_s15 + $0x780] sm:$0xf]  ;;  %v9818_v8 = vld [vmem:[%s10343_s15 + $0x78c] sm:$0xf0]  ;;  %v7450_v12 = vor.u32 %v9786_v6, %v7449_v5  ;;  %2573 = vmatpush.bf16.msra.mxu0 %v7194_v10  ;;  %v9796_v62 = vld [vmem:[%s10343_s15 + $0x6e4] sm:$0xf]  ;;  %v7246_v5 = vor.u32 %v9732_v57, %v7243_v58 }
 0x143   : > { %v7177_v13 = vld [vmem:[%s10343_s15 + $0x460] sm:$0xf]  ;;  %v9718_v14 = vld [vmem:[%s10343_s15 + $0x46c] sm:$0xf0]  ;;  %v7578_v17 = vor.u32 %v9818_v8, %v7577_v7  ;;  %2587 = vmatpush.bf16.msra.mxu1 %v7322_v11  ;;  %v7499_v63 = vld [vmem:[%s10343_s15 + $0x6f0] sm:$0xf0]  ;;  %v7374_v7 = vor.u32 %v9764_v59, %v7371_v61 }
 0x144   : > { %v7305_v15 = vld [vmem:[%s10343_s15 + $0x560] sm:$0xf]  ;;  %v9750_v18 = vld [vmem:[%s10343_s15 + $0x56c] sm:$0xf0]  ;;  %v7178_v24 = vor.u32 %v9718_v14, %v7177_v13  ;;  %2601 = vmatpush.bf16.msra.mxu2 %v7450_v12  ;;  %v9828_v2 = vld [vmem:[%s10343_s15 + $0x7e4] sm:$0xf]  ;;  %v7502_v8 = vor.u32 %v9796_v62, %v7499_v63 }
 0x145   : > { %v7433_v19 = vld [vmem:[%s10343_s15 + $0x660] sm:$0xf]  ;;  %v9782_v21 = vld [vmem:[%s10343_s15 + $0x66c] sm:$0xf0]  ;;  %v7306_v25 = vor.u32 %v9750_v18, %v7305_v15  ;;  %2615 = vmatpush.bf16.msra.mxu3 %v7578_v17  ;;  %v7627_v3 = vld [vmem:[%s10343_s15 + $0x7f0] sm:$0xf0] }
 0x146   : > { %v7561_v22 = vld [vmem:[%s10343_s15 + $0x760] sm:$0xf]  ;;  %v9814_v23 = vld [vmem:[%s10343_s15 + $0x76c] sm:$0xf0]  ;;  %v7434_v26 = vor.u32 %v9782_v21, %v7433_v19  ;;  %2574 = vmatpush.bf16.msra.mxu0 %v7178_v24  ;;  %v9728_v6 = vld [vmem:[%s10343_s15 + $0x4c4] sm:$0xf]  ;;  %v7630_v13 = vor.u32 %v9828_v2, %v7627_v3 }
 0x147   : > { %v7161_v28 = vld [vmem:[%s10343_s15 + $0x440] sm:$0xf]  ;;  %v9714_v29 = vld [vmem:[%s10343_s15 + $0x44c] sm:$0xf0]  ;;  %v7562_v32 = vor.u32 %v9814_v23, %v7561_v22  ;;  %2588 = vmatpush.bf16.msra.mxu1 %v7306_v25  ;;  %v7227_v10 = vld [vmem:[%s10343_s15 + $0x4d0] sm:$0xf0] }
 0x148   : > { %v7289_v31 = vld [vmem:[%s10343_s15 + $0x540] sm:$0xf]  ;;  %v9746_v33 = vld [vmem:[%s10343_s15 + $0x54c] sm:$0xf0]  ;;  %v7162_v36 = vor.u32 %v9714_v29, %v7161_v28  ;;  %2602 = vmatpush.bf16.msra.mxu2 %v7434_v26  ;;  %v9760_v11 = vld [vmem:[%s10343_s15 + $0x5c4] sm:$0xf]  ;;  %v7230_v22 = vor.u32 %v9728_v6, %v7227_v10 }
 0x149   : > { %v7417_v27 = vld [vmem:[%s10343_s15 + $0x640] sm:$0xf]  ;;  %v9778_v34 = vld [vmem:[%s10343_s15 + $0x64c] sm:$0xf0]  ;;  %v7290_v30 = vor.u32 %v9746_v33, %v7289_v31  ;;  %2616 = vmatpush.bf16.msra.mxu3 %v7562_v32  ;;  %v7355_v12 = vld [vmem:[%s10343_s15 + $0x5d0] sm:$0xf0] }
 0x14a   : > { %v7545_v35 = vld [vmem:[%s10343_s15 + $0x740] sm:$0xf]  ;;  %v9810_v16 = vld [vmem:[%s10343_s15 + $0x74c] sm:$0xf0]  ;;  %v7418_v37 = vor.u32 %v9778_v34, %v7417_v27  ;;  %2575 = vmatpush.bf16.msra.mxu0 %v7162_v36  ;;  %v9792_v14 = vld [vmem:[%s10343_s15 + $0x6c4] sm:$0xf]  ;;  %v7358_v28 = vor.u32 %v9760_v11, %v7355_v12 }
 0x14b   : > { %v7145_v9 = vld [vmem:[%s10343_s15 + $0x420] sm:$0xf]  ;;  %v9710_v20 = vld [vmem:[%s10343_s15 + $0x42c] sm:$0xf0]  ;;  %v7546_v39 = vor.u32 %v9810_v16, %v7545_v35  ;;  %2589 = vmatpush.bf16.msra.mxu1 %v7290_v30  ;;  %v7483_v15 = vld [vmem:[%s10343_s15 + $0x6d0] sm:$0xf0] }
 0x14c   : > { %v7273_v38 = vld [vmem:[%s10343_s15 + $0x520] sm:$0xf]  ;;  %v9742_v40 = vld [vmem:[%s10343_s15 + $0x52c] sm:$0xf0]  ;;  %v7146_v45 = vor.u32 %v9710_v20, %v7145_v9  ;;  %2603 = vmatpush.bf16.msra.mxu2 %v7418_v37  ;;  %v9824_v17 = vld [vmem:[%s10343_s15 + $0x7c4] sm:$0xf]  ;;  %v7486_v29 = vor.u32 %v9792_v14, %v7483_v15 }
 0x14d   : > { %v7401_v41 = vld [vmem:[%s10343_s15 + $0x620] sm:$0xf]  ;;  %v9774_v42 = vld [vmem:[%s10343_s15 + $0x62c] sm:$0xf0]  ;;  %v7274_v48 = vor.u32 %v9742_v40, %v7273_v38  ;;  %2617 = vmatpush.bf16.msra.mxu3 %v7546_v39  ;;  %v7611_v18 = vld [vmem:[%s10343_s15 + $0x7d0] sm:$0xf0] }
 0x14e   : > { %v7529_v43 = vld [vmem:[%s10343_s15 + $0x720] sm:$0xf]  ;;  %v9806_v44 = vld [vmem:[%s10343_s15 + $0x72c] sm:$0xf0]  ;;  %v7402_v49 = vor.u32 %v9774_v42, %v7401_v41  ;;  %2576 = vmatpush.bf16.msra.mxu0 %v7146_v45  ;;  %v9724_v19 = vld [vmem:[%s10343_s15 + $0x4a4] sm:$0xf]  ;;  %v7614_v16 = vor.u32 %v9824_v17, %v7611_v18 }
 0x14f   : > { %v7129_v46 = vld [vmem:[%s10343_s15 + $0x400] sm:$0xf]  ;;  %v9706_v47 = vld [vmem:[%s10343_s15 + $0x40c] sm:$0xf0]  ;;  %v7530_v53 = vor.u32 %v9806_v44, %v7529_v43  ;;  %2590 = vmatpush.bf16.msra.mxu1 %v7274_v48  ;;  %v7211_v21 = vld [vmem:[%s10343_s15 + $0x4b0] sm:$0xf0] }
 0x150   : > { %v7257_v50 = vld [vmem:[%s10343_s15 + $0x500] sm:$0xf]  ;;  %v9738_v51 = vld [vmem:[%s10343_s15 + $0x50c] sm:$0xf0]  ;;  %v7130_v60 = vor.u32 %v9706_v47, %v7129_v46  ;;  %2604 = vmatpush.bf16.msra.mxu2 %v7402_v49  ;;  %v9756_v23 = vld [vmem:[%s10343_s15 + $0x5a4] sm:$0xf]  ;;  %v7214_v41 = vor.u32 %v9724_v19, %v7211_v21 }
 0x151   : > { %v7385_v52 = vld [vmem:[%s10343_s15 + $0x600] sm:$0xf]  ;;  %v9770_v54 = vld [vmem:[%s10343_s15 + $0x60c] sm:$0xf0]  ;;  %v7258_v0 = vor.u32 %v9738_v51, %v7257_v50  ;;  %2618 = vmatpush.bf16.msra.mxu3 %v7530_v53  ;;  %v7339_v24 = vld [vmem:[%s10343_s15 + $0x5b0] sm:$0xf0] }
 0x152   : > { %v7513_v55 = vld [vmem:[%s10343_s15 + $0x700] sm:$0xf]  ;;  %v9802_v56 = vld [vmem:[%s10343_s15 + $0x70c] sm:$0xf0]  ;;  %v7386_v1 = vor.u32 %v9770_v54, %v7385_v52  ;;  %2577 = vmatpush.bf16.msra.mxu0 %v7130_v60  ;;  %v9788_v25 = vld [vmem:[%s10343_s15 + $0x6a4] sm:$0xf]  ;;  %v7342_v46 = vor.u32 %v9756_v23, %v7339_v24 }
 0x153   : > { %v7514_v4 = vor.u32 %v9802_v56, %v7513_v55  ;;  %2591 = vmatpush.bf16.msra.mxu1 %v7258_v0  ;;  %v7467_v26 = vld [vmem:[%s10343_s15 + $0x6b0] sm:$0xf0]  ;;  %v9820_v31 = vld [vmem:[%s10343_s15 + $0x7a4] sm:$0xf]  ;;  %v1548_v45 = vld [vmem:[#allocation2 + $0x10] sm:$0xff] }
 0x154   : > { %2605 = vmatpush.bf16.msra.mxu2 %v7386_v1  ;;  %v7595_v32 = vld [vmem:[%s10343_s15 + $0x7b0] sm:$0xf0]  ;;  %v11274_v33 = vld [vmem:[%s10343_s15 + $0x484] sm:$0xf]  ;;  %v7470_v47 = vor.u32 %v9788_v25, %v7467_v26  ;;  %v1546_v14 = vld [vmem:[#allocation2] sm:$0xff] }
 0x155   : > { %2619 = vmatpush.bf16.msra.mxu3 %v7514_v4  ;;  %v11277_v27 = vld [vmem:[%s10343_s15 + $0x490] sm:$0xf0]  ;;  %v11280_v34 = vld [vmem:[%s10343_s15 + $0x584] sm:$0xf]  ;;  %v7598_v52 = vor.u32 %v9820_v31, %v7595_v32 }
 0x156   : > { %2626 = vmatpush.bf16.msrb.mxu0 %v7246_v5  ;;  %v11283_v35 = vld [vmem:[%s10343_s15 + $0x590] sm:$0xf0]  ;;  %v11286_v36 = vld [vmem:[%s10343_s15 + $0x684] sm:$0xf]  ;;  %v7198_v53 = vor.u32 %v11274_v33, %v11277_v27 }
 0x157   : > { %2640 = vmatpush.bf16.msrb.mxu1 %v7374_v7  ;;  %v11289_v30 = vld [vmem:[%s10343_s15 + $0x690] sm:$0xf0]  ;;  %v11292_v37 = vld [vmem:[%s10343_s15 + $0x784] sm:$0xf]  ;;  %v7326_v54 = vor.u32 %v11280_v34, %v11283_v35 }
 0x158   : > { %2654 = vmatpush.bf16.msrb.mxu2 %v7502_v8  ;;  %v11295_v9 = vld [vmem:[%s10343_s15 + $0x790] sm:$0xf0]  ;;  %v11298_v20 = vld [vmem:[%s10343_s15 + $0x464] sm:$0xf]  ;;  %v7454_v59 = vor.u32 %v11286_v36, %v11289_v30 }
 0x159   : > { %2668 = vmatpush.bf16.msrb.mxu3 %v7630_v13  ;;  %v11301_v38 = vld [vmem:[%s10343_s15 + $0x470] sm:$0xf0]  ;;  %v11304_v39 = vld [vmem:[%s10343_s15 + $0x564] sm:$0xf]  ;;  %v7582_v60 = vor.u32 %v11292_v37, %v11295_v9  ;;  %v1545_v13 = vld [vmem:[#allocation2 + $0x30] sm:$0xff] }
 0x15a   : > { %v11307_v40 = vld [vmem:[%s10343_s15 + $0x570] sm:$0xf0]  ;;  %2627 = vmatpush.bf16.msrb.mxu0 %v7230_v22  ;;  %v11310_v42 = vld [vmem:[%s10343_s15 + $0x664] sm:$0xf]  ;;  %v7182_v2 = vor.u32 %v11298_v20, %v11301_v38  ;;  %v1550_v22 = vld [vmem:[#allocation2 + $0x20] sm:$0xff]  ;;  %v1553_v23 = vpack.c.bf16 %v1546_v14, %v1545_v13 }
 0x15b   : > { %v11313_v43 = vld [vmem:[%s10343_s15 + $0x670] sm:$0xf0]  ;;  %v1547_v44 = vld [vmem:[#allocation2 + $0x18] sm:$0xff]  ;;  %2641 = vmatpush.bf16.msrb.mxu1 %v7358_v28  ;;  %v7310_v3 = vor.u32 %v11304_v39, %v11307_v40  ;;  %v9735_v40 = vld [vmem:[%s10343_s15 + $0x4f4] sm:$0xf0] }
 0x15c   : > { %2655 = vmatpush.bf16.msrb.mxu2 %v7486_v29  ;;  %v11316_v48 = vld [vmem:[%s10343_s15 + $0x764] sm:$0xf]  ;;  %v1551_v49 = vld [vmem:[#allocation2 + $0x28] sm:$0xff]  ;;  %v1554_v51 = vpack.c.bf16 %v1548_v45, %v1547_v44  ;;  %v7438_v10 = vor.u32 %v11310_v42, %v11313_v43  ;;  %v1561_v36 = vunpack.c.l.b16 %v1553_v23  ;;  %v1562_v37 = vunpack.c.h.b16 %v1553_v23 }
 0x15d   : > { %v1552_v50 = vld [vmem:[#allocation2 + $0x38] sm:$0xff]  ;;  %2669 = vmatpush.bf16.msrb.mxu3 %v7614_v16  ;;  %v11323_v55 = vld [vmem:[%s10343_s15 + $0x770] sm:$0xf0] }
 0x15e   : > { %v11326_v56 = vld [vmem:[%s10343_s15 + $0x444] sm:$0xf]  ;;  %v11329_v57 = vld [vmem:[%s10343_s15 + $0x450] sm:$0xf0]  ;;  %v1556_v58 = vpack.c.bf16 %v1552_v50, %v1551_v49  ;;  %v1563_v0 = vunpack.c.l.b16 %v1554_v51  ;;  %v1564_v1 = vunpack.c.h.b16 %v1554_v51  ;;  %2628 = vmatpush.bf16.msrb.mxu0 %v7214_v41  ;;  %v7566_v11 = vor.u32 %v11316_v48, %v11323_v55 }
 0x15f   : > { %v11336_v61 = vld [vmem:[%s10343_s15 + $0x544] sm:$0xf]  ;;  %v11339_v62 = vld [vmem:[%s10343_s15 + $0x550] sm:$0xf0]  ;;  %2642 = vmatpush.bf16.msrb.mxu1 %v7342_v46  ;;  %v7166_v12 = vor.u32 %v11326_v56, %v11329_v57 }
 0x160   : > { %v11342_v63 = vld [vmem:[%s10343_s15 + $0x644] sm:$0xf]  ;;  %v11349_v4 = vld [vmem:[%s10343_s15 + $0x650] sm:$0xf0]  ;;  %v1567_v7 = vunpack.c.l.b16 %v1556_v58  ;;  %v1568_v8 = vunpack.c.h.b16 %v1556_v58  ;;  %2656 = vmatpush.bf16.msrb.mxu2 %v7470_v47  ;;  %v7294_v24 = vor.u32 %v11336_v61, %v11339_v62 }
 0x161   : > { %v11352_v5 = vld [vmem:[%s10343_s15 + $0x744] sm:$0xf]  ;;  %v11355_v6 = vld [vmem:[%s10343_s15 + $0x750] sm:$0xf0]  ;;  %2670 = vmatpush.bf16.msrb.mxu3 %v7598_v52  ;;  %v7422_v25 = vor.u32 %v11342_v63, %v11349_v4 }
 0x162   : > { %v1549_v15 = vld [vmem:[#allocation2 + $0x8] sm:$0xff]  ;;  %v1571_v17 = vpack.c.b16 %v1567_v7, %v1563_v0  ;;  %v1572_v18 = vpack.c.b16 %v1568_v8, %v1564_v1  ;;  %v11364_v19 = vld [vmem:[%s10343_s15 + $0x424] sm:$0xf]  ;;  %v7550_v26 = vor.u32 %v11352_v5, %v11355_v6  ;;  %2629 = vmatpush.bf16.msrb.mxu0 %v7198_v53  ;;  %v9799_v6 = vld [vmem:[%s10343_s15 + $0x6f4] sm:$0xf0] }
 0x163   : > { %v11367_v21 = vld [vmem:[%s10343_s15 + $0x430] sm:$0xf0]  ;;  %v11376_v28 = vld [vmem:[%s10343_s15 + $0x524] sm:$0xf]  ;;  %v1555_v32 = vpack.c.bf16 %v1550_v22, %v1549_v15  ;;  %2643 = vmatpush.bf16.msrb.mxu1 %v7326_v54 }
 0x164   : > { %v11379_v29 = vld [vmem:[%s10343_s15 + $0x530] sm:$0xf0]  ;;  %v11382_v31 = vld [vmem:[%s10343_s15 + $0x624] sm:$0xf]  ;;  %v1588_v33 = vshrl.u32 %v1571_v17, 16  ;;  %v1591_v27 = vshll.u32 %v1571_v17, 16  ;;  %2657 = vmatpush.bf16.msrb.mxu2 %v7454_v59  ;;  %v7150_v39 = vor.u32 %v11364_v19, %v11367_v21 }
 0x165   : > { %v1595_v34 = vshrl.u32 %v1572_v18, 16  ;;  %v1598_v35 = vshll.u32 %v1572_v18, 16  ;;  %v11385_v16 = vld [vmem:[%s10343_s15 + $0x630] sm:$0xf0]  ;;  %v1565_v30 = vunpack.c.l.b16 %v1555_v32  ;;  %v1566_v9 = vunpack.c.h.b16 %v1555_v32  ;;  %2671 = vmatpush.bf16.msrb.mxu3 %v7582_v60  ;;  %v11400_v43 = vld [vmem:[%s10343_s15 + $0x724] sm:$0xf] }
 0x166   : > { %v1590_v20 = vrot.slane %v1588_v33, 7  ;;  %v7278_v41 = vor.u32 %v11376_v28, %v11379_v29  ;;  %v7406_v42 = vor.u32 %v11382_v31, %v11385_v16  ;;  %v11403_v44 = vld [vmem:[%s10343_s15 + $0x730] sm:$0xf0]  ;;  %2630 = vmatpush.bf16.msrb.mxu0 %v7182_v2  ;;  %v11414_v51 = vld [vmem:[%s10343_s15 + $0x404] sm:$0xf] }
 0x167   : > { %v1597_v38 = vrot.slane %v1595_v34, 7  ;;  %v1569_v45 = vpack.c.b16 %v1565_v30, %v1561_v36  ;;  %v1570_v46 = vpack.c.b16 %v1566_v9, %v1562_v37  ;;  %v11417_v52 = vld [vmem:[%s10343_s15 + $0x410] sm:$0xf0]  ;;  %2644 = vmatpush.bf16.msrb.mxu1 %v7310_v3  ;;  %v11422_v59 = vld [vmem:[%s10343_s15 + $0x504] sm:$0xf]  ;;  %v7534_v3 = vor.u32 %v11400_v43, %v11403_v44 }
 0x168   : > { %v1593_v47 = vor.u32 %v1591_v27, %v1590_v20  ;;  %v11407_v48 = vsel %vm11391_vm3, %v1590_v20, 0  ;;  %2658 = vmatpush.bf16.msrb.mxu2 %v7438_v10  ;;  %v11433_v0 = vld [vmem:[%s10343_s15 + $0x510] sm:$0xf0]  ;;  %v7134_v4 = vor.u32 %v11414_v51, %v11417_v52  ;;  %v9768_v7 = vld [vmem:[%s10343_s15 + $0x604] sm:$0xf] }
 0x169   : > { %v1600_v49 = vor.u32 %v1598_v35, %v1597_v38  ;;  %v11411_v50 = vsel %vm11391_vm3, %v1597_v38, 0  ;;  %v1910_v53 = vshll.u32 %v11407_v48, 16  ;;  %v1574_v55 = vshrl.u32 %v1569_v45, 16  ;;  %2672 = vmatpush.bf16.msrb.mxu3 %v7566_v11  ;;  %v7387_v14 = vld [vmem:[%s10343_s15 + $0x610] sm:$0xf0] }
 0x16a   : > { %v1922_v54 = vshll.u32 %v11411_v50, 16  ;;  %v1577_v58 = vshll.u32 %v1569_v45, 16  ;;  %v11426_v60 = vsel %vm11391_vm3, 0, %v1593_v47  ;;  %v1581_v62 = vshrl.u32 %v1570_v46, 16  ;;  %2631 = vmatpush.bf16.msrb.mxu0 %v7166_v12  ;;  %v9800_v57 = vld [vmem:[%s10343_s15 + $0x704] sm:$0xf] }
 0x16b   : > { %v11430_v61 = vsel %vm11391_vm3, 0, %v1600_v49  ;;  %v1584_v63 = vshll.u32 %v1570_v46, 16  ;;  %v1903_v1 = vshrl.u32 %v11426_v60, 16  ;;  %v1905_v2 = vshll.u32 %v11426_v60, 16  ;;  %2645 = vmatpush.bf16.msrb.mxu1 %v7294_v24  ;;  %v7515_v23 = vld [vmem:[%s10343_s15 + $0x710] sm:$0xf0] }
 0x16c   : > { %v1915_v8 = vshrl.u32 %v11430_v61, 16  ;;  %v1917_v10 = vshll.u32 %v11430_v61, 16  ;;  %v1576_v11 = vrot.slane %v1574_v55, 7  ;;  %v1583_v13 = vrot.slane %v1581_v62, 7  ;;  %2659 = vmatpush.bf16.msrb.mxu2 %v7422_v25  ;;  %v7505_v24 = vld [vmem:[%s10343_s15 + $0x6e8] sm:$0xf] }
 0x16d   : > { %v1907_v15 = vrot.slane %v1905_v2, 1  ;;  %v1912_v17 = vrot.slane %v1910_v53, 1  ;;  %v1924_v18 = vrot.slane %v1922_v54, 1  ;;  %v7262_v56 = vor.u32 %v11422_v59, %v11433_v0  ;;  %2673 = vmatpush.bf16.msrb.mxu3 %v7550_v26  ;;  %v7633_v26 = vld [vmem:[%s10343_s15 + $0x7e8] sm:$0xf] }
 0x16e   : > { %v1919_v12 = vrot.slane %v1917_v10, 1  ;;  %v1579_v19 = vor.u32 %v1577_v58, %v1576_v11  ;;  %v11456_v21 = vsel %vm11391_vm3, %v1576_v11, 0  ;;  %v1586_v22 = vor.u32 %v1584_v63, %v1583_v13  ;;  %2632 = vmatpush.bf16.msrb.mxu0 %v7150_v39  ;;  %v9831_v30 = vld [vmem:[%s10343_s15 + $0x7f4] sm:$0xf0]  ;;  %v7249_v39 = vld [vmem:[%s10343_s15 + $0x4e8] sm:$0xf] }
 0x16f   : > { %v1908_v25 = vor.u32 %v1907_v15, %v1903_v1  ;;  %v1886_v32 = vshll.u32 %v11456_v21, 16  ;;  %v11463_v33 = vsel %vm11391_vm3, %v1583_v13, 0  ;;  %v7390_v5 = vor.u32 %v9768_v7, %v7387_v14  ;;  %2646 = vmatpush.bf16.msrb.mxu1 %v7278_v41  ;;  %v7377_v31 = vld [vmem:[%s10343_s15 + $0x5e8] sm:$0xf]  ;;  %v9767_v16 = vld [vmem:[%s10343_s15 + $0x5f4] sm:$0xf0] }
 0x170   : > { %v1920_v27 = vor.u32 %v1919_v12, %v1915_v8  ;;  %v11469_v34 = vsel %vm11391_vm3, 0, %v1579_v19  ;;  %v11473_v35 = vsel %vm11391_vm3, 0, %v1586_v22  ;;  %v1898_v36 = vshll.u32 %v11463_v33, 16  ;;  %2660 = vmatpush.bf16.msrb.mxu2 %v7406_v42  ;;  %v7489_v46 = vld [vmem:[%s10343_s15 + $0x6c8] sm:$0xf] }
 0x171   : > { %v11478_v37 = vsel %vm1877_vm2, %v1908_v25, %v1912_v17  ;;  %v1879_v9 = vshrl.u32 %v11469_v34, 16  ;;  %v1881_v20 = vshll.u32 %v11469_v34, 16  ;;  %v7518_v38 = vor.u32 %v9800_v57, %v7515_v23  ;;  %2674 = vmatpush.bf16.msrb.mxu3 %v7534_v3  ;;  %v9795_v47 = vld [vmem:[%s10343_s15 + $0x6d4] sm:$0xf0]  ;;  %v7617_v52 = vld [vmem:[%s10343_s15 + $0x7c8] sm:$0xf] }
 0x172   : > { %2606 = vmatmul.bf16.vlgmr.msra.gmra.mxu2 %v11478_v37  ;;  %v11492_v43 = vsel %vm1877_vm2, %v1920_v27, %v1924_v18  ;;  %v1891_v28 = vshrl.u32 %v11473_v35, 16  ;;  %v1893_v29 = vshll.u32 %v11473_v35, 16  ;;  %v7506_v41 = vor.u32 %v9799_v6, %v7505_v24  ;;  %2633 = vmatpush.bf16.msrb.mxu0 %v7134_v4  ;;  %v9827_v53 = vld [vmem:[%s10343_s15 + $0x7d4] sm:$0xf0]  ;;  %v7233_v62 = vld [vmem:[%s10343_s15 + $0x4c8] sm:$0xf] }
 0x173   : > { %2620 = vmatmul.bf16.vlgmr.msra.gmra.mxu3 %v11492_v43  ;;  %v1883_v42 = vrot.slane %v1881_v20, 1  ;;  %v1888_v44 = vrot.slane %v1886_v32, 1  ;;  %v7634_v45 = vor.u32 %v9831_v30, %v7633_v26  ;;  %v1900_v51 = vrot.slane %v1898_v36, 1  ;;  %2647 = vmatpush.bf16.msrb.mxu1 %v7262_v56  ;;  %v9731_v63 = vld [vmem:[%s10343_s15 + $0x4d4] sm:$0xf0] }
 0x174   : > { %v1895_v49 = vrot.slane %v1893_v29, 1  ;;  %2661 = vmatpush.bf16.msrb.mxu2 %v7390_v5  ;;  %v7250_v55 = vor.u32 %v9735_v40, %v7249_v39  ;;  %v7378_v59 = vor.u32 %v9767_v16, %v7377_v31  ;;  %v7361_v0 = vld [vmem:[%s10343_s15 + $0x5c8] sm:$0xf]  ;;  %v7490_v1 = vor.u32 %v9795_v47, %v7489_v46  ;;  %v9763_v3 = vld [vmem:[%s10343_s15 + $0x5d4] sm:$0xf0] }
 0x175   : > { %v1884_v54 = vor.u32 %v1883_v42, %v1879_v9  ;;  %2675 = vmatpush.bf16.msrb.mxu3 %v7518_v38  ;;  %v7618_v4 = vor.u32 %v9827_v53, %v7617_v52  ;;  %v7473_v7 = vld [vmem:[%s10343_s15 + $0x6a8] sm:$0xf]  ;;  %v9791_v8 = vld [vmem:[%s10343_s15 + $0x6b4] sm:$0xf0]  ;;  %v7234_v14 = vor.u32 %v9731_v63, %v7233_v62  ;;  %v7362_v15 = vor.u32 %v9763_v3, %v7361_v0 }
 0x176   : > { %v1896_v58 = vor.u32 %v1895_v49, %v1891_v28  ;;  %v7601_v11 = vld [vmem:[%s10343_s15 + $0x7a8] sm:$0xf]  ;;  %v9823_v13 = vld [vmem:[%s10343_s15 + $0x7b4] sm:$0xf0]  ;;  %v7474_v57 = vor.u32 %v9791_v8, %v7473_v7 }
 0x177   : > { %v11507_v2 = vsel %vm1877_vm2, %v1884_v54, %v1888_v44  ;;  %v7217_v17 = vld [vmem:[%s10343_s15 + $0x4a8] sm:$0xf]  ;;  %v9727_v18 = vld [vmem:[%s10343_s15 + $0x4b4] sm:$0xf0]  ;;  %v7602_v19 = vor.u32 %v9823_v13, %v7601_v11 }
 0x178   : > { %2710 = vmatpush.bf16.msra.mxu2 %v7506_v41  ;;  %2578 = vmatmul.bf16.vlgmr.msra.gmra.mxu0 %v11507_v2  ;;  %v11514_v10 = vsel %vm1877_vm2, %v1896_v58, %v1900_v51  ;;  %v7345_v56 = vld [vmem:[%s10343_s15 + $0x5a8] sm:$0xf]  ;;  %v9759_v12 = vld [vmem:[%s10343_s15 + $0x5b4] sm:$0xf0]  ;;  %v7218_v32 = vor.u32 %v9727_v18, %v7217_v17 }
 0x179   : > { %2724 = vmatpush.bf16.msra.mxu3 %v7634_v45  ;;  %2592 = vmatmul.bf16.vlgmr.msra.gmra.mxu1 %v11514_v10  ;;  %v7457_v22 = vld [vmem:[%s10343_s15 + $0x688] sm:$0xf]  ;;  %v9787_v23 = vld [vmem:[%s10343_s15 + $0x694] sm:$0xf0]  ;;  %v7346_v5 = vor.u32 %v9759_v12, %v7345_v56 }
 0x17a   : > { %2682 = vmatpush.bf16.msra.mxu0 %v7250_v55  ;;  %2696 = vmatpush.bf16.msra.mxu1 %v7378_v59  ;;  %v7585_v24 = vld [vmem:[%s10343_s15 + $0x788] sm:$0xf]  ;;  %v9819_v25 = vld [vmem:[%s10343_s15 + $0x794] sm:$0xf0]  ;;  %v7458_v36 = vor.u32 %v9787_v23, %v7457_v22  ;;  %v9797_v22 = vld [vmem:[%s10343_s15 + $0x6ec] sm:$0xf] }
 0x17b   : > { %v7201_v6 = vld [vmem:[%s10343_s15 + $0x488] sm:$0xf]  ;;  %v9723_v26 = vld [vmem:[%s10343_s15 + $0x494] sm:$0xf0]  ;;  %v7586_v9 = vor.u32 %v9819_v25, %v7585_v24  ;;  %v7507_v23 = vld [vmem:[%s10343_s15 + $0x6f8] sm:$0xf0] }
 0x17c   : > { %2711 = vmatpush.bf16.msra.mxu2 %v7490_v1  ;;  %v7329_v27 = vld [vmem:[%s10343_s15 + $0x588] sm:$0xf]  ;;  %v9755_v30 = vld [vmem:[%s10343_s15 + $0x594] sm:$0xf0]  ;;  %v7202_v28 = vor.u32 %v9723_v26, %v7201_v6 }
 0x17d   : > { %2725 = vmatpush.bf16.msra.mxu3 %v7618_v4  ;;  %v7441_v20 = vld [vmem:[%s10343_s15 + $0x668] sm:$0xf]  ;;  %v9783_v38 = vld [vmem:[%s10343_s15 + $0x674] sm:$0xf0]  ;;  %v7330_v29 = vor.u32 %v9755_v30, %v7329_v27 }
 0x17e   : > { %2683 = vmatpush.bf16.msra.mxu0 %v7234_v14  ;;  %2697 = vmatpush.bf16.msra.mxu1 %v7362_v15  ;;  %v7569_v39 = vld [vmem:[%s10343_s15 + $0x768] sm:$0xf]  ;;  %v9815_v40 = vld [vmem:[%s10343_s15 + $0x774] sm:$0xf0]  ;;  %v7442_v42 = vor.u32 %v9783_v38, %v7441_v20  ;;  %v9733_v20 = vld [vmem:[%s10343_s15 + $0x4ec] sm:$0xf] }
 0x17f   : > { %v7185_v31 = vld [vmem:[%s10343_s15 + $0x468] sm:$0xf]  ;;  %v9719_v16 = vld [vmem:[%s10343_s15 + $0x474] sm:$0xf0]  ;;  %v7570_v45 = vor.u32 %v9815_v40, %v7569_v39  ;;  %v7251_v38 = vld [vmem:[%s10343_s15 + $0x4f8] sm:$0xf0]  ;;  %v7510_v40 = vor.u32 %v9797_v22, %v7507_v23 }
 0x180   : > { %2712 = vmatpush.bf16.msra.mxu2 %v7474_v57  ;;  %v7313_v41 = vld [vmem:[%s10343_s15 + $0x568] sm:$0xf]  ;;  %v9751_v44 = vld [vmem:[%s10343_s15 + $0x574] sm:$0xf0]  ;;  %v7186_v52 = vor.u32 %v9719_v16, %v7185_v31  ;;  %v9765_v39 = vld [vmem:[%s10343_s15 + $0x5ec] sm:$0xf] }
 0x181   : > { %2726 = vmatpush.bf16.msra.mxu3 %v7602_v19  ;;  %v7425_v46 = vld [vmem:[%s10343_s15 + $0x648] sm:$0xf]  ;;  %v9779_v47 = vld [vmem:[%s10343_s15 + $0x654] sm:$0xf0]  ;;  %v7314_v53 = vor.u32 %v9751_v44, %v7313_v41  ;;  %v9793_v31 = vld [vmem:[%s10343_s15 + $0x6cc] sm:$0xf] }
 0x182   : > { %2684 = vmatpush.bf16.msra.mxu0 %v7218_v32  ;;  %2698 = vmatpush.bf16.msra.mxu1 %v7346_v5  ;;  %v7553_v49 = vld [vmem:[%s10343_s15 + $0x748] sm:$0xf]  ;;  %v9811_v51 = vld [vmem:[%s10343_s15 + $0x754] sm:$0xf0]  ;;  %v7426_v59 = vor.u32 %v9779_v47, %v7425_v46  ;;  %v9829_v32 = vld [vmem:[%s10343_s15 + $0x7ec] sm:$0xf]  ;;  %v7254_v46 = vor.u32 %v9733_v20, %v7251_v38 }
 0x183   : > { %2662 = vmatmul.bf16.vlgmr.msrb.gmra.mxu2 %v11478_v37  ;;  %2676 = vmatmul.bf16.vlgmr.msrb.gmra.mxu3 %v11492_v43  ;;  %v7169_v54 = vld [vmem:[%s10343_s15 + $0x448] sm:$0xf]  ;;  %v9715_v55 = vld [vmem:[%s10343_s15 + $0x454] sm:$0xf0]  ;;  %v7554_v63 = vor.u32 %v9811_v51, %v7553_v49  ;;  %v7635_v5 = vld [vmem:[%s10343_s15 + $0x7f8] sm:$0xf0] }
 0x184   : > { %2713 = vmatpush.bf16.msra.mxu2 %v7458_v36  ;;  %v7297_v58 = vld [vmem:[%s10343_s15 + $0x548] sm:$0xf]  ;;  %v9747_v62 = vld [vmem:[%s10343_s15 + $0x554] sm:$0xf0]  ;;  %v7170_v7 = vor.u32 %v9715_v55, %v7169_v54  ;;  %v7491_v16 = vld [vmem:[%s10343_s15 + $0x6d8] sm:$0xf0] }
 0x185   : > { %2727 = vmatpush.bf16.msra.mxu3 %v7586_v9  ;;  %v7409_v0 = vld [vmem:[%s10343_s15 + $0x628] sm:$0xf]  ;;  %v9775_v1 = vld [vmem:[%s10343_s15 + $0x634] sm:$0xf0]  ;;  %v7298_v11 = vor.u32 %v9747_v62, %v7297_v58  ;;  %v7619_v44 = vld [vmem:[%s10343_s15 + $0x7d8] sm:$0xf0] }
 0x186   : > { %2685 = vmatpush.bf16.msra.mxu0 %v7202_v28  ;;  %2699 = vmatpush.bf16.msra.mxu1 %v7330_v29  ;;  %v7537_v3 = vld [vmem:[%s10343_s15 + $0x728] sm:$0xf]  ;;  %v9807_v4 = vld [vmem:[%s10343_s15 + $0x734] sm:$0xf0]  ;;  %v7410_v17 = vor.u32 %v9775_v1, %v7409_v0  ;;  %v7379_v28 = vld [vmem:[%s10343_s15 + $0x5f8] sm:$0xf0]  ;;  %v7638_v29 = vor.u32 %v9829_v32, %v7635_v5 }
 0x187   : > { %v7153_v8 = vld [vmem:[%s10343_s15 + $0x428] sm:$0xf]  ;;  %v9711_v13 = vld [vmem:[%s10343_s15 + $0x434] sm:$0xf0]  ;;  %v7538_v18 = vor.u32 %v9807_v4, %v7537_v3  ;;  %v7382_v47 = vor.u32 %v9765_v39, %v7379_v28  ;;  %v9729_v49 = vld [vmem:[%s10343_s15 + $0x4cc] sm:$0xf] }
 0x188   : > { %2714 = vmatpush.bf16.msra.mxu2 %v7442_v42  ;;  %2634 = vmatmul.bf16.vlgmr.msrb.gmra.mxu0 %v11507_v2  ;;  %v7281_v14 = vld [vmem:[%s10343_s15 + $0x528] sm:$0xf]  ;;  %v9743_v15 = vld [vmem:[%s10343_s15 + $0x534] sm:$0xf0]  ;;  %v7154_v24 = vor.u32 %v9711_v13, %v7153_v8  ;;  %v9825_v42 = vld [vmem:[%s10343_s15 + $0x7cc] sm:$0xf] }
 0x189   : > { %2728 = vmatpush.bf16.msra.mxu3 %v7570_v45  ;;  %2648 = vmatmul.bf16.vlgmr.msrb.gmra.mxu1 %v11514_v10  ;;  %v7393_v56 = vld [vmem:[%s10343_s15 + $0x608] sm:$0xf]  ;;  %v9771_v57 = vld [vmem:[%s10343_s15 + $0x614] sm:$0xf0]  ;;  %v7282_v6 = vor.u32 %v9743_v15, %v7281_v14  ;;  %v7235_v51 = vld [vmem:[%s10343_s15 + $0x4d8] sm:$0xf0]  ;;  %v7622_v55 = vor.u32 %v9825_v42, %v7619_v44 }
 0x18a   : > { %2686 = vmatpush.bf16.msra.mxu0 %v7186_v52  ;;  %2700 = vmatpush.bf16.msra.mxu1 %v7314_v53  ;;  %v7521_v12 = vld [vmem:[%s10343_s15 + $0x708] sm:$0xf]  ;;  %v9803_v19 = vld [vmem:[%s10343_s15 + $0x714] sm:$0xf0]  ;;  %v7394_v30 = vor.u32 %v9771_v57, %v7393_v56  ;;  %v9761_v52 = vld [vmem:[%s10343_s15 + $0x5cc] sm:$0xf]  ;;  %v7494_v53 = vor.u32 %v9793_v31, %v7491_v16  ;;  %v7238_v0 = vor.u32 %v9729_v49, %v7235_v51 }
 0x18b   : > { %v7137_v25 = vld [vmem:[%s10343_s15 + $0x408] sm:$0xf]  ;;  %v9707_v26 = vld [vmem:[%s10343_s15 + $0x414] sm:$0xf0]  ;;  %v7522_v9 = vor.u32 %v9803_v19, %v7521_v12  ;;  %v7363_v54 = vld [vmem:[%s10343_s15 + $0x5d8] sm:$0xf0] }
 0x18c   : > { %2715 = vmatpush.bf16.msra.mxu2 %v7426_v59  ;;  %v7265_v27 = vld [vmem:[%s10343_s15 + $0x508] sm:$0xf]  ;;  %v9739_v36 = vld [vmem:[%s10343_s15 + $0x514] sm:$0xf0]  ;;  %v7138_v41 = vor.u32 %v9707_v26, %v7137_v25  ;;  %v9789_v58 = vld [vmem:[%s10343_s15 + $0x6ac] sm:$0xf]  ;;  %v7366_v1 = vor.u32 %v9761_v52, %v7363_v54 }
 0x18d   : > { %2729 = vmatpush.bf16.msra.mxu3 %v7554_v63  ;;  %v7266_v45 = vor.u32 %v9739_v36, %v7265_v27  ;;  %v7475_v59 = vld [vmem:[%s10343_s15 + $0x6b8] sm:$0xf0]  ;;  %v9821_v62 = vld [vmem:[%s10343_s15 + $0x7ac] sm:$0xf] }
 0x18e   : > { %2687 = vmatpush.bf16.msra.mxu0 %v7170_v7  ;;  %2701 = vmatpush.bf16.msra.mxu1 %v7298_v11  ;;  %v7603_v63 = vld [vmem:[%s10343_s15 + $0x7b8] sm:$0xf0]  ;;  %v9725_v3 = vld [vmem:[%s10343_s15 + $0x4ac] sm:$0xf]  ;;  %v7478_v8 = vor.u32 %v9789_v58, %v7475_v59 }
 0x18f   : > { %v7219_v4 = vld [vmem:[%s10343_s15 + $0x4b8] sm:$0xf0]  ;;  %v9757_v7 = vld [vmem:[%s10343_s15 + $0x5ac] sm:$0xf]  ;;  %v7606_v13 = vor.u32 %v9821_v62, %v7603_v63 }
 0x190   : > { %2716 = vmatpush.bf16.msra.mxu2 %v7410_v17  ;;  %v7347_v11 = vld [vmem:[%s10343_s15 + $0x5b8] sm:$0xf0]  ;;  %v9785_v14 = vld [vmem:[%s10343_s15 + $0x68c] sm:$0xf]  ;;  %v7222_v56 = vor.u32 %v9725_v3, %v7219_v4 }
 0x191   : > { %2730 = vmatpush.bf16.msra.mxu3 %v7538_v18  ;;  %v7459_v15 = vld [vmem:[%s10343_s15 + $0x698] sm:$0xf0]  ;;  %v9817_v17 = vld [vmem:[%s10343_s15 + $0x78c] sm:$0xf]  ;;  %v7350_v57 = vor.u32 %v9757_v7, %v7347_v11 }
 0x192   : > { %2688 = vmatpush.bf16.msra.mxu0 %v7154_v24  ;;  %2702 = vmatpush.bf16.msra.mxu1 %v7282_v6  ;;  %v7587_v18 = vld [vmem:[%s10343_s15 + $0x798] sm:$0xf0]  ;;  %v9721_v12 = vld [vmem:[%s10343_s15 + $0x48c] sm:$0xf]  ;;  %v7462_v23 = vor.u32 %v9785_v14, %v7459_v15  ;;  %v8009_v14 = vld [vmem:[%s10343_s15 + $0x2e0] sm:$0xf] }
 0x193   : > { %v7203_v19 = vld [vmem:[%s10343_s15 + $0x498] sm:$0xf0]  ;;  %v9753_v22 = vld [vmem:[%s10343_s15 + $0x58c] sm:$0xf]  ;;  %v7590_v25 = vor.u32 %v9817_v17, %v7587_v18  ;;  %v9670_v15 = vld [vmem:[%s10343_s15 + $0x2ec] sm:$0xf0] }
 0x194   : > { %2717 = vmatpush.bf16.msra.mxu2 %v7394_v30  ;;  %v7331_v24 = vld [vmem:[%s10343_s15 + $0x598] sm:$0xf0]  ;;  %v9781_v32 = vld [vmem:[%s10343_s15 + $0x66c] sm:$0xf]  ;;  %v7206_v27 = vor.u32 %v9721_v12, %v7203_v19 }
 0x195   : > { %2731 = vmatpush.bf16.msra.mxu3 %v7522_v9  ;;  %v7443_v5 = vld [vmem:[%s10343_s15 + $0x678] sm:$0xf0]  ;;  %v9813_v6 = vld [vmem:[%s10343_s15 + $0x76c] sm:$0xf]  ;;  %v7334_v36 = vor.u32 %v9753_v22, %v7331_v24 }
 0x196   : > { %2689 = vmatpush.bf16.msra.mxu0 %v7138_v41  ;;  %2703 = vmatpush.bf16.msra.mxu1 %v7266_v45  ;;  %v7571_v26 = vld [vmem:[%s10343_s15 + $0x778] sm:$0xf0]  ;;  %v9717_v30 = vld [vmem:[%s10343_s15 + $0x46c] sm:$0xf]  ;;  %v7446_v38 = vor.u32 %v9781_v32, %v7443_v5  ;;  %v7753_v32 = vld [vmem:[%s10343_s15 + $0xe0] sm:$0xf] }
 0x197   : > { %2718 = vmatmul.bf16.vlgmr.msra.gmra.mxu2 %v11478_v37  ;;  %v7187_v9 = vld [vmem:[%s10343_s15 + $0x478] sm:$0xf0]  ;;  %v9749_v20 = vld [vmem:[%s10343_s15 + $0x56c] sm:$0xf]  ;;  %v9606_v5 = vld [vmem:[%s10343_s15 + $0xec] sm:$0xf0] }
 0x198   : > { %2766 = vmatpush.bf16.msrb.mxu2 %v7510_v40  ;;  %2732 = vmatmul.bf16.vlgmr.msra.gmra.mxu3 %v11492_v43  ;;  %v7315_v39 = vld [vmem:[%s10343_s15 + $0x578] sm:$0xf0]  ;;  %v7574_v40 = vor.u32 %v9813_v6, %v7571_v26  ;;  %v9777_v28 = vld [vmem:[%s10343_s15 + $0x64c] sm:$0xf]  ;;  %v7190_v41 = vor.u32 %v9717_v30, %v7187_v9  ;;  %v7881_v6 = vld [vmem:[%s10343_s15 + $0x1e0] sm:$0xf]  ;;  %v8010_v26 = vor.u32 %v9670_v15, %v8009_v14 }
 0x199   : > { %2780 = vmatpush.bf16.msrb.mxu3 %v7638_v29  ;;  %2690 = vmatmul.bf16.vlgmr.msra.gmra.mxu0 %v11507_v2  ;;  %v7427_v29 = vld [vmem:[%s10343_s15 + $0x658] sm:$0xf0]  ;;  %v9809_v31 = vld [vmem:[%s10343_s15 + $0x74c] sm:$0xf]  ;;  %v7318_v42 = vor.u32 %v9749_v20, %v7315_v39  ;;  %v7993_v30 = vld [vmem:[%s10343_s15 + $0x2c0] sm:$0xf] }
 0x19a   : > { %2738 = vmatpush.bf16.msrb.mxu0 %v7254_v46  ;;  %2752 = vmatpush.bf16.msrb.mxu1 %v7382_v47  ;;  %v7555_v16 = vld [vmem:[%s10343_s15 + $0x758] sm:$0xf0]  ;;  %v9713_v44 = vld [vmem:[%s10343_s15 + $0x44c] sm:$0xf]  ;;  %v7430_v47 = vor.u32 %v9777_v28, %v7427_v29  ;;  %v9666_v9 = vld [vmem:[%s10343_s15 + $0x2cc] sm:$0xf0]  ;;  %v7754_v28 = vor.u32 %v9606_v5, %v7753_v32 }
 0x19b   : > { %2704 = vmatmul.bf16.vlgmr.msra.gmra.mxu1 %v11514_v10  ;;  %v7171_v45 = vld [vmem:[%s10343_s15 + $0x458] sm:$0xf0]  ;;  %v9745_v46 = vld [vmem:[%s10343_s15 + $0x54c] sm:$0xf]  ;;  %v7558_v51 = vor.u32 %v9809_v31, %v7555_v16  ;;  %v9698_v39 = vld [vmem:[%s10343_s15 + $0x3cc] sm:$0xf0] }
 0x19c   : > { %2767 = vmatpush.bf16.msrb.mxu2 %v7494_v53  ;;  %v7299_v49 = vld [vmem:[%s10343_s15 + $0x558] sm:$0xf0]  ;;  %v9773_v52 = vld [vmem:[%s10343_s15 + $0x62c] sm:$0xf]  ;;  %v7174_v58 = vor.u32 %v9713_v44, %v7171_v45  ;;  %v7737_v31 = vld [vmem:[%s10343_s15 + $0xc0] sm:$0xf] }
 0x19d   : > { %2781 = vmatpush.bf16.msrb.mxu3 %v7622_v55  ;;  %v7411_v53 = vld [vmem:[%s10343_s15 + $0x638] sm:$0xf0]  ;;  %v9805_v54 = vld [vmem:[%s10343_s15 + $0x72c] sm:$0xf]  ;;  %v7302_v62 = vor.u32 %v9745_v46, %v7299_v49  ;;  %v9602_v16 = vld [vmem:[%s10343_s15 + $0xcc] sm:$0xf0] }
 0x19e   : > { %2739 = vmatpush.bf16.msrb.mxu0 %v7238_v0  ;;  %2753 = vmatpush.bf16.msrb.mxu1 %v7366_v1  ;;  %v7539_v55 = vld [vmem:[%s10343_s15 + $0x738] sm:$0xf0]  ;;  %v9709_v59 = vld [vmem:[%s10343_s15 + $0x42c] sm:$0xf]  ;;  %v7414_v3 = vor.u32 %v9773_v52, %v7411_v53  ;;  %v9634_v44 = vld [vmem:[%s10343_s15 + $0x1cc] sm:$0xf0]  ;;  %v7738_v52 = vor.u32 %v9602_v16, %v7737_v31 }
 0x19f   : > { %v7155_v63 = vld [vmem:[%s10343_s15 + $0x438] sm:$0xf0]  ;;  %v9741_v0 = vld [vmem:[%s10343_s15 + $0x52c] sm:$0xf]  ;;  %v7542_v4 = vor.u32 %v9805_v54, %v7539_v55  ;;  %v7977_v46 = vld [vmem:[%s10343_s15 + $0x2a0] sm:$0xf] }
 0x1a0   : > { %2768 = vmatpush.bf16.msrb.mxu2 %v7478_v8  ;;  %v7283_v1 = vld [vmem:[%s10343_s15 + $0x538] sm:$0xf0]  ;;  %v9769_v7 = vld [vmem:[%s10343_s15 + $0x60c] sm:$0xf]  ;;  %v7158_v17 = vor.u32 %v9709_v59, %v7155_v63  ;;  %v8105_v49 = vld [vmem:[%s10343_s15 + $0x3a0] sm:$0xf] }
 0x1a1   : > { %2782 = vmatpush.bf16.msrb.mxu3 %v7606_v13  ;;  %v7395_v8 = vld [vmem:[%s10343_s15 + $0x618] sm:$0xf0]  ;;  %v9801_v11 = vld [vmem:[%s10343_s15 + $0x70c] sm:$0xf]  ;;  %v7286_v12 = vor.u32 %v9741_v0, %v7283_v1  ;;  %v7721_v54 = vld [vmem:[%s10343_s15 + $0xa0] sm:$0xf] }
 0x1a2   : > { %2740 = vmatpush.bf16.msrb.mxu0 %v7222_v56  ;;  %2754 = vmatpush.bf16.msrb.mxu1 %v7350_v57  ;;  %v7523_v13 = vld [vmem:[%s10343_s15 + $0x718] sm:$0xf0]  ;;  %v9705_v18 = vld [vmem:[%s10343_s15 + $0x40c] sm:$0xf]  ;;  %v8137_v56 = vld [vmem:[%s10343_s15 + $0x3e0] sm:$0xf]  ;;  %v7398_v24 = vor.u32 %v9769_v7, %v7395_v8 }
 0x1a3   : > { %v9702_v57 = vld [vmem:[%s10343_s15 + $0x3ec] sm:$0xf0]  ;;  %v7139_v19 = vld [vmem:[%s10343_s15 + $0x418] sm:$0xf0]  ;;  %v9737_v22 = vld [vmem:[%s10343_s15 + $0x50c] sm:$0xf] }
 0x1a4   : > { %2769 = vmatpush.bf16.msrb.mxu2 %v7462_v23  ;;  %v7267_v23 = vld [vmem:[%s10343_s15 + $0x518] sm:$0xf0]  ;;  %v7142_v20 = vor.u32 %v9705_v18, %v7139_v19  ;;  %v9598_v55 = vld [vmem:[%s10343_s15 + $0xac] sm:$0xf0]  ;;  %v7961_v0 = vld [vmem:[%s10343_s15 + $0x280] sm:$0xf] }
 0x1a5   : > { %2783 = vmatpush.bf16.msrb.mxu3 %v7590_v25  ;;  %v7526_v25 = vor.u32 %v9801_v11, %v7523_v13  ;;  %v8089_v1 = vld [vmem:[%s10343_s15 + $0x380] sm:$0xf]  ;;  %v9594_v11 = vld [vmem:[%s10343_s15 + $0x8c] sm:$0xf0] }
 0x1a6   : > { %2741 = vmatpush.bf16.msrb.mxu0 %v7206_v27  ;;  %2755 = vmatpush.bf16.msrb.mxu1 %v7334_v36  ;;  %v9638_v27 = vld [vmem:[%s10343_s15 + $0x1ec] sm:$0xf0]  ;;  %v8138_v36 = vor.u32 %v9702_v57, %v8137_v56  ;;  %v7705_v8 = vld [vmem:[%s10343_s15 + $0x80] sm:$0xf] }
 0x1a7   : > { %v7882_v29 = vor.u32 %v9638_v27, %v7881_v6  ;;  %v9626_v14 = vld [vmem:[%s10343_s15 + $0x18c] sm:$0xf0]  ;;  %v7945_v15 = vld [vmem:[%s10343_s15 + $0x260] sm:$0xf]  ;;  %v7706_v56 = vor.u32 %v9594_v11, %v7705_v8 }
 0x1a8   : > { %2770 = vmatpush.bf16.msrb.mxu2 %v7446_v38  ;;  %v8121_v38 = vld [vmem:[%s10343_s15 + $0x3c0] sm:$0xf]  ;;  %v9686_v18 = vld [vmem:[%s10343_s15 + $0x36c] sm:$0xf0] }
 0x1a9   : > { %2784 = vmatpush.bf16.msrb.mxu3 %v7574_v40  ;;  %v7270_v40 = vor.u32 %v9737_v22, %v7267_v23  ;;  %v8122_v45 = vor.u32 %v9698_v39, %v8121_v38  ;;  %v9590_v19 = vld [vmem:[%s10343_s15 + $0x6c] sm:$0xf0]  ;;  %v7817_v22 = vld [vmem:[%s10343_s15 + $0x160] sm:$0xf] }
 0x1aa   : > { %2742 = vmatpush.bf16.msrb.mxu0 %v7190_v41  ;;  %2756 = vmatpush.bf16.msrb.mxu1 %v7318_v42  ;;  %v7865_v41 = vld [vmem:[%s10343_s15 + $0x1c0] sm:$0xf]  ;;  %v7994_v42 = vor.u32 %v9666_v9, %v7993_v30  ;;  %v9650_v5 = vld [vmem:[%s10343_s15 + $0x24c] sm:$0xf0] }
 0x1ab   : > { %v7866_v53 = vor.u32 %v9634_v44, %v7865_v41  ;;  %v7929_v32 = vld [vmem:[%s10343_s15 + $0x240] sm:$0xf]  ;;  %v9586_v9 = vld [vmem:[%s10343_s15 + $0x4c] sm:$0xf0] }
 0x1ac   : > { %2771 = vmatpush.bf16.msrb.mxu2 %v7430_v47  ;;  %v9662_v47 = vld [vmem:[%s10343_s15 + $0x2ac] sm:$0xf0]  ;;  %v8057_v6 = vld [vmem:[%s10343_s15 + $0x340] sm:$0xf]  ;;  %v7930_v38 = vor.u32 %v9650_v5, %v7929_v32  ;;  %v9632_v32 = vld [vmem:[%s10343_s15 + $0x1c4] sm:$0xf] }
 0x1ad   : > { %2785 = vmatpush.bf16.msrb.mxu3 %v7558_v51  ;;  %v9694_v51 = vld [vmem:[%s10343_s15 + $0x3ac] sm:$0xf0]  ;;  %v7978_v59 = vor.u32 %v9662_v47, %v7977_v46  ;;  %v7673_v30 = vld [vmem:[%s10343_s15 + $0x40] sm:$0xf]  ;;  %v7867_v5 = vld [vmem:[%s10343_s15 + $0x1d0] sm:$0xf0] }
 0x1ae   : > { %2743 = vmatpush.bf16.msrb.mxu0 %v7174_v58  ;;  %2757 = vmatpush.bf16.msrb.mxu1 %v7302_v62  ;;  %v7849_v58 = vld [vmem:[%s10343_s15 + $0x1a0] sm:$0xf]  ;;  %v9630_v62 = vld [vmem:[%s10343_s15 + $0x1ac] sm:$0xf0]  ;;  %v8106_v63 = vor.u32 %v9694_v51, %v8105_v49  ;;  %v7674_v41 = vor.u32 %v9586_v9, %v7673_v30  ;;  %v9692_v9 = vld [vmem:[%s10343_s15 + $0x3a4] sm:$0xf] }
 0x1af   : > { %v7850_v7 = vor.u32 %v9630_v62, %v7849_v58  ;;  %v9618_v39 = vld [vmem:[%s10343_s15 + $0x14c] sm:$0xf0]  ;;  %v8041_v31 = vld [vmem:[%s10343_s15 + $0x320] sm:$0xf]  ;;  %v9668_v58 = vld [vmem:[%s10343_s15 + $0x2e4] sm:$0xf] }
 0x1b0   : > { %2772 = vmatpush.bf16.msrb.mxu2 %v7414_v3  ;;  %v9690_v3 = vld [vmem:[%s10343_s15 + $0x38c] sm:$0xf0]  ;;  %v7785_v46 = vld [vmem:[%s10343_s15 + $0x120] sm:$0xf] }
 0x1b1   : > { %2786 = vmatpush.bf16.msrb.mxu3 %v7542_v4  ;;  %v7722_v4 = vor.u32 %v9598_v55, %v7721_v54  ;;  %v9678_v16 = vld [vmem:[%s10343_s15 + $0x32c] sm:$0xf0]  ;;  %v8025_v54 = vld [vmem:[%s10343_s15 + $0x300] sm:$0xf] }
 0x1b2   : > { %2744 = vmatpush.bf16.msrb.mxu0 %v7158_v17  ;;  %2758 = vmatpush.bf16.msrb.mxu1 %v7286_v12  ;;  %v8073_v17 = vld [vmem:[%s10343_s15 + $0x360] sm:$0xf]  ;;  %v9614_v47 = vld [vmem:[%s10343_s15 + $0x12c] sm:$0xf0]  ;;  %v8042_v51 = vor.u32 %v9678_v16, %v8041_v31 }
 0x1b3   : > { %v7689_v12 = vld [vmem:[%s10343_s15 + $0x60] sm:$0xf]  ;;  %v9674_v55 = vld [vmem:[%s10343_s15 + $0x30c] sm:$0xf0] }
 0x1b4   : > { %2773 = vmatpush.bf16.msrb.mxu2 %v7398_v24  ;;  %v9622_v24 = vld [vmem:[%s10343_s15 + $0x16c] sm:$0xf0]  ;;  %v7690_v27 = vor.u32 %v9590_v19, %v7689_v12  ;;  %v8026_v11 = vor.u32 %v9674_v55, %v8025_v54  ;;  %v9696_v19 = vld [vmem:[%s10343_s15 + $0x3c4] sm:$0xf] }
 0x1b5   : > { %2787 = vmatpush.bf16.msrb.mxu3 %v7526_v25  ;;  %v8074_v25 = vor.u32 %v9686_v18, %v8073_v17  ;;  %v9610_v8 = vld [vmem:[%s10343_s15 + $0x10c] sm:$0xf0]  ;;  %v9664_v18 = vld [vmem:[%s10343_s15 + $0x2c4] sm:$0xf] }
 0x1b6   : > { %2745 = vmatpush.bf16.msrb.mxu0 %v7142_v20  ;;  %2759 = vmatpush.bf16.msrb.mxu1 %v7270_v40  ;;  %v7801_v20 = vld [vmem:[%s10343_s15 + $0x140] sm:$0xf] }
 0x1b7   : > { %2774 = vmatmul.bf16.vlgmr.msrb.gmra.mxu2 %v11478_v37  ;;  %v9658_v37 = vld [vmem:[%s10343_s15 + $0x28c] sm:$0xf0]  ;;  %v7802_v44 = vor.u32 %v9618_v39, %v7801_v20  ;;  %v8107_v20 = vld [vmem:[%s10343_s15 + $0x3b0] sm:$0xf0]  ;;  %v9596_v39 = vld [vmem:[%s10343_s15 + $0xa4] sm:$0xf] }
 0x1b8   : > { %3462 = vmatpush.bf16.msra.mxu2 %v8010_v26  ;;  %2788 = vmatmul.bf16.vlgmr.msrb.gmra.mxu3 %v11492_v43  ;;  %v7962_v13 = vor.u32 %v9658_v37, %v7961_v0  ;;  %v9654_v43 = vld [vmem:[%s10343_s15 + $0x26c] sm:$0xf0]  ;;  %v8139_v0 = vld [vmem:[%s10343_s15 + $0x3f0] sm:$0xf0]  ;;  %v7786_v37 = vor.u32 %v9614_v47, %v7785_v46  ;;  %v8110_v16 = vor.u32 %v9692_v9, %v8107_v20  ;;  %v9576_v20 = vld [vmem:[%s10343_s15 + $0x4] sm:$0xf] }
 0x1b9   : > { %3476 = vmatpush.bf16.msra.mxu3 %v8138_v36  ;;  %2746 = vmatmul.bf16.vlgmr.msrb.gmra.mxu0 %v11507_v2  ;;  %v7833_v2 = vld [vmem:[%s10343_s15 + $0x180] sm:$0xf]  ;;  %v7946_v23 = vor.u32 %v9654_v43, %v7945_v15  ;;  %v9682_v26 = vld [vmem:[%s10343_s15 + $0x34c] sm:$0xf0]  ;;  %v7818_v36 = vor.u32 %v9622_v24, %v7817_v22  ;;  %v7883_v15 = vld [vmem:[%s10343_s15 + $0x1f0] sm:$0xf0] }
 0x1ba   : > { %3434 = vmatpush.bf16.msra.mxu0 %v7754_v28  ;;  %3448 = vmatpush.bf16.msra.mxu1 %v7882_v29  ;;  %v7834_v57 = vor.u32 %v9626_v14, %v7833_v2  ;;  %v8058_v40 = vor.u32 %v9682_v26, %v8057_v6  ;;  %v7913_v28 = vld [vmem:[%s10343_s15 + $0x220] sm:$0xf]  ;;  %v9646_v29 = vld [vmem:[%s10343_s15 + $0x22c] sm:$0xf0]  ;;  %v9604_v2 = vld [vmem:[%s10343_s15 + $0xe4] sm:$0xf] }
 0x1bb   : > { %2760 = vmatmul.bf16.vlgmr.msrb.gmra.mxu1 %v11514_v10  ;;  %v8090_v10 = vor.u32 %v9690_v3, %v8089_v1  ;;  %v7914_v49 = vor.u32 %v9646_v29, %v7913_v28  ;;  %v7641_v1 = vld [vmem:[%s10343_s15] sm:$0xf]  ;;  %v9578_v3 = vld [vmem:[%s10343_s15 + $0xc] sm:$0xf0]  ;;  %v8123_v22 = vld [vmem:[%s10343_s15 + $0x3d0] sm:$0xf0] }
 0x1bc   : > { %3463 = vmatpush.bf16.msra.mxu2 %v7994_v42  ;;  %v7657_v42 = vld [vmem:[%s10343_s15 + $0x20] sm:$0xf]  ;;  %v7642_v17 = vor.u32 %v9578_v3, %v7641_v1  ;;  %v9600_v24 = vld [vmem:[%s10343_s15 + $0xc4] sm:$0xf]  ;;  %v8126_v26 = vor.u32 %v9696_v19, %v8123_v22  ;;  %v7851_v29 = vld [vmem:[%s10343_s15 + $0x1b0] sm:$0xf0] }
 0x1bd   : > { %3477 = vmatpush.bf16.msra.mxu3 %v8122_v45  ;;  %v9582_v45 = vld [vmem:[%s10343_s15 + $0x2c] sm:$0xf0]  ;;  %v9628_v28 = vld [vmem:[%s10343_s15 + $0x1a4] sm:$0xf]  ;;  %v8091_v46 = vld [vmem:[%s10343_s15 + $0x390] sm:$0xf0] }
 0x1be   : > { %3435 = vmatpush.bf16.msra.mxu0 %v7738_v52  ;;  %3449 = vmatpush.bf16.msra.mxu1 %v7866_v53  ;;  %v7897_v52 = vld [vmem:[%s10343_s15 + $0x200] sm:$0xf]  ;;  %v9642_v53 = vld [vmem:[%s10343_s15 + $0x20c] sm:$0xf0]  ;;  %v7658_v62 = vor.u32 %v9582_v45, %v7657_v42  ;;  %v7963_v42 = vld [vmem:[%s10343_s15 + $0x290] sm:$0xf0]  ;;  %v7854_v47 = vor.u32 %v9628_v28, %v7851_v29 }
 0x1bf   : > { %v9688_v45 = vld [vmem:[%s10343_s15 + $0x384] sm:$0xf]  ;;  %v7691_v3 = vld [vmem:[%s10343_s15 + $0x70] sm:$0xf0] }
 0x1c0   : > { %3464 = vmatpush.bf16.msra.mxu2 %v7978_v59  ;;  %v8011_v59 = vld [vmem:[%s10343_s15 + $0x2f0] sm:$0xf0]  ;;  %v8094_v55 = vor.u32 %v9688_v45, %v8091_v46  ;;  %v9588_v1 = vld [vmem:[%s10343_s15 + $0x64] sm:$0xf]  ;;  %v8145_v45 = vld [vmem:[%s10343_s15 + $0x3e8] sm:$0xf] }
 0x1c1   : > { %3478 = vmatpush.bf16.msra.mxu3 %v8106_v63  ;;  %v9700_v63 = vld [vmem:[%s10343_s15 + $0x3e4] sm:$0xf]  ;;  %v8014_v14 = vor.u32 %v9668_v58, %v8011_v59  ;;  %v7947_v59 = vld [vmem:[%s10343_s15 + $0x270] sm:$0xf0]  ;;  %v9703_v46 = vld [vmem:[%s10343_s15 + $0x3f4] sm:$0xf0] }
 0x1c2   : > { %3436 = vmatpush.bf16.msra.mxu0 %v7722_v4  ;;  %3450 = vmatpush.bf16.msra.mxu1 %v7850_v7  ;;  %v7769_v4 = vld [vmem:[%s10343_s15 + $0x100] sm:$0xf]  ;;  %v7898_v7 = vor.u32 %v9642_v53, %v7897_v52  ;;  %v8142_v43 = vor.u32 %v9700_v63, %v8139_v0  ;;  %v9624_v52 = vld [vmem:[%s10343_s15 + $0x184] sm:$0xf]  ;;  %v7835_v53 = vld [vmem:[%s10343_s15 + $0x190] sm:$0xf0] }
 0x1c3   : > { %v9652_v58 = vld [vmem:[%s10343_s15 + $0x264] sm:$0xf]  ;;  %v8075_v0 = vld [vmem:[%s10343_s15 + $0x370] sm:$0xf0] }
 0x1c4   : > { %3465 = vmatpush.bf16.msra.mxu2 %v7962_v13  ;;  %v7755_v13 = vld [vmem:[%s10343_s15 + $0xf0] sm:$0xf0]  ;;  %v9684_v63 = vld [vmem:[%s10343_s15 + $0x364] sm:$0xf] }
 0x1c5   : > { %3479 = vmatpush.bf16.msra.mxu3 %v8090_v10  ;;  %v9636_v10 = vld [vmem:[%s10343_s15 + $0x1e4] sm:$0xf]  ;;  %v7758_v12 = vor.u32 %v9604_v2, %v7755_v13  ;;  %v7931_v13 = vld [vmem:[%s10343_s15 + $0x250] sm:$0xf0] }
 0x1c6   : > { %3437 = vmatpush.bf16.msra.mxu0 %v7706_v56  ;;  %3451 = vmatpush.bf16.msra.mxu1 %v7834_v57  ;;  %v7995_v56 = vld [vmem:[%s10343_s15 + $0x2d0] sm:$0xf0]  ;;  %v7770_v57 = vor.u32 %v9610_v8, %v7769_v4  ;;  %v9620_v4 = vld [vmem:[%s10343_s15 + $0x164] sm:$0xf]  ;;  %v7950_v8 = vor.u32 %v9652_v58, %v7947_v59 }
 0x1c7   : > { %v7998_v6 = vor.u32 %v9664_v18, %v7995_v56  ;;  %v9648_v2 = vld [vmem:[%s10343_s15 + $0x244] sm:$0xf]  ;;  %v7675_v18 = vld [vmem:[%s10343_s15 + $0x50] sm:$0xf0] }
 0x1c8   : > { %3466 = vmatpush.bf16.msra.mxu2 %v7946_v23  ;;  %v7886_v23 = vor.u32 %v9636_v10, %v7883_v15  ;;  %v9680_v10 = vld [vmem:[%s10343_s15 + $0x344] sm:$0xf]  ;;  %v8059_v15 = vld [vmem:[%s10343_s15 + $0x350] sm:$0xf0] }
 0x1c9   : > { %3480 = vmatpush.bf16.msra.mxu3 %v8074_v25  ;;  %v7739_v25 = vld [vmem:[%s10343_s15 + $0xd0] sm:$0xf0]  ;;  %v9616_v56 = vld [vmem:[%s10343_s15 + $0x144] sm:$0xf]  ;;  %v8062_v19 = vor.u32 %v9680_v10, %v8059_v15 }
 0x1ca   : > { %3438 = vmatpush.bf16.msra.mxu0 %v7690_v27  ;;  %3452 = vmatpush.bf16.msra.mxu1 %v7818_v36  ;;  %v9660_v27 = vld [vmem:[%s10343_s15 + $0x2a4] sm:$0xf]  ;;  %v7979_v36 = vld [vmem:[%s10343_s15 + $0x2b0] sm:$0xf0]  ;;  %v7742_v30 = vor.u32 %v9600_v24, %v7739_v25 }
 0x1cb   : > { %v7982_v31 = vor.u32 %v9660_v27, %v7979_v36  ;;  %v9644_v22 = vld [vmem:[%s10343_s15 + $0x224] sm:$0xf]  ;;  %v7787_v36 = vld [vmem:[%s10343_s15 + $0x130] sm:$0xf0] }
 0x1cc   : > { %3467 = vmatpush.bf16.msra.mxu2 %v7930_v38  ;;  %v7870_v38 = vor.u32 %v9632_v32, %v7867_v5  ;;  %v9676_v25 = vld [vmem:[%s10343_s15 + $0x324] sm:$0xf]  ;;  %v8043_v32 = vld [vmem:[%s10343_s15 + $0x330] sm:$0xf0] }
 0x1cd   : > { %3481 = vmatpush.bf16.msra.mxu3 %v8058_v40  ;;  %v7723_v40 = vld [vmem:[%s10343_s15 + $0xb0] sm:$0xf0]  ;;  %v9612_v27 = vld [vmem:[%s10343_s15 + $0x124] sm:$0xf]  ;;  %v8046_v9 = vor.u32 %v9676_v25, %v8043_v32 }
 0x1ce   : > { %3439 = vmatpush.bf16.msra.mxu0 %v7674_v41  ;;  %3453 = vmatpush.bf16.msra.mxu1 %v7802_v44  ;;  %v9656_v41 = vld [vmem:[%s10343_s15 + $0x284] sm:$0xf]  ;;  %v7726_v44 = vor.u32 %v9596_v39, %v7723_v40  ;;  %v7899_v40 = vld [vmem:[%s10343_s15 + $0x210] sm:$0xf0] }
 0x1cf   : > { %v7966_v54 = vor.u32 %v9656_v41, %v7963_v42  ;;  %v9640_v39 = vld [vmem:[%s10343_s15 + $0x204] sm:$0xf]  ;;  %v9671_v41 = vld [vmem:[%s10343_s15 + $0x2f4] sm:$0xf0]  ;;  %v7790_v42 = vor.u32 %v9612_v27, %v7787_v36 }
 0x1d0   : > { %3468 = vmatpush.bf16.msra.mxu2 %v7914_v49  ;;  %v9592_v49 = vld [vmem:[%s10343_s15 + $0x84] sm:$0xf]  ;;  %v9595_v36 = vld [vmem:[%s10343_s15 + $0x94] sm:$0xf0] }
 0x1d1   : > { %3482 = vmatpush.bf16.msra.mxu3 %v8042_v51  ;;  %v7707_v51 = vld [vmem:[%s10343_s15 + $0x90] sm:$0xf0]  ;;  %v9672_v28 = vld [vmem:[%s10343_s15 + $0x304] sm:$0xf] }
 0x1d2   : > { %3440 = vmatpush.bf16.msra.mxu0 %v7658_v62  ;;  %3454 = vmatpush.bf16.msra.mxu1 %v7786_v37  ;;  %v7710_v62 = vor.u32 %v9592_v49, %v7707_v51  ;;  %v7838_v37 = vor.u32 %v9624_v52, %v7835_v53  ;;  %v7902_v49 = vor.u32 %v9640_v39, %v7899_v40  ;;  %v7761_v51 = vld [vmem:[%s10343_s15 + $0xe8] sm:$0xf]  ;;  %v9607_v52 = vld [vmem:[%s10343_s15 + $0xf4] sm:$0xf0] }
 0x1d4   : > { %3469 = vmatpush.bf16.msra.mxu2 %v7898_v7  ;;  %v7819_v7 = vld [vmem:[%s10343_s15 + $0x170] sm:$0xf0] }
 0x1d5   : > { %3483 = vmatpush.bf16.msra.mxu3 %v8026_v11  ;;  %v8078_v11 = vor.u32 %v9684_v63, %v8075_v0  ;;  %v7762_v0 = vor.u32 %v9607_v52, %v7761_v51  ;;  %v7825_v52 = vld [vmem:[%s10343_s15 + $0x168] sm:$0xf] }
 0x1d6   : > { %3441 = vmatpush.bf16.msra.mxu0 %v7642_v17  ;;  %3455 = vmatpush.bf16.msra.mxu1 %v7770_v57  ;;  %v9584_v17 = vld [vmem:[%s10343_s15 + $0x44] sm:$0xf]  ;;  %v7803_v57 = vld [vmem:[%s10343_s15 + $0x150] sm:$0xf0] }
 0x1d7   : > { %3470 = vmatmul.bf16.vlgmr.msra.gmra.mxu2 %v11426_v60  ;;  %v7678_v24 = vor.u32 %v9584_v17, %v7675_v18  ;;  %v7806_v5 = vor.u32 %v9616_v56, %v7803_v57  ;;  %v7985_v17 = vld [vmem:[%s10343_s15 + $0x2a8] sm:$0xf]  ;;  %v9663_v18 = vld [vmem:[%s10343_s15 + $0x2b4] sm:$0xf0] }
 0x1d8   : > { %3518 = vmatpush.bf16.msrb.mxu2 %v8014_v14  ;;  %3484 = vmatmul.bf16.vlgmr.msra.gmra.mxu3 %v11430_v61  ;;  %v7694_v14 = vor.u32 %v9588_v1, %v7691_v3  ;;  %v8001_v1 = vld [vmem:[%s10343_s15 + $0x2c8] sm:$0xf]  ;;  %v9667_v3 = vld [vmem:[%s10343_s15 + $0x2d4] sm:$0xf0] }
 0x1d9   : > { %3532 = vmatpush.bf16.msrb.mxu3 %v8142_v43  ;;  %3442 = vmatmul.bf16.vlgmr.msra.gmra.mxu0 %v11469_v34  ;;  %v7822_v43 = vor.u32 %v9620_v4, %v7819_v7  ;;  %v9603_v7 = vld [vmem:[%s10343_s15 + $0xd4] sm:$0xf0] }
 0x1da   : > { %3490 = vmatpush.bf16.msrb.mxu0 %v7758_v12  ;;  %3504 = vmatpush.bf16.msrb.mxu1 %v7886_v23  ;;  %v7934_v12 = vor.u32 %v9648_v2, %v7931_v13  ;;  %v7915_v23 = vld [vmem:[%s10343_s15 + $0x230] sm:$0xf0]  ;;  %v7873_v2 = vld [vmem:[%s10343_s15 + $0x1c8] sm:$0xf]  ;;  %v9635_v13 = vld [vmem:[%s10343_s15 + $0x1d4] sm:$0xf0] }
 0x1db   : > { %3456 = vmatmul.bf16.vlgmr.msra.gmra.mxu1 %v11473_v35  ;;  %v7874_v56 = vor.u32 %v9635_v13, %v7873_v2  ;;  %v9599_v57 = vld [vmem:[%s10343_s15 + $0xb4] sm:$0xf0] }
 0x1dc   : > { %3519 = vmatpush.bf16.msrb.mxu2 %v7998_v6  ;;  %v9580_v6 = vld [vmem:[%s10343_s15 + $0x24] sm:$0xf]  ;;  %v9619_v2 = vld [vmem:[%s10343_s15 + $0x154] sm:$0xf0] }
 0x1dd   : > { %3533 = vmatpush.bf16.msrb.mxu3 %v8126_v26  ;;  %v7659_v26 = vld [vmem:[%s10343_s15 + $0x30] sm:$0xf0] }
 0x1de   : > { %3491 = vmatpush.bf16.msrb.mxu0 %v7742_v30  ;;  %3505 = vmatpush.bf16.msrb.mxu1 %v7870_v38  ;;  %v7918_v30 = vor.u32 %v9644_v22, %v7915_v23  ;;  %v7643_v38 = vld [vmem:[%s10343_s15 + $0x10] sm:$0xf0]  ;;  %v7662_v29 = vor.u32 %v9580_v6, %v7659_v26  ;;  %v7857_v22 = vld [vmem:[%s10343_s15 + $0x1a8] sm:$0xf]  ;;  %v9631_v23 = vld [vmem:[%s10343_s15 + $0x1b4] sm:$0xf0] }
 0x1df   : > { %v7646_v59 = vor.u32 %v9576_v20, %v7643_v38  ;;  %v7969_v6 = vld [vmem:[%s10343_s15 + $0x288] sm:$0xf]  ;;  %v9659_v26 = vld [vmem:[%s10343_s15 + $0x294] sm:$0xf0]  ;;  %v7858_v27 = vor.u32 %v9631_v23, %v7857_v22 }
 0x1e0   : > { %3520 = vmatpush.bf16.msrb.mxu2 %v7982_v31  ;;  %v8027_v31 = vld [vmem:[%s10343_s15 + $0x310] sm:$0xf0]  ;;  %v7841_v20 = vld [vmem:[%s10343_s15 + $0x188] sm:$0xf]  ;;  %v9627_v38 = vld [vmem:[%s10343_s15 + $0x194] sm:$0xf0]  ;;  %v7970_v39 = vor.u32 %v9659_v26, %v7969_v6 }
 0x1e1   : > { %3534 = vmatpush.bf16.msrb.mxu3 %v8110_v16  ;;  %v8017_v16 = vld [vmem:[%s10343_s15 + $0x2e8] sm:$0xf]  ;;  %v8030_v53 = vor.u32 %v9672_v28, %v8027_v31  ;;  %v9679_v23 = vld [vmem:[%s10343_s15 + $0x334] sm:$0xf0] }
 0x1e2   : > { %3492 = vmatpush.bf16.msrb.mxu0 %v7726_v44  ;;  %3506 = vmatpush.bf16.msrb.mxu1 %v7854_v47  ;;  %v9608_v44 = vld [vmem:[%s10343_s15 + $0x104] sm:$0xf]  ;;  %v7771_v47 = vld [vmem:[%s10343_s15 + $0x110] sm:$0xf0]  ;;  %v8018_v58 = vor.u32 %v9671_v41, %v8017_v16  ;;  %v7697_v16 = vld [vmem:[%s10343_s15 + $0x68] sm:$0xf] }
 0x1e3   : > { %v7774_v63 = vor.u32 %v9608_v44, %v7771_v47  ;;  %v7953_v41 = vld [vmem:[%s10343_s15 + $0x268] sm:$0xf]  ;;  %v9579_v6 = vld [vmem:[%s10343_s15 + $0x14] sm:$0xf0] }
 0x1e4   : > { %3521 = vmatpush.bf16.msrb.mxu2 %v7966_v54  ;;  %v7889_v54 = vld [vmem:[%s10343_s15 + $0x1e8] sm:$0xf] }
 0x1e5   : > { %3535 = vmatpush.bf16.msrb.mxu3 %v8094_v55  ;;  %v9639_v55 = vld [vmem:[%s10343_s15 + $0x1f4] sm:$0xf0]  ;;  %v8081_v47 = vld [vmem:[%s10343_s15 + $0x368] sm:$0xf] }
 0x1e6   : > { %3493 = vmatpush.bf16.msrb.mxu0 %v7710_v62  ;;  %3507 = vmatpush.bf16.msrb.mxu1 %v7838_v37  ;;  %v8146_v62 = vor.u32 %v9703_v46, %v8145_v45  ;;  %v7745_v37 = vld [vmem:[%s10343_s15 + $0xc8] sm:$0xf]  ;;  %v7890_v4 = vor.u32 %v9639_v55, %v7889_v54  ;;  %v7842_v45 = vor.u32 %v9627_v38, %v7841_v20  ;;  %v9591_v46 = vld [vmem:[%s10343_s15 + $0x74] sm:$0xf0] }
 0x1e7   : > { %v7746_v10 = vor.u32 %v9603_v7, %v7745_v37  ;;  %v9651_v37 = vld [vmem:[%s10343_s15 + $0x254] sm:$0xf0]  ;;  %v8049_v22 = vld [vmem:[%s10343_s15 + $0x328] sm:$0xf] }
 0x1e8   : > { %3522 = vmatpush.bf16.msrb.mxu2 %v7950_v8  ;;  %v8129_v8 = vld [vmem:[%s10343_s15 + $0x3c8] sm:$0xf]  ;;  %v9683_v7 = vld [vmem:[%s10343_s15 + $0x354] sm:$0xf0] }
 0x1e9   : > { %3536 = vmatpush.bf16.msrb.mxu3 %v8078_v11  ;;  %v9699_v11 = vld [vmem:[%s10343_s15 + $0x3d4] sm:$0xf0] }
 0x1ea   : > { %3494 = vmatpush.bf16.msrb.mxu0 %v7694_v14  ;;  %3508 = vmatpush.bf16.msrb.mxu1 %v7822_v43  ;;  %v8002_v14 = vor.u32 %v9667_v3, %v8001_v1  ;;  %v8130_v15 = vor.u32 %v9699_v11, %v8129_v8  ;;  %v7729_v43 = vld [vmem:[%s10343_s15 + $0xa8] sm:$0xf]  ;;  %v9587_v3 = vld [vmem:[%s10343_s15 + $0x54] sm:$0xf0] }
 0x1eb   : > { %v7730_v25 = vor.u32 %v9599_v57, %v7729_v43  ;;  %v7809_v11 = vld [vmem:[%s10343_s15 + $0x148] sm:$0xf] }
 0x1ec   : > { %3523 = vmatpush.bf16.msrb.mxu2 %v7934_v12  ;;  %v8113_v12 = vld [vmem:[%s10343_s15 + $0x3a8] sm:$0xf] }
 0x1ed   : > { %3537 = vmatpush.bf16.msrb.mxu3 %v8062_v19  ;;  %v9695_v19 = vld [vmem:[%s10343_s15 + $0x3b4] sm:$0xf0]  ;;  %v7665_v43 = vld [vmem:[%s10343_s15 + $0x28] sm:$0xf] }
 0x1ee   : > { %3495 = vmatpush.bf16.msrb.mxu0 %v7678_v24  ;;  %3509 = vmatpush.bf16.msrb.mxu1 %v7806_v5  ;;  %v7986_v24 = vor.u32 %v9663_v18, %v7985_v17  ;;  %v8114_v32 = vor.u32 %v9695_v19, %v8113_v12  ;;  %v7713_v5 = vld [vmem:[%s10343_s15 + $0x88] sm:$0xf]  ;;  %v9647_v18 = vld [vmem:[%s10343_s15 + $0x234] sm:$0xf0]  ;;  %v7810_v12 = vor.u32 %v9619_v2, %v7809_v11  ;;  %v8003_v11 = vld [vmem:[%s10343_s15 + $0x2d8] sm:$0xf0] }
 0x1ef   : > { %v7921_v17 = vld [vmem:[%s10343_s15 + $0x228] sm:$0xf]  ;;  %v9583_v19 = vld [vmem:[%s10343_s15 + $0x34] sm:$0xf0]  ;;  %v9697_v2 = vld [vmem:[%s10343_s15 + $0x3cc] sm:$0xf] }
 0x1f0   : > { %3524 = vmatpush.bf16.msrb.mxu2 %v7918_v30  ;;  %v8097_v30 = vld [vmem:[%s10343_s15 + $0x388] sm:$0xf]  ;;  %v7666_v26 = vor.u32 %v9583_v19, %v7665_v43  ;;  %v7731_v19 = vld [vmem:[%s10343_s15 + $0xb8] sm:$0xf0] }
 0x1f1   : > { %3538 = vmatpush.bf16.msrb.mxu3 %v8046_v9  ;;  %v9691_v9 = vld [vmem:[%s10343_s15 + $0x394] sm:$0xf0] }
 0x1f2   : > { %3496 = vmatpush.bf16.msrb.mxu0 %v7662_v29  ;;  %3510 = vmatpush.bf16.msrb.mxu1 %v7790_v42  ;;  %v7714_v29 = vor.u32 %v9595_v36, %v7713_v5  ;;  %v8098_v31 = vor.u32 %v9691_v9, %v8097_v30  ;;  %v9655_v42 = vld [vmem:[%s10343_s15 + $0x274] sm:$0xf0]  ;;  %v7649_v5 = vld [vmem:[%s10343_s15 + $0x8] sm:$0xf] }
 0x1f3   : > { %v7954_v55 = vor.u32 %v9655_v42, %v7953_v41  ;;  %v7777_v36 = vld [vmem:[%s10343_s15 + $0x108] sm:$0xf]  ;;  %v9643_v9 = vld [vmem:[%s10343_s15 + $0x214] sm:$0xf0]  ;;  %v7891_v42 = vld [vmem:[%s10343_s15 + $0x1f8] sm:$0xf0] }
 0x1f4   : > { %3525 = vmatpush.bf16.msrb.mxu2 %v7902_v49  ;;  %v9687_v49 = vld [vmem:[%s10343_s15 + $0x374] sm:$0xf0]  ;;  %v7905_v30 = vld [vmem:[%s10343_s15 + $0x208] sm:$0xf] }
 0x1f5   : > { %3539 = vmatpush.bf16.msrb.mxu3 %v8030_v53  ;;  %v2579_v40 = vpop.f32.mrf.mxu0  ;;  %v2607_v28 = vpop.f32.mrf.mxu2  ;;  %v9623_v53 = vld [vmem:[%s10343_s15 + $0x174] sm:$0xf0]  ;;  %v7906_v41 = vor.u32 %v9643_v9, %v7905_v30 }
 0x1f6   : > { %3497 = vmatpush.bf16.msrb.mxu0 %v7646_v59  ;;  %3511 = vmatpush.bf16.msrb.mxu1 %v7774_v63  ;;  %v2593_v44 = vpop.f32.mrf.mxu1  ;;  %v2621_v54 = vpop.f32.mrf.mxu3  ;;  %v7698_v59 = vor.u32 %v9591_v46, %v7697_v16  ;;  %v7681_v63 = vld [vmem:[%s10343_s15 + $0x48] sm:$0xf]  ;;  %v7826_v1 = vor.u32 %v9623_v53, %v7825_v52  ;;  %v9637_v16 = vld [vmem:[%s10343_s15 + $0x1ec] sm:$0xf]  ;;  %v7650_v46 = vor.u32 %v9579_v6, %v7649_v5  ;;  %v7987_v5 = vld [vmem:[%s10343_s15 + $0x2b8] sm:$0xf0] }
 0x1f7   : > { %3526 = vmatmul.bf16.vlgmr.msrb.gmra.mxu2 %v11426_v60  ;;  %v2594_v51 = vadd.f32 %v2593_v44, %v2579_v40  ;;  %v8033_v40 = vld [vmem:[%s10343_s15 + $0x308] sm:$0xf]  ;;  %v9669_v44 = vld [vmem:[%s10343_s15 + $0x2ec] sm:$0xf] }
 0x1f8   : > { %3574 = vmatpush.bf16.msra.mxu2 %v8018_v58  ;;  %3540 = vmatmul.bf16.vlgmr.msrb.gmra.mxu3 %v11430_v61  ;;  %v9693_v6 = vld [vmem:[%s10343_s15 + $0x3ac] sm:$0xf] }
 0x1f9   : > { %3588 = vmatpush.bf16.msra.mxu3 %v8146_v62  ;;  %3498 = vmatmul.bf16.vlgmr.msrb.gmra.mxu0 %v11469_v34  ;;  %v2608_v58 = vadd.f32 %v2607_v28, %v2594_v51  ;;  %v8082_v62 = vor.u32 %v9687_v49, %v8081_v47  ;;  %v9675_v28 = vld [vmem:[%s10343_s15 + $0x314] sm:$0xf0]  ;;  %v9701_v49 = vld [vmem:[%s10343_s15 + $0x3ec] sm:$0xf]  ;;  %v8147_v51 = vld [vmem:[%s10343_s15 + $0x3f8] sm:$0xf0] }
 0x1fa   : > { %3546 = vmatpush.bf16.msra.mxu0 %v7762_v0  ;;  %3560 = vmatpush.bf16.msra.mxu1 %v7890_v4  ;;  %v7937_v0 = vld [vmem:[%s10343_s15 + $0x248] sm:$0xf]  ;;  %v8034_v47 = vor.u32 %v9675_v28, %v8033_v40  ;;  %v7715_v40 = vld [vmem:[%s10343_s15 + $0x98] sm:$0xf0]  ;;  %v9625_v28 = vld [vmem:[%s10343_s15 + $0x18c] sm:$0xf] }
 0x1fb   : > { %3512 = vmatmul.bf16.vlgmr.msrb.gmra.mxu1 %v11473_v35  ;;  %v8065_v4 = vld [vmem:[%s10343_s15 + $0x348] sm:$0xf]  ;;  %v11821_v8 = vadd.f32 %v2621_v54, %v2608_v58  ;;  %v7938_v13 = vor.u32 %v9651_v37, %v7937_v0  ;;  %v7747_v0 = vld [vmem:[%s10343_s15 + $0xd8] sm:$0xf0]  ;;  %v9633_v37 = vld [vmem:[%s10343_s15 + $0x1cc] sm:$0xf] }
 0x1fc   : > { %3575 = vmatpush.bf16.msra.mxu2 %v8002_v14 }
 0x1fd   : > { %3589 = vmatpush.bf16.msra.mxu3 %v8130_v15  ;;  %v11825_v14 = vpop.f32.mrf.mxu0  ;;  %v8066_v15 = vor.u32 %v9683_v7, %v8065_v4  ;;  %v11832_v57 = vpop.f32.mrf.mxu2  ;;  %v7875_v4 = vld [vmem:[%s10343_s15 + $0x1d8] sm:$0xf0]  ;;  %v9665_v7 = vld [vmem:[%s10343_s15 + $0x2cc] sm:$0xf] }
 0x1fe   : > { %3547 = vmatpush.bf16.msra.mxu0 %v7746_v10  ;;  %3561 = vmatpush.bf16.msra.mxu1 %v7874_v56  ;;  %v7682_v10 = vor.u32 %v9587_v3, %v7681_v63  ;;  %v11830_v56 = vpop.f32.mrf.mxu1  ;;  %v11844_v20 = vpop.f32.mrf.mxu3  ;;  %v9601_v63 = vld [vmem:[%s10343_s15 + $0xcc] sm:$0xf]  ;;  %v8150_v3 = vor.u32 %v9701_v49, %v8147_v51 }
 0x1ff   : > { %v9589_v51 = vld [vmem:[%s10343_s15 + $0x6c] sm:$0xf] }
 0x200   : > { %3576 = vmatpush.bf16.msra.mxu2 %v7986_v24  ;;  %v7793_v24 = vld [vmem:[%s10343_s15 + $0x128] sm:$0xf] }
 0x201   : > { %3590 = vmatpush.bf16.msra.mxu3 %v8114_v32  ;;  %v7922_v32 = vor.u32 %v9647_v18, %v7921_v17  ;;  %v7878_v17 = vor.u32 %v9633_v37, %v7875_v4  ;;  %v8006_v18 = vor.u32 %v9665_v7, %v8003_v11  ;;  %v9585_v11 = vld [vmem:[%s10343_s15 + $0x4c] sm:$0xf] }
 0x202   : > { %3548 = vmatpush.bf16.msra.mxu0 %v7730_v25  ;;  %3562 = vmatpush.bf16.msra.mxu1 %v7858_v27  ;;  %v9615_v25 = vld [vmem:[%s10343_s15 + $0x134] sm:$0xf0]  ;;  %v8050_v27 = vor.u32 %v9679_v23, %v8049_v22  ;;  %v9629_v22 = vld [vmem:[%s10343_s15 + $0x1ac] sm:$0xf] }
 0x203   : > { %v7794_v38 = vor.u32 %v9615_v25, %v7793_v24  ;;  %v7859_v25 = vld [vmem:[%s10343_s15 + $0x1b8] sm:$0xf0] }
 0x204   : > { %3577 = vmatpush.bf16.msra.mxu2 %v7970_v39  ;;  %v9611_v39 = vld [vmem:[%s10343_s15 + $0x114] sm:$0xf0]  ;;  %v7862_v9 = vor.u32 %v9629_v22, %v7859_v25  ;;  %v8067_v22 = vld [vmem:[%s10343_s15 + $0x358] sm:$0xf0] }
 0x205   : > { %3591 = vmatpush.bf16.msra.mxu3 %v8098_v31  ;;  %v7763_v31 = vld [vmem:[%s10343_s15 + $0xf8] sm:$0xf0]  ;;  %v2635_v52 = vpop.f32.mrf.mxu0  ;;  %v7778_v53 = vor.u32 %v9611_v39, %v7777_v36  ;;  %v9593_v39 = vld [vmem:[%s10343_s15 + $0x8c] sm:$0xf] }
 0x206   : > { %3549 = vmatpush.bf16.msra.mxu0 %v7714_v29  ;;  %3563 = vmatpush.bf16.msra.mxu1 %v7842_v45  ;;  %v9605_v29 = vld [vmem:[%s10343_s15 + $0xec] sm:$0xf]  ;;  %v8019_v45 = vld [vmem:[%s10343_s15 + $0x2f8] sm:$0xf0]  ;;  %v2663_v58 = vpop.f32.mrf.mxu2  ;;  %v2677_v43 = vpop.f32.mrf.mxu3 }
 0x207   : > { %v7766_v54 = vor.u32 %v9605_v29, %v7763_v31  ;;  %v7843_v31 = vld [vmem:[%s10343_s15 + $0x198] sm:$0xf0] }
 0x208   : > { %3578 = vmatpush.bf16.msra.mxu2 %v7954_v55  ;;  %v2649_v55 = vpop.f32.mrf.mxu1 }
 0x209   : > { %3592 = vmatpush.bf16.msra.mxu3 %v8082_v62  ;;  %v8022_v62 = vor.u32 %v9669_v44, %v8019_v45  ;;  %v9689_v44 = vld [vmem:[%s10343_s15 + $0x38c] sm:$0xf]  ;;  %v8099_v45 = vld [vmem:[%s10343_s15 + $0x398] sm:$0xf0] }
 0x20a   : > { %3550 = vmatpush.bf16.msra.mxu0 %v7698_v59  ;;  %3564 = vmatpush.bf16.msra.mxu1 %v7826_v1  ;;  %v7894_v59 = vor.u32 %v9637_v16, %v7891_v42  ;;  %v2650_v1 = vadd.f32 %v2649_v55, %v2635_v52  ;;  %v9657_v16 = vld [vmem:[%s10343_s15 + $0x28c] sm:$0xf]  ;;  %v7699_v52 = vld [vmem:[%s10343_s15 + $0x78] sm:$0xf0] }
 0x20b   : > { %v7827_v55 = vld [vmem:[%s10343_s15 + $0x178] sm:$0xf0]  ;;  %v7702_v37 = vor.u32 %v9589_v51, %v7699_v52  ;;  %v9641_v52 = vld [vmem:[%s10343_s15 + $0x20c] sm:$0xf] }
 0x20c   : > { %3579 = vmatpush.bf16.msra.mxu2 %v7938_v13  ;;  %v8131_v13 = vld [vmem:[%s10343_s15 + $0x3d8] sm:$0xf0] }
 0x20d   : > { %3593 = vmatpush.bf16.msra.mxu3 %v8066_v15  ;;  %v7750_v15 = vor.u32 %v9601_v63, %v7747_v0  ;;  %v8134_v24 = vor.u32 %v9697_v2, %v8131_v13  ;;  %v11879_v36 = vpop.f32.mrf.mxu0  ;;  %v9685_v63 = vld [vmem:[%s10343_s15 + $0x36c] sm:$0xf]  ;;  %v8083_v0 = vld [vmem:[%s10343_s15 + $0x378] sm:$0xf0] }
 0x20e   : > { %3551 = vmatpush.bf16.msra.mxu0 %v7682_v10  ;;  %3565 = vmatpush.bf16.msra.mxu1 %v7810_v12  ;;  %v2664_v10 = vadd.f32 %v2663_v58, %v2650_v1  ;;  %v9597_v12 = vld [vmem:[%s10343_s15 + $0xac] sm:$0xf]  ;;  %v11889_v42 = vpop.f32.mrf.mxu2  ;;  %v7683_v2 = vld [vmem:[%s10343_s15 + $0x58] sm:$0xf0] }
 0x20f   : > { %v9653_v58 = vld [vmem:[%s10343_s15 + $0x26c] sm:$0xf]  ;;  %v7686_v25 = vor.u32 %v9585_v11, %v7683_v2  ;;  %v7779_v51 = vld [vmem:[%s10343_s15 + $0x118] sm:$0xf0]  ;;  %v8777_v2 = vld [vmem:[%s10343_s15 + $0xbe0] sm:$0xf] }
 0x210   : > { %3580 = vmatpush.bf16.msra.mxu2 %v7922_v32  ;;  %v11868_v23 = vadd.f32 %v2677_v43, %v2664_v10  ;;  %v9661_v32 = vld [vmem:[%s10343_s15 + $0x2ac] sm:$0xf]  ;;  %v11881_v30 = vpop.f32.mrf.mxu1  ;;  %v7811_v43 = vld [vmem:[%s10343_s15 + $0x158] sm:$0xf0] }
 0x211   : > { %3594 = vmatpush.bf16.msra.mxu3 %v8050_v27  ;;  %v7734_v27 = vor.u32 %v9597_v12, %v7731_v19  ;;  %v9617_v13 = vld [vmem:[%s10343_s15 + $0x14c] sm:$0xf] }
 0x212   : > { %3552 = vmatpush.bf16.msra.mxu0 %v7666_v26  ;;  %3566 = vmatpush.bf16.msra.mxu1 %v7794_v38  ;;  %v8115_v26 = vld [vmem:[%s10343_s15 + $0x3b8] sm:$0xf0]  ;;  %v7990_v38 = vor.u32 %v9661_v32, %v7987_v5  ;;  %v9681_v19 = vld [vmem:[%s10343_s15 + $0x34c] sm:$0xf]  ;;  %v7814_v32 = vor.u32 %v9617_v13, %v7811_v43  ;;  %v9958_v13 = vld [vmem:[%s10343_s15 + $0xbec] sm:$0xf0] }
 0x213   : > { %v8118_v29 = vor.u32 %v9693_v6, %v8115_v26  ;;  %v9581_v6 = vld [vmem:[%s10343_s15 + $0x2c] sm:$0xf]  ;;  %v7667_v26 = vld [vmem:[%s10343_s15 + $0x38] sm:$0xf0] }
 0x214   : > { %3581 = vmatpush.bf16.msra.mxu2 %v7906_v41  ;;  %v7971_v41 = vld [vmem:[%s10343_s15 + $0x298] sm:$0xf0] }
 0x215   : > { %3595 = vmatpush.bf16.msra.mxu3 %v8034_v47  ;;  %v7846_v47 = vor.u32 %v9625_v28, %v7843_v31  ;;  %v7974_v49 = vor.u32 %v9657_v16, %v7971_v41  ;;  %v8051_v31 = vld [vmem:[%s10343_s15 + $0x338] sm:$0xf0]  ;;  %v7670_v41 = vor.u32 %v9581_v6, %v7667_v26  ;;  %v9954_v6 = vld [vmem:[%s10343_s15 + $0xbcc] sm:$0xf0] }
 0x216   : > { %3553 = vmatpush.bf16.msra.mxu0 %v7650_v46  ;;  %3567 = vmatpush.bf16.msra.mxu1 %v7778_v53  ;;  %v7718_v46 = vor.u32 %v9593_v39, %v7715_v40  ;;  %v9621_v53 = vld [vmem:[%s10343_s15 + $0x16c] sm:$0xf]  ;;  %v2691_v1 = vpop.f32.mrf.mxu0  ;;  %v7923_v40 = vld [vmem:[%s10343_s15 + $0x238] sm:$0xf0] }
 0x217   : > { %3582 = vmatmul.bf16.vlgmr.msra.gmra.mxu2 %v11426_v60  ;;  %v7830_v4 = vor.u32 %v9621_v53, %v7827_v55  ;;  %v9645_v39 = vld [vmem:[%s10343_s15 + $0x22c] sm:$0xf] }
 0x218   : > { %3630 = vmatpush.bf16.msrb.mxu2 %v8022_v62  ;;  %3596 = vmatmul.bf16.vlgmr.msra.gmra.mxu3 %v11430_v61  ;;  %v11899_v62 = vpop.f32.mrf.mxu3  ;;  %v9673_v55 = vld [vmem:[%s10343_s15 + $0x30c] sm:$0xf] }
 0x219   : > { %3644 = vmatpush.bf16.msrb.mxu3 %v8150_v3  ;;  %3554 = vmatmul.bf16.vlgmr.msra.gmra.mxu0 %v11469_v34  ;;  %v2705_v3 = vpop.f32.mrf.mxu1 }
 0x21a   : > { %3602 = vmatpush.bf16.msrb.mxu0 %v7766_v54  ;;  %3616 = vmatpush.bf16.msrb.mxu1 %v7894_v59  ;;  %v8102_v54 = vor.u32 %v9689_v44, %v8099_v45  ;;  %v7955_v59 = vld [vmem:[%s10343_s15 + $0x278] sm:$0xf0]  ;;  %v2706_v10 = vadd.f32 %v2705_v3, %v2691_v1  ;;  %v2719_v12 = vpop.f32.mrf.mxu2  ;;  %v9577_v44 = vld [vmem:[%s10343_s15 + $0xc] sm:$0xf]  ;;  %v9894_v1 = vld [vmem:[%s10343_s15 + $0x9ec] sm:$0xf0] }
 0x21b   : > { %3568 = vmatmul.bf16.vlgmr.msra.gmra.mxu1 %v11473_v35  ;;  %v7958_v7 = vor.u32 %v9653_v58, %v7955_v59  ;;  %v7651_v45 = vld [vmem:[%s10343_s15 + $0x18] sm:$0xf0]  ;;  %v8393_v59 = vld [vmem:[%s10343_s15 + $0x8e0] sm:$0xf] }
 0x21c   : > { %3631 = vmatpush.bf16.msrb.mxu2 %v8006_v18  ;;  %v7939_v18 = vld [vmem:[%s10343_s15 + $0x258] sm:$0xf0]  ;;  %v8649_v3 = vld [vmem:[%s10343_s15 + $0xae0] sm:$0xf] }
 0x21d   : > { %3645 = vmatpush.bf16.msrb.mxu3 %v8134_v24  ;;  %v2720_v24 = vadd.f32 %v2719_v12, %v2706_v10  ;;  %v8035_v58 = vld [vmem:[%s10343_s15 + $0x318] sm:$0xf0]  ;;  %v9858_v12 = vld [vmem:[%s10343_s15 + $0x8cc] sm:$0xf0] }
 0x21e   : > { %3603 = vmatpush.bf16.msrb.mxu0 %v7750_v15  ;;  %3617 = vmatpush.bf16.msrb.mxu1 %v7878_v17  ;;  %v8086_v15 = vor.u32 %v9685_v63, %v8083_v0  ;;  %v9649_v17 = vld [vmem:[%s10343_s15 + $0x24c] sm:$0xf]  ;;  %v9862_v63 = vld [vmem:[%s10343_s15 + $0x8ec] sm:$0xf0]  ;;  %v8521_v0 = vld [vmem:[%s10343_s15 + $0x9e0] sm:$0xf]  ;;  %v8038_v10 = vor.u32 %v9673_v55, %v8035_v58 }
 0x21f   : > { %v7942_v5 = vor.u32 %v9649_v17, %v7939_v18  ;;  %v8522_v43 = vor.u32 %v9894_v1, %v8521_v0  ;;  %v8377_v18 = vld [vmem:[%s10343_s15 + $0x8c0] sm:$0xf] }
 0x220   : > { %3632 = vmatpush.bf16.msrb.mxu2 %v7990_v38  ;;  %v7795_v38 = vld [vmem:[%s10343_s15 + $0x138] sm:$0xf0]  ;;  %v2733_v28 = vpop.f32.mrf.mxu3  ;;  %v8378_v26 = vor.u32 %v9858_v12, %v8377_v18  ;;  %v8473_v55 = vld [vmem:[%s10343_s15 + $0x980] sm:$0xf]  ;;  %v9910_v12 = vld [vmem:[%s10343_s15 + $0xa6c] sm:$0xf0] }
 0x221   : > { %3646 = vmatpush.bf16.msrb.mxu3 %v8118_v29  ;;  %v9677_v29 = vld [vmem:[%s10343_s15 + $0x32c] sm:$0xf]  ;;  %v11919_v16 = vadd.f32 %v2733_v28, %v2720_v24  ;;  %v9890_v24 = vld [vmem:[%s10343_s15 + $0x9cc] sm:$0xf0]  ;;  %v8601_v0 = vld [vmem:[%s10343_s15 + $0xa80] sm:$0xf] }
 0x222   : > { %3604 = vmatpush.bf16.msrb.mxu0 %v7734_v27  ;;  %3618 = vmatpush.bf16.msrb.mxu1 %v7862_v9  ;;  %v9613_v27 = vld [vmem:[%s10343_s15 + $0x12c] sm:$0xf]  ;;  %v8070_v9 = vor.u32 %v9681_v19, %v8067_v22  ;;  %v8054_v53 = vor.u32 %v9677_v29, %v8051_v31  ;;  %v8505_v19 = vld [vmem:[%s10343_s15 + $0x9c0] sm:$0xf]  ;;  %v8778_v22 = vor.u32 %v9958_v13, %v8777_v2  ;;  %v9886_v29 = vld [vmem:[%s10343_s15 + $0x9ac] sm:$0xf0]  ;;  %v11964_v58 = vpop.f32.mrf.mxu2 }
 0x223   : > { %v8617_v31 = vld [vmem:[%s10343_s15 + $0xaa0] sm:$0xf]  ;;  %v9846_v13 = vld [vmem:[%s10343_s15 + $0x86c] sm:$0xf0] }
 0x224   : > { %3633 = vmatpush.bf16.msrb.mxu2 %v7974_v49  ;;  %v9609_v49 = vld [vmem:[%s10343_s15 + $0x10c] sm:$0xf]  ;;  %v8729_v1 = vld [vmem:[%s10343_s15 + $0xb80] sm:$0xf] }
 0x225   : > { %3647 = vmatpush.bf16.msrb.mxu3 %v8102_v54  ;;  %v7907_v54 = vld [vmem:[%s10343_s15 + $0x218] sm:$0xf0]  ;;  %v8329_v2 = vld [vmem:[%s10343_s15 + $0x860] sm:$0xf] }
 0x226   : > { %3605 = vmatpush.bf16.msrb.mxu0 %v7718_v46  ;;  %3619 = vmatpush.bf16.msrb.mxu1 %v7846_v47  ;;  %v7798_v46 = vor.u32 %v9613_v27, %v7795_v38  ;;  %v7926_v47 = vor.u32 %v9645_v39, %v7923_v40  ;;  %v7910_v11 = vor.u32 %v9641_v52, %v7907_v54  ;;  %v8361_v38 = vld [vmem:[%s10343_s15 + $0x8a0] sm:$0xf]  ;;  %v9854_v39 = vld [vmem:[%s10343_s15 + $0x8ac] sm:$0xf0] }
 0x227   : > { %v8506_v27 = vor.u32 %v9890_v24, %v8505_v19  ;;  %v8489_v40 = vld [vmem:[%s10343_s15 + $0x9a0] sm:$0xf]  ;;  %v9850_v54 = vld [vmem:[%s10343_s15 + $0x88c] sm:$0xf0] }
 0x228   : > { %3634 = vmatpush.bf16.msrb.mxu2 %v7958_v7  ;;  %v7782_v7 = vor.u32 %v9609_v49, %v7779_v51  ;;  %v8362_v49 = vor.u32 %v9854_v39, %v8361_v38  ;;  %v8490_v51 = vor.u32 %v9886_v29, %v8489_v40  ;;  %v8585_v18 = vld [vmem:[%s10343_s15 + $0xa60] sm:$0xf]  ;;  %v9942_v24 = vld [vmem:[%s10343_s15 + $0xb6c] sm:$0xf0] }
 0x229   : > { %3648 = vmatpush.bf16.msrb.mxu3 %v8086_v15  ;;  %v8394_v15 = vor.u32 %v9862_v63, %v8393_v59  ;;  %v9882_v63 = vld [vmem:[%s10343_s15 + $0x98c] sm:$0xf0]  ;;  %v8441_v38 = vld [vmem:[%s10343_s15 + $0x940] sm:$0xf] }
 0x22a   : > { %3606 = vmatpush.bf16.msrb.mxu0 %v7702_v37  ;;  %3620 = vmatpush.bf16.msrb.mxu1 %v7830_v4  ;;  %v7654_v37 = vor.u32 %v9577_v44, %v7651_v45  ;;  %v9926_v4 = vld [vmem:[%s10343_s15 + $0xaec] sm:$0xf0]  ;;  %v11952_v44 = vpop.f32.mrf.mxu0  ;;  %v8745_v45 = vld [vmem:[%s10343_s15 + $0xba0] sm:$0xf] }
 0x22b   : > { %v8650_v17 = vor.u32 %v9926_v4, %v8649_v3  ;;  %v9946_v3 = vld [vmem:[%s10343_s15 + $0xb8c] sm:$0xf0]  ;;  %v8569_v29 = vld [vmem:[%s10343_s15 + $0xa40] sm:$0xf] }
 0x22c   : > { %3635 = vmatpush.bf16.msrb.mxu2 %v7942_v5  ;;  %v8761_v5 = vld [vmem:[%s10343_s15 + $0xbc0] sm:$0xf] }
 0x22d   : > { %3649 = vmatpush.bf16.msrb.mxu3 %v8070_v9  ;;  %v8762_v28 = vor.u32 %v9954_v6, %v8761_v5 }
 0x22e   : > { %3607 = vmatpush.bf16.msrb.mxu0 %v7686_v25  ;;  %3621 = vmatpush.bf16.msrb.mxu1 %v7814_v32  ;;  %v8633_v25 = vld [vmem:[%s10343_s15 + $0xac0] sm:$0xf]  ;;  %v9922_v32 = vld [vmem:[%s10343_s15 + $0xacc] sm:$0xf0] }
 0x22f   : > { %v8634_v9 = vor.u32 %v9922_v32, %v8633_v25  ;;  %v8330_v32 = vor.u32 %v9846_v13, %v8329_v2  ;;  %v9834_v2 = vld [vmem:[%s10343_s15 + $0x80c] sm:$0xf0]  ;;  %v8409_v13 = vld [vmem:[%s10343_s15 + $0x900] sm:$0xf] }
 0x230   : > { %3636 = vmatpush.bf16.msrb.mxu2 %v7926_v47  ;;  %v11958_v47 = vpop.f32.mrf.mxu1 }
 0x231   : > { %3650 = vmatpush.bf16.msrb.mxu3 %v8054_v53  ;;  %v8345_v53 = vld [vmem:[%s10343_s15 + $0x880] sm:$0xf] }
 0x232   : > { %3608 = vmatpush.bf16.msrb.mxu0 %v7670_v41  ;;  %3622 = vmatpush.bf16.msrb.mxu1 %v7798_v46  ;;  %v9918_v41 = vld [vmem:[%s10343_s15 + $0xaac] sm:$0xf0]  ;;  %v8346_v4 = vor.u32 %v9850_v54, %v8345_v53  ;;  %v8425_v53 = vld [vmem:[%s10343_s15 + $0x920] sm:$0xf] }
 0x233   : > { %v9950_v46 = vld [vmem:[%s10343_s15 + $0xbac] sm:$0xf0]  ;;  %v8618_v52 = vor.u32 %v9918_v41, %v8617_v31 }
 0x234   : > { %3637 = vmatpush.bf16.msrb.mxu2 %v7910_v11  ;;  %v8746_v59 = vor.u32 %v9950_v46, %v8745_v45  ;;  %v9906_v31 = vld [vmem:[%s10343_s15 + $0xa4c] sm:$0xf0]  ;;  %v8697_v45 = vld [vmem:[%s10343_s15 + $0xb40] sm:$0xf] }
 0x235   : > { %3651 = vmatpush.bf16.msrb.mxu3 %v8038_v10  ;;  %v8457_v10 = vld [vmem:[%s10343_s15 + $0x960] sm:$0xf]  ;;  %v9938_v46 = vld [vmem:[%s10343_s15 + $0xb4c] sm:$0xf0] }
 0x236   : > { %3609 = vmatpush.bf16.msrb.mxu0 %v7654_v37  ;;  %3623 = vmatpush.bf16.msrb.mxu1 %v7782_v7  ;;  %v9914_v37 = vld [vmem:[%s10343_s15 + $0xa8c] sm:$0xf0]  ;;  %v8474_v7 = vor.u32 %v9882_v63, %v8473_v55  ;;  %v2747_v19 = vpop.f32.mrf.mxu0  ;;  %v8570_v55 = vor.u32 %v9906_v31, %v8569_v29  ;;  %v8553_v63 = vld [vmem:[%s10343_s15 + $0xa20] sm:$0xf] }
 0x237   : > { %3638 = vmatmul.bf16.vlgmr.msrb.gmra.mxu2 %v11426_v60  ;;  %v8602_v11 = vor.u32 %v9914_v37, %v8601_v0  ;;  %v9902_v0 = vld [vmem:[%s10343_s15 + $0xa2c] sm:$0xf0] }
 0x238   : > { %4480 = vmatpush.bf16.msra.mxu2 %v8650_v17  ;;  %3652 = vmatmul.bf16.vlgmr.msrb.gmra.mxu3 %v11430_v61  ;;  %v9878_v17 = vld [vmem:[%s10343_s15 + $0x96c] sm:$0xf0]  ;;  %v2761_v25 = vpop.f32.mrf.mxu1 }
 0x239   : > { %4494 = vmatpush.bf16.msra.mxu3 %v8778_v22  ;;  %3610 = vmatmul.bf16.vlgmr.msrb.gmra.mxu0 %v11469_v34  ;;  %v8713_v22 = vld [vmem:[%s10343_s15 + $0xb60] sm:$0xf]  ;;  %v2762_v5 = vadd.f32 %v2761_v25, %v2747_v19  ;;  %v8458_v6 = vor.u32 %v9878_v17, %v8457_v10  ;;  %v9866_v10 = vld [vmem:[%s10343_s15 + $0x90c] sm:$0xf0] }
 0x23a   : > { %4452 = vmatpush.bf16.msra.mxu0 %v8394_v15  ;;  %4466 = vmatpush.bf16.msra.mxu1 %v8522_v43  ;;  %v11974_v15 = vpop.f32.mrf.mxu3  ;;  %v8730_v43 = vor.u32 %v9946_v3, %v8729_v1  ;;  %v2775_v39 = vpop.f32.mrf.mxu2  ;;  %v8714_v40 = vor.u32 %v9942_v24, %v8713_v22  ;;  %v8698_v1 = vor.u32 %v9938_v46, %v8697_v45  ;;  %v8681_v3 = vld [vmem:[%s10343_s15 + $0xb20] sm:$0xf]  ;;  %v9898_v19 = vld [vmem:[%s10343_s15 + $0xa0c] sm:$0xf0]  ;;  %v9924_v46 = vld [vmem:[%s10343_s15 + $0xae4] sm:$0xf] }
 0x23b   : > { %3624 = vmatmul.bf16.vlgmr.msrb.gmra.mxu1 %v11473_v35  ;;  %v2776_v41 = vadd.f32 %v2775_v39, %v2762_v5  ;;  %v8665_v22 = vld [vmem:[%s10343_s15 + $0xb00] sm:$0xf]  ;;  %v9930_v5 = vld [vmem:[%s10343_s15 + $0xb0c] sm:$0xf0]  ;;  %v8410_v29 = vor.u32 %v9866_v10, %v8409_v13  ;;  %v9920_v10 = vld [vmem:[%s10343_s15 + $0xac4] sm:$0xf] }
 0x23c   : > { %4481 = vmatpush.bf16.msra.mxu2 %v8634_v9  ;;  %v9842_v9 = vld [vmem:[%s10343_s15 + $0x84c] sm:$0xf0] }
 0x23d   : > { %4495 = vmatpush.bf16.msra.mxu3 %v8762_v28  ;;  %v9874_v28 = vld [vmem:[%s10343_s15 + $0x94c] sm:$0xf0] }
 0x23e   : > { %4453 = vmatpush.bf16.msra.mxu0 %v8378_v26  ;;  %4467 = vmatpush.bf16.msra.mxu1 %v8506_v27  ;;  %v8586_v26 = vor.u32 %v9910_v12, %v8585_v18  ;;  %v8313_v27 = vld [vmem:[%s10343_s15 + $0x840] sm:$0xf]  ;;  %v8442_v54 = vor.u32 %v9874_v28, %v8441_v38  ;;  %v8523_v28 = vld [vmem:[%s10343_s15 + $0x9f0] sm:$0xf0] }
 0x23f   : > { %v8537_v12 = vld [vmem:[%s10343_s15 + $0xa00] sm:$0xf] }
 0x240   : > { %4482 = vmatpush.bf16.msra.mxu2 %v8618_v52  ;;  %v9838_v52 = vld [vmem:[%s10343_s15 + $0x82c] sm:$0xf0]  ;;  %v2763_v17 = vpop.f32.mrf.mxu1  ;;  %v8538_v31 = vor.u32 %v9898_v19, %v8537_v12 }
 0x241   : > { %4496 = vmatpush.bf16.msra.mxu3 %v8746_v59  ;;  %v9870_v59 = vld [vmem:[%s10343_s15 + $0x92c] sm:$0xf0] }
 0x242   : > { %4454 = vmatpush.bf16.msra.mxu0 %v8362_v49  ;;  %4468 = vmatpush.bf16.msra.mxu1 %v8490_v51  ;;  %v8314_v49 = vor.u32 %v9842_v9, %v8313_v27  ;;  %v8297_v51 = vld [vmem:[%s10343_s15 + $0x820] sm:$0xf]  ;;  %v2789_v37 = vpop.f32.mrf.mxu3  ;;  %v8426_v25 = vor.u32 %v9870_v59, %v8425_v53  ;;  %v2777_v27 = vpop.f32.mrf.mxu2  ;;  %v3802_v53 = vrot.slane %v11426_v60, 1 }
 0x243   : > { %v8298_v18 = vor.u32 %v9838_v52, %v8297_v51  ;;  %v9956_v51 = vld [vmem:[%s10343_s15 + $0xbe4] sm:$0xf]  ;;  %v8779_v52 = vld [vmem:[%s10343_s15 + $0xbf0] sm:$0xf0] }
 0x244   : > { %4483 = vmatpush.bf16.msra.mxu2 %v8602_v11  ;;  %v11998_v11 = vadd.f32 %v2789_v37, %v2776_v41  ;;  %v8666_v41 = vor.u32 %v9930_v5, %v8665_v22  ;;  %v3796_v37 = vrot.slane %v11469_v34, 1  ;;  %v8782_v13 = vor.u32 %v9956_v51, %v8779_v52  ;;  %v9952_v34 = vld [vmem:[%s10343_s15 + $0xbc4] sm:$0xf]  ;;  %v8603_v51 = vld [vmem:[%s10343_s15 + $0xa90] sm:$0xf0] }
 0x245   : > { %4497 = vmatpush.bf16.msra.mxu3 %v8730_v43  ;;  %v2749_v43 = vpop.f32.mrf.mxu0  ;;  %v9944_v52 = vld [vmem:[%s10343_s15 + $0xb84] sm:$0xf] }
 0x246   : > { %4455 = vmatpush.bf16.msra.mxu0 %v8346_v4  ;;  %4469 = vmatpush.bf16.msra.mxu1 %v8474_v7  ;;  %v9934_v4 = vld [vmem:[%s10343_s15 + $0xb2c] sm:$0xf0]  ;;  %v8281_v7 = vld [vmem:[%s10343_s15 + $0x800] sm:$0xf]  ;;  %v2764_v24 = vadd.f32 %v2763_v17, %v2749_v43  ;;  %v8635_v43 = vld [vmem:[%s10343_s15 + $0xad0] sm:$0xf0] }
 0x247   : > { %v8682_v9 = vor.u32 %v9934_v4, %v8681_v3  ;;  %v8282_v39 = vor.u32 %v9834_v2, %v8281_v7  ;;  %v8379_v4 = vld [vmem:[%s10343_s15 + $0x8d0] sm:$0xf0]  ;;  %v3799_v7 = vrot.slane %v11473_v35, 1  ;;  %v3800_v2 = vrot.slane %v11463_v33, 1 }
 0x248   : > { %4484 = vmatpush.bf16.msra.mxu2 %v8586_v26  ;;  %v8395_v26 = vld [vmem:[%s10343_s15 + $0x8f0] sm:$0xf0]  ;;  %v2778_v38 = vadd.f32 %v2777_v27, %v2764_v24  ;;  %v8638_v19 = vor.u32 %v9920_v10, %v8635_v43  ;;  %v9852_v24 = vld [vmem:[%s10343_s15 + $0x8a4] sm:$0xf] }
 0x249   : > { %4498 = vmatpush.bf16.msra.mxu3 %v8714_v40  ;;  %v9892_v40 = vld [vmem:[%s10343_s15 + $0x9e4] sm:$0xf]  ;;  %v8763_v17 = vld [vmem:[%s10343_s15 + $0xbd0] sm:$0xf0]  ;;  %v12043_v22 = vsel %vm3795_vm4, %v3799_v7, %v3800_v2 }
 0x24a   : > { %4456 = vmatpush.bf16.msra.mxu0 %v8330_v32  ;;  %4470 = vmatpush.bf16.msra.mxu1 %v8458_v6  ;;  %v8554_v32 = vor.u32 %v9902_v0, %v8553_v63  ;;  %v9860_v6 = vld [vmem:[%s10343_s15 + $0x8e4] sm:$0xf]  ;;  %v2791_v59 = vpop.f32.mrf.mxu3  ;;  %v3806_v63 = vrot.slane %v11411_v50, 1  ;;  %v8526_v60 = vor.u32 %v9892_v40, %v8523_v28  ;;  %v8507_v50 = vld [vmem:[%s10343_s15 + $0x9d0] sm:$0xf0]  ;;  %v8766_v5 = vor.u32 %v9952_v34, %v8763_v17 }
 0x24b   : > { %v8398_v45 = vor.u32 %v9860_v6, %v8395_v26  ;;  %v9856_v0 = vld [vmem:[%s10343_s15 + $0x8c4] sm:$0xf]  ;;  %v12022_v3 = vadd.f32 %v2791_v59, %v2778_v38  ;;  %v8491_v6 = vld [vmem:[%s10343_s15 + $0x9b0] sm:$0xf0] }
 0x24c   : > { %4485 = vmatpush.bf16.msra.mxu2 %v8570_v55  ;;  %v3805_v55 = vrot.slane %v11430_v61, 1  ;;  %v9888_v61 = vld [vmem:[%s10343_s15 + $0x9c4] sm:$0xf]  ;;  %v8382_v35 = vor.u32 %v9856_v0, %v8379_v4  ;;  %v8619_v27 = vld [vmem:[%s10343_s15 + $0xab0] sm:$0xf0] }
 0x24d   : > { %4499 = vmatpush.bf16.msra.mxu3 %v8698_v1  ;;  %v3797_v1 = vrot.slane %v11456_v21, 1  ;;  %v8510_v12 = vor.u32 %v9888_v61, %v8507_v50  ;;  %v9916_v26 = vld [vmem:[%s10343_s15 + $0xaa4] sm:$0xf]  ;;  %v8747_v38 = vld [vmem:[%s10343_s15 + $0xbb0] sm:$0xf0] }
 0x24e   : > { %4457 = vmatpush.bf16.msra.mxu0 %v8314_v49  ;;  %4471 = vmatpush.bf16.msra.mxu1 %v8442_v54  ;;  %v8651_v49 = vld [vmem:[%s10343_s15 + $0xaf0] sm:$0xf0]  ;;  %v3803_v54 = vrot.slane %v11407_v48, 1  ;;  %v12037_v33 = vsel %vm3795_vm4, %v3805_v55, %v3806_v63  ;;  %v8622_v28 = vor.u32 %v9916_v26, %v8619_v27  ;;  %v9908_v61 = vld [vmem:[%s10343_s15 + $0xa64] sm:$0xf] }
 0x24f   : > { %v8654_v48 = vor.u32 %v9924_v46, %v8651_v49  ;;  %v8475_v46 = vld [vmem:[%s10343_s15 + $0x990] sm:$0xf0]  ;;  %v9912_v49 = vld [vmem:[%s10343_s15 + $0xa84] sm:$0xf] }
 0x250   : > { %4486 = vmatpush.bf16.msra.mxu2 %v8554_v32  ;;  %v12032_v21 = vsel %vm3795_vm4, %v3802_v53, %v3803_v54  ;;  %v9884_v32 = vld [vmem:[%s10343_s15 + $0x9a4] sm:$0xf]  ;;  %v8731_v53 = vld [vmem:[%s10343_s15 + $0xb90] sm:$0xf0]  ;;  %v2596_v54 = vadd.f32 %v11830_v56, %v11825_v14  ;;  %v8606_v0 = vor.u32 %v9912_v49, %v8603_v51 }
 0x251   : > { %4500 = vmatpush.bf16.msra.mxu3 %v8682_v9  ;;  %v9948_v9 = vld [vmem:[%s10343_s15 + $0xba4] sm:$0xf]  ;;  %v8494_v40 = vor.u32 %v9884_v32, %v8491_v6  ;;  %v8734_v4 = vor.u32 %v9944_v52, %v8731_v53  ;;  %v8459_v56 = vld [vmem:[%s10343_s15 + $0x970] sm:$0xf0] }
 0x252   : > { %4458 = vmatpush.bf16.msra.mxu0 %v8298_v18  ;;  %4472 = vmatpush.bf16.msra.mxu1 %v8426_v25  ;;  %v12040_v18 = vsel %vm3795_vm4, %v3796_v37, %v3797_v1  ;;  %v8363_v25 = vld [vmem:[%s10343_s15 + $0x8b0] sm:$0xf0]  ;;  %v9844_v37 = vld [vmem:[%s10343_s15 + $0x864] sm:$0xf]  ;;  %v2610_v50 = vadd.f32 %v11832_v57, %v2596_v54 }
 0x253   : > { %v8331_v1 = vld [vmem:[%s10343_s15 + $0x870] sm:$0xf0]  ;;  %v9940_v2 = vld [vmem:[%s10343_s15 + $0xb64] sm:$0xf] }
 0x254   : > { %4487 = vmatpush.bf16.msra.mxu2 %v8538_v31  ;;  %v8347_v31 = vld [vmem:[%s10343_s15 + $0x890] sm:$0xf0]  ;;  %v8334_v43 = vor.u32 %v9844_v37, %v8331_v1  ;;  %v9936_v26 = vld [vmem:[%s10343_s15 + $0xb44] sm:$0xf] }
 0x255   : > { %4501 = vmatpush.bf16.msra.mxu3 %v8666_v41  ;;  %v9880_v41 = vld [vmem:[%s10343_s15 + $0x984] sm:$0xf]  ;;  %v8587_v7 = vld [vmem:[%s10343_s15 + $0xa70] sm:$0xf0] }
 0x256   : > { %4459 = vmatpush.bf16.msra.mxu0 %v8282_v39  ;;  %4473 = vmatpush.bf16.msra.mxu1 %v8410_v29  ;;  %v8366_v39 = vor.u32 %v9852_v24, %v8363_v25  ;;  %v9848_v29 = vld [vmem:[%s10343_s15 + $0x884] sm:$0xf]  ;;  %v3443_v59 = vpop.f32.mrf.mxu0  ;;  %v8478_v63 = vor.u32 %v9880_v41, %v8475_v46  ;;  %v8590_v17 = vor.u32 %v9908_v61, %v8587_v7  ;;  %v8443_v32 = vld [vmem:[%s10343_s15 + $0x950] sm:$0xf0] }
 0x257   : > { %4488 = vmatmul.bf16.vlgmr.msra.gmra.mxu2 %v12032_v21  ;;  %v8350_v55 = vor.u32 %v9848_v29, %v8347_v31  ;;  %v8571_v6 = vld [vmem:[%s10343_s15 + $0xa50] sm:$0xf0]  ;;  %v9836_v31 = vld [vmem:[%s10343_s15 + $0x824] sm:$0xf] }
 0x258   : > { %4536 = vmatpush.bf16.msrb.mxu2 %v8654_v48  ;;  %4502 = vmatmul.bf16.vlgmr.msra.gmra.mxu3 %v12037_v33  ;;  %v3444_v48 = vadd.f32 %v3443_v59, %v11821_v8  ;;  %v3457_v14 = vpop.f32.mrf.mxu1  ;;  %v8699_v27 = vld [vmem:[%s10343_s15 + $0xb50] sm:$0xf0]  ;;  %v9900_v52 = vld [vmem:[%s10343_s15 + $0xa24] sm:$0xf] }
 0x259   : > { %4550 = vmatpush.bf16.msrb.mxu3 %v8782_v13  ;;  %4460 = vmatmul.bf16.vlgmr.msra.gmra.mxu0 %v12040_v18  ;;  %v8715_v13 = vld [vmem:[%s10343_s15 + $0xb70] sm:$0xf0]  ;;  %v8702_v46 = vor.u32 %v9936_v26, %v8699_v27  ;;  %v9932_v54 = vld [vmem:[%s10343_s15 + $0xb24] sm:$0xf] }
 0x25a   : > { %4508 = vmatpush.bf16.msrb.mxu0 %v8398_v45  ;;  %4522 = vmatpush.bf16.msrb.mxu1 %v8526_v60  ;;  %v8750_v45 = vor.u32 %v9948_v9, %v8747_v38  ;;  %v9876_v60 = vld [vmem:[%s10343_s15 + $0x964] sm:$0xf]  ;;  %v3458_v10 = vadd.f32 %v3457_v14, %v3444_v48  ;;  %v3471_v8 = vpop.f32.mrf.mxu2  ;;  %v8718_v24 = vor.u32 %v9940_v2, %v8715_v13  ;;  %v8299_v41 = vld [vmem:[%s10343_s15 + $0x830] sm:$0xf0] }
 0x25b   : > { %4474 = vmatmul.bf16.vlgmr.msra.gmra.mxu1 %v12043_v22  ;;  %v8462_v34 = vor.u32 %v9876_v60, %v8459_v56  ;;  %v3485_v57 = vpop.f32.mrf.mxu3  ;;  %v2624_v9 = vadd.f32 %v11844_v20, %v2610_v50  ;;  %v8427_v51 = vld [vmem:[%s10343_s15 + $0x930] sm:$0xf0]  ;;  %v9832_v37 = vld [vmem:[%s10343_s15 + $0x804] sm:$0xf] }
 0x25c   : > { %4537 = vmatpush.bf16.msrb.mxu2 %v8638_v19  ;;  %v9872_v19 = vld [vmem:[%s10343_s15 + $0x944] sm:$0xf]  ;;  %v3472_v25 = vadd.f32 %v3471_v8, %v3458_v10  ;;  %v8555_v53 = vld [vmem:[%s10343_s15 + $0xa30] sm:$0xf0]  ;;  %v9863_v8 = vld [vmem:[%s10343_s15 + $0x8f4] sm:$0xf0] }
 0x25d   : > { %4551 = vmatpush.bf16.msrb.mxu3 %v8766_v5  ;;  %v9904_v5 = vld [vmem:[%s10343_s15 + $0xa44] sm:$0xf]  ;;  %v8283_v1 = vld [vmem:[%s10343_s15 + $0x810] sm:$0xf0]  ;;  %v8558_v48 = vor.u32 %v9900_v52, %v8555_v53  ;;  %v8369_v53 = vld [vmem:[%s10343_s15 + $0x8a8] sm:$0xf] }
 0x25e   : > { %4509 = vmatpush.bf16.msrb.mxu0 %v8382_v35  ;;  %4523 = vmatpush.bf16.msrb.mxu1 %v8510_v12  ;;  %v9840_v35 = vld [vmem:[%s10343_s15 + $0x844] sm:$0xf]  ;;  %v8315_v12 = vld [vmem:[%s10343_s15 + $0x850] sm:$0xf0]  ;;  %v12086_v38 = vadd.f32 %v3485_v57, %v3472_v25  ;;  %v8574_v29 = vor.u32 %v9904_v5, %v8571_v6  ;;  %v9959_v5 = vld [vmem:[%s10343_s15 + $0xbf4] sm:$0xf0] }
 0x25f   : > { %v8411_v14 = vld [vmem:[%s10343_s15 + $0x910] sm:$0xf0]  ;;  %v9896_v56 = vld [vmem:[%s10343_s15 + $0xa04] sm:$0xf] }
 0x260   : > { %4538 = vmatpush.bf16.msrb.mxu2 %v8622_v28  ;;  %v8446_v28 = vor.u32 %v9872_v19, %v8443_v32  ;;  %v3459_v49 = vpop.f32.mrf.mxu1  ;;  %v8539_v13 = vld [vmem:[%s10343_s15 + $0xa10] sm:$0xf0]  ;;  %v9928_v50 = vld [vmem:[%s10343_s15 + $0xb04] sm:$0xf]  ;;  %v8657_v19 = vld [vmem:[%s10343_s15 + $0xae8] sm:$0xf] }
 0x261   : > { %4552 = vmatpush.bf16.msrb.mxu3 %v8750_v45  ;;  %v9868_v45 = vld [vmem:[%s10343_s15 + $0x924] sm:$0xf]  ;;  %v8667_v10 = vld [vmem:[%s10343_s15 + $0xb10] sm:$0xf0]  ;;  %v8542_v57 = vor.u32 %v9896_v56, %v8539_v13  ;;  %v8785_v32 = vld [vmem:[%s10343_s15 + $0xbe8] sm:$0xf] }
 0x262   : > { %4510 = vmatpush.bf16.msrb.mxu0 %v8366_v39  ;;  %4524 = vmatpush.bf16.msrb.mxu1 %v8494_v40  ;;  %v8318_v39 = vor.u32 %v9840_v35, %v8315_v12  ;;  %v3445_v40 = vpop.f32.mrf.mxu0  ;;  %v8430_v60 = vor.u32 %v9868_v45, %v8427_v51  ;;  %v8286_v35 = vor.u32 %v9832_v37, %v8283_v1  ;;  %v9895_v12 = vld [vmem:[%s10343_s15 + $0x9f4] sm:$0xf0]  ;;  %v8753_v1 = vld [vmem:[%s10343_s15 + $0xba8] sm:$0xf] }
 0x263   : > { %v3446_v20 = vadd.f32 %v3445_v40, %v2624_v9  ;;  %v3487_v2 = vpop.f32.mrf.mxu3  ;;  %v8670_v6 = vor.u32 %v9928_v50, %v8667_v10  ;;  %v9859_v40 = vld [vmem:[%s10343_s15 + $0x8d4] sm:$0xf0]  ;;  %v8353_v56 = vld [vmem:[%s10343_s15 + $0x888] sm:$0xf] }
 0x264   : > { %4539 = vmatpush.bf16.msrb.mxu2 %v8606_v0  ;;  %v3473_v0 = vpop.f32.mrf.mxu2  ;;  %v9923_v45 = vld [vmem:[%s10343_s15 + $0xad4] sm:$0xf0]  ;;  %v8609_v50 = vld [vmem:[%s10343_s15 + $0xa88] sm:$0xf] }
 0x265   : > { %4553 = vmatpush.bf16.msrb.mxu3 %v8734_v4  ;;  %v3460_v59 = vadd.f32 %v3459_v49, %v3446_v20  ;;  %v9864_v4 = vld [vmem:[%s10343_s15 + $0x904] sm:$0xf]  ;;  %v8769_v20 = vld [vmem:[%s10343_s15 + $0xbc8] sm:$0xf]  ;;  %v9919_v37 = vld [vmem:[%s10343_s15 + $0xab4] sm:$0xf0] }
 0x266   : > { %4511 = vmatpush.bf16.msrb.mxu0 %v8350_v55  ;;  %4525 = vmatpush.bf16.msrb.mxu1 %v8478_v63  ;;  %v8683_v55 = vld [vmem:[%s10343_s15 + $0xb30] sm:$0xf0]  ;;  %v8302_v63 = vor.u32 %v9836_v31, %v8299_v41  ;;  %v8414_v25 = vor.u32 %v9864_v4, %v8411_v14  ;;  %v9891_v31 = vld [vmem:[%s10343_s15 + $0x9d4] sm:$0xf0]  ;;  %v8641_v41 = vld [vmem:[%s10343_s15 + $0xac8] sm:$0xf] }
 0x267   : > { %v8686_v61 = vor.u32 %v9932_v54, %v8683_v55  ;;  %v3474_v7 = vadd.f32 %v3473_v0, %v3460_v59  ;;  %v8642_v52 = vor.u32 %v9923_v45, %v8641_v41  ;;  %v9855_v54 = vld [vmem:[%s10343_s15 + $0x8b4] sm:$0xf0]  ;;  %v8497_v55 = vld [vmem:[%s10343_s15 + $0x9a8] sm:$0xf] }
 0x268   : > { %4540 = vmatpush.bf16.msrb.mxu2 %v8590_v17  ;;  %v8625_v0 = vld [vmem:[%s10343_s15 + $0xaa8] sm:$0xf]  ;;  %v9883_v13 = vld [vmem:[%s10343_s15 + $0x994] sm:$0xf0] }
 0x269   : > { %4554 = vmatpush.bf16.msrb.mxu3 %v8718_v24  ;;  %v12107_v17 = vadd.f32 %v3487_v2, %v3474_v7  ;;  %v9927_v24 = vld [vmem:[%s10343_s15 + $0xaf4] sm:$0xf0]  ;;  %v8626_v14 = vor.u32 %v9919_v37, %v8625_v0  ;;  %v8481_v7 = vld [vmem:[%s10343_s15 + $0x988] sm:$0xf] }
 0x26a   : > { %4512 = vmatpush.bf16.msrb.mxu0 %v8334_v43  ;;  %4526 = vmatpush.bf16.msrb.mxu1 %v8462_v34  ;;  %v8401_v43 = vld [vmem:[%s10343_s15 + $0x8e8] sm:$0xf]  ;;  %v8658_v9 = vor.u32 %v9927_v24, %v8657_v19  ;;  %v9915_v10 = vld [vmem:[%s10343_s15 + $0xa94] sm:$0xf0]  ;;  %v8482_v24 = vor.u32 %v9883_v13, %v8481_v7 }
 0x26b   : > { %v8529_v34 = vld [vmem:[%s10343_s15 + $0x9e8] sm:$0xf]  ;;  %v8402_v26 = vor.u32 %v9863_v8, %v8401_v43  ;;  %v2652_v43 = vadd.f32 %v11881_v30, %v11879_v36 }
 0x26c   : > { %4541 = vmatpush.bf16.msrb.mxu2 %v8574_v29  ;;  %v8530_v27 = vor.u32 %v9895_v12, %v8529_v34  ;;  %v8786_v29 = vor.u32 %v9959_v5, %v8785_v32  ;;  %v8737_v8 = vld [vmem:[%s10343_s15 + $0xb88] sm:$0xf]  ;;  %v9947_v34 = vld [vmem:[%s10343_s15 + $0xb94] sm:$0xf0] }
 0x26d   : > { %4555 = vmatpush.bf16.msrb.mxu3 %v8702_v46  ;;  %v9955_v46 = vld [vmem:[%s10343_s15 + $0xbd4] sm:$0xf0]  ;;  %v8337_v32 = vld [vmem:[%s10343_s15 + $0x868] sm:$0xf]  ;;  %v8738_v30 = vor.u32 %v9947_v34, %v8737_v8 }
 0x26e   : > { %4513 = vmatpush.bf16.msrb.mxu0 %v8318_v39  ;;  %4527 = vmatpush.bf16.msrb.mxu1 %v8446_v28  ;;  %v8385_v39 = vld [vmem:[%s10343_s15 + $0x8c8] sm:$0xf]  ;;  %v8770_v59 = vor.u32 %v9955_v46, %v8769_v20  ;;  %v9847_v5 = vld [vmem:[%s10343_s15 + $0x874] sm:$0xf0] }
 0x26f   : > { %v8513_v28 = vld [vmem:[%s10343_s15 + $0x9c8] sm:$0xf]  ;;  %v8386_v49 = vor.u32 %v9859_v40, %v8385_v39  ;;  %v9843_v20 = vld [vmem:[%s10343_s15 + $0x854] sm:$0xf0] }
 0x270   : > { %4542 = vmatpush.bf16.msrb.mxu2 %v8558_v48  ;;  %v8514_v51 = vor.u32 %v9891_v31, %v8513_v28  ;;  %v8370_v48 = vor.u32 %v9855_v54, %v8369_v53  ;;  %v8465_v36 = vld [vmem:[%s10343_s15 + $0x968] sm:$0xf]  ;;  %v8338_v28 = vor.u32 %v9847_v5, %v8337_v32  ;;  %v9907_v54 = vld [vmem:[%s10343_s15 + $0xa54] sm:$0xf0] }
 0x271   : > { %4556 = vmatpush.bf16.msrb.mxu3 %v8686_v61  ;;  %v9851_v61 = vld [vmem:[%s10343_s15 + $0x894] sm:$0xf0]  ;;  %v8721_v40 = vld [vmem:[%s10343_s15 + $0xb68] sm:$0xf] }
 0x272   : > { %4514 = vmatpush.bf16.msrb.mxu0 %v8302_v63  ;;  %4528 = vmatpush.bf16.msrb.mxu1 %v8430_v60  ;;  %v9887_v63 = vld [vmem:[%s10343_s15 + $0x9b4] sm:$0xf0]  ;;  %v8354_v12 = vor.u32 %v9851_v61, %v8353_v56  ;;  %v8321_v45 = vld [vmem:[%s10343_s15 + $0x848] sm:$0xf] }
 0x273   : > { %v9951_v60 = vld [vmem:[%s10343_s15 + $0xbb4] sm:$0xf0]  ;;  %v8498_v4 = vor.u32 %v9887_v63, %v8497_v55  ;;  %v8449_v46 = vld [vmem:[%s10343_s15 + $0x948] sm:$0xf] }
 0x274   : > { %4543 = vmatpush.bf16.msrb.mxu2 %v8542_v57  ;;  %v8754_v2 = vor.u32 %v9951_v60, %v8753_v1  ;;  %v8577_v53 = vld [vmem:[%s10343_s15 + $0xa48] sm:$0xf]  ;;  %v9939_v63 = vld [vmem:[%s10343_s15 + $0xb54] sm:$0xf0]  ;;  %v8322_v1 = vor.u32 %v9843_v20, %v8321_v45  ;;  %v8659_v45 = vld [vmem:[%s10343_s15 + $0xaf8] sm:$0xf0] }
 0x275   : > { %4557 = vmatpush.bf16.msrb.mxu3 %v8670_v6  ;;  %v9879_v6 = vld [vmem:[%s10343_s15 + $0x974] sm:$0xf0]  ;;  %v8433_v61 = vld [vmem:[%s10343_s15 + $0x928] sm:$0xf] }
 0x276   : > { %4515 = vmatpush.bf16.msrb.mxu0 %v8286_v35  ;;  %4529 = vmatpush.bf16.msrb.mxu1 %v8414_v25  ;;  %v3499_v35 = vpop.f32.mrf.mxu0  ;;  %v8610_v25 = vor.u32 %v9915_v10, %v8609_v50  ;;  %v9839_v56 = vld [vmem:[%s10343_s15 + $0x834] sm:$0xf0]  ;;  %v8561_v13 = vld [vmem:[%s10343_s15 + $0xa28] sm:$0xf] }
 0x277   : > { %4544 = vmatmul.bf16.vlgmr.msrb.gmra.mxu2 %v12032_v21  ;;  %v3500_v19 = vadd.f32 %v3499_v35, %v11868_v23  ;;  %v9943_v23 = vld [vmem:[%s10343_s15 + $0xb74] sm:$0xf0]  ;;  %v8289_v35 = vld [vmem:[%s10343_s15 + $0x808] sm:$0xf] }
 0x278   : > { %4592 = vmatpush.bf16.msra.mxu2 %v8658_v9  ;;  %4558 = vmatmul.bf16.vlgmr.msrb.gmra.mxu3 %v12037_v33  ;;  %v3513_v57 = vpop.f32.mrf.mxu1  ;;  %v2666_v9 = vadd.f32 %v11889_v42, %v2652_v43  ;;  %v8722_v42 = vor.u32 %v9943_v23, %v8721_v40  ;;  %v9903_v50 = vld [vmem:[%s10343_s15 + $0xa34] sm:$0xf0]  ;;  %v8689_v43 = vld [vmem:[%s10343_s15 + $0xb28] sm:$0xf]  ;;  %v8403_v40 = vld [vmem:[%s10343_s15 + $0x8f8] sm:$0xf0] }
 0x279   : > { %4606 = vmatpush.bf16.msra.mxu3 %v8786_v29  ;;  %4516 = vmatmul.bf16.vlgmr.msrb.gmra.mxu0 %v12040_v18  ;;  %v3514_v39 = vadd.f32 %v3513_v57, %v3500_v19  ;;  %v8466_v29 = vor.u32 %v9879_v6, %v8465_v36  ;;  %v9935_v8 = vld [vmem:[%s10343_s15 + $0xb34] sm:$0xf0]  ;;  %v8417_v57 = vld [vmem:[%s10343_s15 + $0x908] sm:$0xf]  ;;  %v9893_v23 = vld [vmem:[%s10343_s15 + $0x9ec] sm:$0xf] }
 0x27a   : > { %4564 = vmatpush.bf16.msra.mxu0 %v8402_v26  ;;  %4578 = vmatpush.bf16.msra.mxu1 %v8530_v27  ;;  %v8593_v26 = vld [vmem:[%s10343_s15 + $0xa68] sm:$0xf]  ;;  %v9911_v27 = vld [vmem:[%s10343_s15 + $0xa74] sm:$0xf0]  ;;  %v3527_v41 = vpop.f32.mrf.mxu2  ;;  %v2680_v55 = vadd.f32 %v11899_v62, %v2666_v9  ;;  %v8690_v36 = vor.u32 %v9935_v8, %v8689_v43  ;;  %v9917_v43 = vld [vmem:[%s10343_s15 + $0xaac] sm:$0xf] }
 0x27b   : > { %4530 = vmatmul.bf16.vlgmr.msrb.gmra.mxu1 %v12043_v22  ;;  %v8594_v31 = vor.u32 %v9911_v27, %v8593_v26  ;;  %v9867_v32 = vld [vmem:[%s10343_s15 + $0x914] sm:$0xf0]  ;;  %v8545_v5 = vld [vmem:[%s10343_s15 + $0xa08] sm:$0xf]  ;;  %v8627_v8 = vld [vmem:[%s10343_s15 + $0xab8] sm:$0xf0] }
 0x27c   : > { %4593 = vmatpush.bf16.msra.mxu2 %v8642_v52  ;;  %v9875_v52 = vld [vmem:[%s10343_s15 + $0x954] sm:$0xf0]  ;;  %v8673_v27 = vld [vmem:[%s10343_s15 + $0xb08] sm:$0xf]  ;;  %v8418_v20 = vor.u32 %v9867_v32, %v8417_v57  ;;  %v8355_v57 = vld [vmem:[%s10343_s15 + $0x898] sm:$0xf0] }
 0x27d   : > { %4607 = vmatpush.bf16.msra.mxu3 %v8770_v59  ;;  %v8705_v59 = vld [vmem:[%s10343_s15 + $0xb48] sm:$0xf]  ;;  %v9899_v26 = vld [vmem:[%s10343_s15 + $0xa14] sm:$0xf0]  ;;  %v9881_v32 = vld [vmem:[%s10343_s15 + $0x98c] sm:$0xf] }
 0x27e   : > { %4565 = vmatpush.bf16.msra.mxu0 %v8386_v49  ;;  %4579 = vmatpush.bf16.msra.mxu1 %v8514_v51  ;;  %v3528_v49 = vadd.f32 %v3527_v41, %v3514_v39  ;;  %v3541_v51 = vpop.f32.mrf.mxu3  ;;  %v3501_v0 = vpop.f32.mrf.mxu0  ;;  %v8706_v7 = vor.u32 %v9939_v63, %v8705_v59  ;;  %v9931_v9 = vld [vmem:[%s10343_s15 + $0xb14] sm:$0xf0]  ;;  %v9861_v39 = vld [vmem:[%s10343_s15 + $0x8ec] sm:$0xf]  ;;  %v8387_v59 = vld [vmem:[%s10343_s15 + $0x8d8] sm:$0xf0] }
 0x27f   : > { %v3502_v60 = vadd.f32 %v3501_v0, %v2680_v55  ;;  %v9925_v41 = vld [vmem:[%s10343_s15 + $0xaec] sm:$0xf] }
 0x280   : > { %4594 = vmatpush.bf16.msra.mxu2 %v8626_v14  ;;  %v12163_v37 = vadd.f32 %v3541_v51, %v3528_v49  ;;  %v3515_v62 = vpop.f32.mrf.mxu1  ;;  %v8305_v14 = vld [vmem:[%s10343_s15 + $0x828] sm:$0xf]  ;;  %v8787_v49 = vld [vmem:[%s10343_s15 + $0xbf8] sm:$0xf0]  ;;  %v8674_v51 = vor.u32 %v9931_v9, %v8673_v27  ;;  %v9857_v55 = vld [vmem:[%s10343_s15 + $0x8cc] sm:$0xf] }
 0x281   : > { %4608 = vmatpush.bf16.msra.mxu3 %v8754_v2  ;;  %v9871_v2 = vld [vmem:[%s10343_s15 + $0x934] sm:$0xf0]  ;;  %v3516_v10 = vadd.f32 %v3515_v62, %v3502_v60  ;;  %v8306_v34 = vor.u32 %v9839_v56, %v8305_v14  ;;  %v9889_v63 = vld [vmem:[%s10343_s15 + $0x9cc] sm:$0xf]  ;;  %v8771_v62 = vld [vmem:[%s10343_s15 + $0xbd8] sm:$0xf0]  ;;  %v8390_v14 = vor.u32 %v9857_v55, %v8387_v59 }
 0x282   : > { %4566 = vmatpush.bf16.msra.mxu0 %v8370_v48  ;;  %4580 = vmatpush.bf16.msra.mxu1 %v8498_v4  ;;  %v8450_v48 = vor.u32 %v9875_v52, %v8449_v46  ;;  %v8578_v4 = vor.u32 %v9907_v54, %v8577_v53  ;;  %v8434_v19 = vor.u32 %v9871_v2, %v8433_v61  ;;  %v9921_v60 = vld [vmem:[%s10343_s15 + $0xacc] sm:$0xf]  ;;  %v8371_v2 = vld [vmem:[%s10343_s15 + $0x8b8] sm:$0xf0] }
 0x283   : > { %v8546_v46 = vor.u32 %v9899_v26, %v8545_v5  ;;  %v8406_v52 = vor.u32 %v9861_v39, %v8403_v40  ;;  %v8662_v54 = vor.u32 %v9925_v41, %v8659_v45  ;;  %v2708_v5 = vadd.f32 %v11958_v47, %v11952_v44  ;;  %v8611_v26 = vld [vmem:[%s10343_s15 + $0xa98] sm:$0xf0]  ;;  %v9945_v9 = vld [vmem:[%s10343_s15 + $0xb8c] sm:$0xf] }
 0x284   : > { %4595 = vmatpush.bf16.msra.mxu2 %v8610_v25  ;;  %v3529_v25 = vpop.f32.mrf.mxu2  ;;  %v8739_v39 = vld [vmem:[%s10343_s15 + $0xb98] sm:$0xf0]  ;;  %v9877_v45 = vld [vmem:[%s10343_s15 + $0x96c] sm:$0xf] }
 0x285   : > { %4609 = vmatpush.bf16.msra.mxu3 %v8738_v30  ;;  %v3530_v30 = vadd.f32 %v3529_v25, %v3516_v10  ;;  %v8499_v10 = vld [vmem:[%s10343_s15 + $0x9b8] sm:$0xf0]  ;;  %v9849_v25 = vld [vmem:[%s10343_s15 + $0x88c] sm:$0xf] }
 0x286   : > { %4567 = vmatpush.bf16.msra.mxu0 %v8354_v12  ;;  %4581 = vmatpush.bf16.msra.mxu1 %v8482_v24  ;;  %v9835_v12 = vld [vmem:[%s10343_s15 + $0x814] sm:$0xf0]  ;;  %v8562_v24 = vor.u32 %v9903_v50, %v8561_v13  ;;  %v3543_v6 = vpop.f32.mrf.mxu3  ;;  %v9885_v13 = vld [vmem:[%s10343_s15 + $0x9ac] sm:$0xf]  ;;  %v8339_v41 = vld [vmem:[%s10343_s15 + $0x878] sm:$0xf0] }
 0x287   : > { %v9841_v59 = vld [vmem:[%s10343_s15 + $0x84c] sm:$0xf] }
 0x288   : > { %4596 = vmatpush.bf16.msra.mxu2 %v8594_v31  ;;  %v8531_v31 = vld [vmem:[%s10343_s15 + $0x9f8] sm:$0xf0] }
 0x289   : > { %4610 = vmatpush.bf16.msra.mxu3 %v8722_v42  ;;  %v9957_v42 = vld [vmem:[%s10343_s15 + $0xbec] sm:$0xf]  ;;  %v8534_v53 = vor.u32 %v9893_v23, %v8531_v31  ;;  %v8358_v23 = vor.u32 %v9849_v25, %v8355_v57  ;;  %v8435_v57 = vld [vmem:[%s10343_s15 + $0x938] sm:$0xf0] }
 0x28a   : > { %4568 = vmatpush.bf16.msra.mxu0 %v8338_v28  ;;  %4582 = vmatpush.bf16.msra.mxu1 %v8466_v29  ;;  %v12184_v28 = vadd.f32 %v3543_v6, %v3530_v30  ;;  %v8290_v29 = vor.u32 %v9835_v12, %v8289_v35  ;;  %v8790_v0 = vor.u32 %v9957_v42, %v8787_v49  ;;  %v8755_v35 = vld [vmem:[%s10343_s15 + $0xbb8] sm:$0xf0]  ;;  %v9913_v6 = vld [vmem:[%s10343_s15 + $0xa8c] sm:$0xf] }
 0x28b   : > { %v8483_v30 = vld [vmem:[%s10343_s15 + $0x998] sm:$0xf0]  ;;  %v9845_v31 = vld [vmem:[%s10343_s15 + $0x86c] sm:$0xf] }
 0x28c   : > { %4597 = vmatpush.bf16.msra.mxu2 %v8578_v4  ;;  %v9953_v4 = vld [vmem:[%s10343_s15 + $0xbcc] sm:$0xf]  ;;  %v8486_v47 = vor.u32 %v9881_v32, %v8483_v30  ;;  %v8467_v42 = vld [vmem:[%s10343_s15 + $0x978] sm:$0xf0] }
 0x28d   : > { %4611 = vmatpush.bf16.msra.mxu3 %v8706_v7  ;;  %v9853_v7 = vld [vmem:[%s10343_s15 + $0x8ac] sm:$0xf]  ;;  %v8774_v50 = vor.u32 %v9953_v4, %v8771_v62  ;;  %v8470_v55 = vor.u32 %v9877_v45, %v8467_v42  ;;  %v8451_v4 = vld [vmem:[%s10343_s15 + $0x958] sm:$0xf0] }
 0x28e   : > { %4569 = vmatpush.bf16.msra.mxu0 %v8322_v1  ;;  %4583 = vmatpush.bf16.msra.mxu1 %v8450_v48  ;;  %v8515_v1 = vld [vmem:[%s10343_s15 + $0x9d8] sm:$0xf0]  ;;  %v8374_v12 = vor.u32 %v9853_v7, %v8371_v2  ;;  %v9909_v49 = vld [vmem:[%s10343_s15 + $0xa6c] sm:$0xf] }
 0x28f   : > { %v8643_v48 = vld [vmem:[%s10343_s15 + $0xad8] sm:$0xf0]  ;;  %v8518_v56 = vor.u32 %v9889_v63, %v8515_v1  ;;  %v9905_v62 = vld [vmem:[%s10343_s15 + $0xa4c] sm:$0xf] }
 0x290   : > { %4598 = vmatpush.bf16.msra.mxu2 %v8562_v24  ;;  %v8646_v61 = vor.u32 %v9921_v60, %v8643_v48  ;;  %v8630_v24 = vor.u32 %v9917_v43, %v8627_v8  ;;  %v8323_v63 = vld [vmem:[%s10343_s15 + $0x858] sm:$0xf0]  ;;  %v9937_v2 = vld [vmem:[%s10343_s15 + $0xb4c] sm:$0xf] }
 0x291   : > { %4612 = vmatpush.bf16.msra.mxu3 %v8690_v36  ;;  %v9901_v32 = vld [vmem:[%s10343_s15 + $0xa2c] sm:$0xf]  ;;  %v8691_v30 = vld [vmem:[%s10343_s15 + $0xb38] sm:$0xf0] }
 0x292   : > { %4570 = vmatpush.bf16.msra.mxu0 %v8306_v34  ;;  %4584 = vmatpush.bf16.msra.mxu1 %v8434_v19  ;;  %v9949_v34 = vld [vmem:[%s10343_s15 + $0xbac] sm:$0xf]  ;;  %v8502_v19 = vor.u32 %v9885_v13, %v8499_v10  ;;  %v8707_v13 = vld [vmem:[%s10343_s15 + $0xb58] sm:$0xf0] }
 0x293   : > { %v8758_v36 = vor.u32 %v9949_v34, %v8755_v35  ;;  %v9837_v35 = vld [vmem:[%s10343_s15 + $0x82c] sm:$0xf] }
 0x294   : > { %4599 = vmatpush.bf16.msra.mxu2 %v8546_v46  ;;  %v8742_v46 = vor.u32 %v9945_v9, %v8739_v39  ;;  %v9833_v9 = vld [vmem:[%s10343_s15 + $0x80c] sm:$0xf]  ;;  %v8291_v39 = vld [vmem:[%s10343_s15 + $0x818] sm:$0xf0] }
 0x295   : > { %4613 = vmatpush.bf16.msra.mxu3 %v8674_v51  ;;  %v8595_v51 = vld [vmem:[%s10343_s15 + $0xa78] sm:$0xf0] }
 0x296   : > { %4571 = vmatpush.bf16.msra.mxu0 %v8290_v29  ;;  %4585 = vmatpush.bf16.msra.mxu1 %v8418_v20  ;;  %v3555_v27 = vpop.f32.mrf.mxu0  ;;  %v8614_v29 = vor.u32 %v9913_v6, %v8611_v26  ;;  %v2722_v20 = vadd.f32 %v11964_v58, %v2708_v5  ;;  %v8598_v58 = vor.u32 %v9909_v49, %v8595_v51  ;;  %v8563_v5 = vld [vmem:[%s10343_s15 + $0xa38] sm:$0xf0] }
 0x297   : > { %4600 = vmatmul.bf16.vlgmr.msra.gmra.mxu2 %v12032_v21  ;;  %v3556_v40 = vadd.f32 %v3555_v27, %v11919_v16  ;;  %v8566_v27 = vor.u32 %v9901_v32, %v8563_v5 }
 0x298   : > { %4648 = vmatpush.bf16.msrb.mxu2 %v8662_v54  ;;  %4614 = vmatmul.bf16.vlgmr.msra.gmra.mxu3 %v12037_v33  ;;  %v3569_v44 = vpop.f32.mrf.mxu1  ;;  %v8342_v54 = vor.u32 %v9845_v31, %v8339_v41  ;;  %v2736_v1 = vadd.f32 %v11974_v15, %v2722_v20  ;;  %v8326_v15 = vor.u32 %v9841_v59, %v8323_v63  ;;  %v8547_v31 = vld [vmem:[%s10343_s15 + $0xa18] sm:$0xf0]  ;;  %v9929_v20 = vld [vmem:[%s10343_s15 + $0xb0c] sm:$0xf] }
 0x299   : > { %4662 = vmatpush.bf16.msrb.mxu3 %v8790_v0  ;;  %4572 = vmatmul.bf16.vlgmr.msra.gmra.mxu0 %v12040_v18  ;;  %v3570_v16 = vadd.f32 %v3569_v44, %v3556_v40  ;;  %v9873_v0 = vld [vmem:[%s10343_s15 + $0x94c] sm:$0xf] }
 0x29a   : > { %4620 = vmatpush.bf16.msrb.mxu0 %v8406_v52  ;;  %4634 = vmatpush.bf16.msrb.mxu1 %v8534_v53  ;;  %v9941_v52 = vld [vmem:[%s10343_s15 + $0xb6c] sm:$0xf]  ;;  %v8723_v53 = vld [vmem:[%s10343_s15 + $0xb78] sm:$0xf0]  ;;  %v3583_v48 = vpop.f32.mrf.mxu2  ;;  %v8454_v8 = vor.u32 %v9873_v0, %v8451_v4 }
 0x29b   : > { %4586 = vmatmul.bf16.vlgmr.msra.gmra.mxu1 %v12043_v22  ;;  %v8726_v60 = vor.u32 %v9941_v52, %v8723_v53  ;;  %v3597_v7 = vpop.f32.mrf.mxu3  ;;  %v9865_v40 = vld [vmem:[%s10343_s15 + $0x90c] sm:$0xf] }
 0x29c   : > { %4649 = vmatpush.bf16.msrb.mxu2 %v8646_v61 }
 0x29d   : > { %4663 = vmatpush.bf16.msrb.mxu3 %v8774_v50 }
 0x29e   : > { %4621 = vmatpush.bf16.msrb.mxu0 %v8390_v14  ;;  %4635 = vmatpush.bf16.msrb.mxu1 %v8518_v56  ;;  %v8579_v14 = vld [vmem:[%s10343_s15 + $0xa58] sm:$0xf0]  ;;  %v3584_v56 = vadd.f32 %v3583_v48, %v3570_v16  ;;  %v3557_v61 = vpop.f32.mrf.mxu0  ;;  %v8294_v16 = vor.u32 %v9833_v9, %v8291_v39  ;;  %v9974_v39 = vld [vmem:[%s10353_s19 + $0x70] sm:$0xff] }
 0x29f   : > { %v3558_v50 = vadd.f32 %v3557_v61, %v2736_v1  ;;  %v8582_v34 = vor.u32 %v9905_v62, %v8579_v14  ;;  %v9966_v14 = vld [vmem:[%s10353_s19 + $0x30] sm:$0xff]  ;;  %v9963_v61 = vld [vmem:[%s10353_s19 + $0x18] sm:$0xff] }
 0x2a0   : > { %4650 = vmatpush.bf16.msrb.mxu2 %v8630_v24  ;;  %v3571_v10 = vpop.f32.mrf.mxu1  ;;  %v12240_v43 = vadd.f32 %v3597_v7, %v3584_v56  ;;  %v8710_v24 = vor.u32 %v9937_v2, %v8707_v13  ;;  %v9965_v56 = vld [vmem:[%s10353_s19 + $0x28] sm:$0xff] }
 0x2a1   : > { %4664 = vmatpush.bf16.msrb.mxu3 %v8758_v36  ;;  %v3572_v25 = vadd.f32 %v3571_v10, %v3558_v50  ;;  %v9933_v36 = vld [vmem:[%s10343_s15 + $0xb2c] sm:$0xf]  ;;  %v9962_v50 = vld [vmem:[%s10353_s19 + $0x10] sm:$0xff] }
 0x2a2   : > { %4622 = vmatpush.bf16.msrb.mxu0 %v8374_v12  ;;  %4636 = vmatpush.bf16.msrb.mxu1 %v8502_v19  ;;  %v8307_v12 = vld [vmem:[%s10343_s15 + $0x838] sm:$0xf0]  ;;  %v9869_v19 = vld [vmem:[%s10343_s15 + $0x92c] sm:$0xf]  ;;  %v3585_v44 = vpop.f32.mrf.mxu2 }
 0x2a3   : > { %v8310_v6 = vor.u32 %v9837_v35, %v8307_v12  ;;  %v8438_v26 = vor.u32 %v9869_v19, %v8435_v57  ;;  %v3586_v41 = vadd.f32 %v3585_v44, %v3572_v25  ;;  %v3599_v45 = vpop.f32.mrf.mxu3  ;;  %v12278_v19 = vld [vmem:[%s10348_s22] sm:$0xf]  ;;  %v9973_v44 = vld [vmem:[%s10353_s19 + $0x68] sm:$0xff] }
 0x2a4   : > { %4651 = vmatpush.bf16.msrb.mxu2 %v8614_v29  ;;  %v9897_v29 = vld [vmem:[%s10343_s15 + $0xa0c] sm:$0xf]  ;;  %v9960_v57 = vld [vmem:[%s10353_s19] sm:$0xff]  ;;  %v4686_v5 = vperm.slane %v12278_v19, 0 }
 0x2a5   : > { %4665 = vmatpush.bf16.msrb.mxu3 %v8742_v46  ;;  %v8675_v46 = vld [vmem:[%s10343_s15 + $0xb18] sm:$0xf0]  ;;  %v12258_v42 = vadd.f32 %v3599_v45, %v3586_v41  ;;  %v8550_v51 = vor.u32 %v9897_v29, %v8547_v31  ;;  %v12298_v41 = vld [vmem:[#allocation2 + $0x8] sm:$0xff]  ;;  %v9972_v45 = vld [vmem:[%s10353_s19 + $0x60] sm:$0xff] }
 0x2a6   : > { %4623 = vmatpush.bf16.msrb.mxu0 %v8358_v23  ;;  %4637 = vmatpush.bf16.msrb.mxu1 %v8486_v47  ;;  %v8694_v23 = vor.u32 %v9933_v36, %v8691_v30  ;;  %v8419_v47 = vld [vmem:[%s10343_s15 + $0x918] sm:$0xf0]  ;;  %v8678_v52 = vor.u32 %v9929_v20, %v8675_v46 }
 0x2a7   : > { %v8422_v49 = vor.u32 %v9865_v40, %v8419_v47  ;;  %v9975_v36 = vld [vmem:[%s10353_s19 + $0x78] sm:$0xff] }
 0x2a8   : > { %4652 = vmatpush.bf16.msrb.mxu2 %v8598_v58  ;;  %v12293_v29 = vld [vmem:[#allocation2 + $0x30] sm:$0xff] }
 0x2a9   : > { %4666 = vmatpush.bf16.msrb.mxu3 %v8726_v60 }
 0x2aa   : > { %4624 = vmatpush.bf16.msrb.mxu0 %v8342_v54  ;;  %4638 = vmatpush.bf16.msrb.mxu1 %v8470_v55 }
 0x2ac   : > { %4653 = vmatpush.bf16.msrb.mxu2 %v8582_v34  ;;  %v9961_v34 = vld [vmem:[%s10353_s19 + $0x8] sm:$0xff] }
 0x2ad   : > { %4667 = vmatpush.bf16.msrb.mxu3 %v8710_v24 }
 0x2ae   : > { %4625 = vmatpush.bf16.msrb.mxu0 %v8326_v15  ;;  %4639 = vmatpush.bf16.msrb.mxu1 %v8454_v8 }
 0x2b0   : > { %4654 = vmatpush.bf16.msrb.mxu2 %v8566_v27 }
 0x2b1   : > { %4668 = vmatpush.bf16.msrb.mxu3 %v8694_v23 }
 0x2b2   : > { %4626 = vmatpush.bf16.msrb.mxu0 %v8310_v6  ;;  %4640 = vmatpush.bf16.msrb.mxu1 %v8438_v26 }
 0x2b4   : > { %4655 = vmatpush.bf16.msrb.mxu2 %v8550_v51 }
 0x2b5   : > { %4669 = vmatpush.bf16.msrb.mxu3 %v8678_v52 }
 0x2b6   : > { %4627 = vmatpush.bf16.msrb.mxu0 %v8294_v16  ;;  %4641 = vmatpush.bf16.msrb.mxu1 %v8422_v49  ;;  %v3611_v53 = vpop.f32.mrf.mxu0  ;;  %v9971_v16 = vld [vmem:[%s10353_s19 + $0x58] sm:$0xff] }
 0x2b7   : > { %4656 = vmatmul.bf16.vlgmr.msrb.gmra.mxu2 %v12032_v21  ;;  %v3612_v54 = vadd.f32 %v3611_v53, %v11998_v11 }
 0x2b8   : > { %4670 = vmatmul.bf16.vlgmr.msrb.gmra.mxu3 %v12037_v33  ;;  %v3625_v55 = vpop.f32.mrf.mxu1  ;;  %v9967_v33 = vld [vmem:[%s10353_s19 + $0x38] sm:$0xff] }
 0x2b9   : > { %4628 = vmatmul.bf16.vlgmr.msrb.gmra.mxu0 %v12040_v18  ;;  %4642 = vmatmul.bf16.vlgmr.msrb.gmra.mxu1 %v12043_v22  ;;  %v3626_v58 = vadd.f32 %v3625_v55, %v3612_v54  ;;  %v9970_v55 = vld [vmem:[%s10353_s19 + $0x50] sm:$0xff] }
 0x2ba   : > { %v3639_v59 = vpop.f32.mrf.mxu2  ;;  %5010 = vmatpush.bf16.msra.mxu0 %v9967_v33  ;;  %5023 = vmatpush.bf16.msra.mxu1 %v9975_v36 }
 0x2bb   : > { %v3640_v63 = vadd.f32 %v3639_v59, %v3626_v58  ;;  %v3653_v1 = vpop.f32.mrf.mxu3 }
 0x2bd   : > { %v12266_v60 = vadd.f32 %v3653_v1, %v3640_v63 }
 0x2be   : > { %v3613_v0 = vpop.f32.mrf.mxu0  ;;  %5011 = vmatpush.bf16.msra.mxu0 %v9966_v14  ;;  %5024 = vmatpush.bf16.msra.mxu1 %v9974_v39  ;;  %v9968_v14 = vld [vmem:[%s10353_s19 + $0x40] sm:$0xff] }
 0x2bf   : > { %v3614_v18 = vadd.f32 %v3613_v0, %v12022_v3  ;;  %v9964_v3 = vld [vmem:[%s10353_s19 + $0x20] sm:$0xff] }
 0x2c0   : > { %v3627_v22 = vpop.f32.mrf.mxu1 }
 0x2c1   : > { %v3628_v21 = vadd.f32 %v3627_v22, %v3614_v18  ;;  %v9969_v18 = vld [vmem:[%s10353_s19 + $0x48] sm:$0xff] }
 0x2c2   : > { %v3641_v48 = vpop.f32.mrf.mxu2  ;;  %5012 = vmatpush.bf16.msra.mxu0 %v9965_v56  ;;  %5025 = vmatpush.bf16.msra.mxu1 %v9973_v44  ;;  %v9983_v56 = vld [vmem:[%s10353_s19 + $0xb8] sm:$0xff] }
 0x2c3   : > { %v3642_v11 = vadd.f32 %v3641_v48, %v3628_v21  ;;  %v3655_v4 = vpop.f32.mrf.mxu3  ;;  %5036 = vmatpush.bf16.msra.mxu2 %v9983_v56  ;;  %v9989_v56 = vld [vmem:[%s10353_s19 + $0xe8] sm:$0xff] }
 0x2c5   : > { %v12269_v62 = vadd.f32 %v3655_v4, %v3642_v11 }
 0x2c6   : > { %5013 = vmatpush.bf16.msra.mxu0 %v9964_v3  ;;  %5026 = vmatpush.bf16.msra.mxu1 %v9972_v45 }
 0x2ca   : > { %5014 = vmatpush.bf16.msra.mxu0 %v9963_v61  ;;  %5027 = vmatpush.bf16.msra.mxu1 %v9971_v16  ;;  %v4687_v61 = vperm.slane %v12278_v19, 1 }
 0x2ce   : > { %5015 = vmatpush.bf16.msra.mxu0 %v9962_v50  ;;  %5028 = vmatpush.bf16.msra.mxu1 %v9970_v55  ;;  %v9976_v55 = vld [vmem:[%s10353_s19 + $0x80] sm:$0xff] }
 0x2d2   : > { %5016 = vmatpush.bf16.msra.mxu0 %v9961_v34  ;;  %5029 = vmatpush.bf16.msra.mxu1 %v9969_v18 }
 0x2d6   : > { %v4461_v7 = vpop.f32.mrf.mxu0  ;;  %5017 = vmatpush.bf16.msra.mxu0 %v9960_v57  ;;  %5030 = vmatpush.bf16.msra.mxu1 %v9968_v14  ;;  %v12321_v57 = vld [vmem:[#allocation2] sm:$0xff] }
 0x2d8   : > { %v4475_v2 = vpop.f32.mrf.mxu1 }
 0x2d9   : > { %v4476_v13 = vadd.f32 %v4475_v2, %v4461_v7 }
 0x2da   : > { %v4489_v15 = vpop.f32.mrf.mxu2 }
 0x2db   : > { %v4490_v10 = vadd.f32 %v4489_v15, %v4476_v13  ;;  %v4503_v8 = vpop.f32.mrf.mxu3  ;;  %v9982_v15 = vld [vmem:[%s10353_s19 + $0xb0] sm:$0xff] }
 0x2dc   : > { %5037 = vmatpush.bf16.msra.mxu2 %v9982_v15 }
 0x2dd   : > { %v4504_v35 = vadd.f32 %v4503_v8, %v4490_v10 }
 0x2de   : > { %v4463_v12 = vpop.f32.mrf.mxu0 }
 0x2df   : > { %v4676_v32 = vadd.f32 %v4504_v35, %v12086_v38  ;;  %v9981_v35 = vld [vmem:[%s10353_s19 + $0xa8] sm:$0xff] }
 0x2e0   : > { %v4477_v24 = vpop.f32.mrf.mxu1  ;;  %5038 = vmatpush.bf16.msra.mxu2 %v9981_v35 }
 0x2e1   : > { %v4478_v25 = vadd.f32 %v4477_v24, %v4463_v12  ;;  %v12284_v27 = vadd.f32 %v4686_v5, %v4676_v32 }
 0x2e2   : > { %v4491_v30 = vpop.f32.mrf.mxu2 }
 0x2e3   : > { %v4492_v6 = vadd.f32 %v4491_v30, %v4478_v25  ;;  %v4505_v26 = vpop.f32.mrf.mxu3  ;;  %v4702_v23 = vmax.f32 %v12284_v27, 0.0  ;;  %v9980_v25 = vld [vmem:[%s10353_s19 + $0xa0] sm:$0xff]  ;;  %v9979_v30 = vld [vmem:[%s10353_s19 + $0x98] sm:$0xff] }
 0x2e4   : > { %5039 = vmatpush.bf16.msra.mxu2 %v9980_v25 }
 0x2e5   : > { %v4506_v9 = vadd.f32 %v4505_v26, %v4492_v6  ;;  %v4710_v31 = vadd.f32 %v12293_v29, %v4702_v23 }
 0x2e7   : > { %v4680_v40 = vadd.f32 %v4506_v9, %v12107_v17 }
 0x2e8   : > { %5040 = vmatpush.bf16.msra.mxu2 %v9979_v30 }
 0x2e9   : > { %v12289_v38 = vadd.f32 %v4686_v5, %v4680_v40  ;;  %v12326_v5 = vld [vmem:[#allocation2 + $0x20] sm:$0xff]  ;;  %v9978_v40 = vld [vmem:[%s10353_s19 + $0x90] sm:$0xff] }
 0x2eb   : > { %v4706_v47 = vmax.f32 %v12289_v38, 0.0 }
 0x2ec   : > { %5041 = vmatpush.bf16.msra.mxu2 %v9978_v40 }
 0x2ed   : > { %v4714_v17 = vadd.f32 %v12298_v41, %v4706_v47 }
 0x2ef   : > { %v4718_v20 = vadd.f32 %v4714_v17, %v4710_v31 }
 0x2f1   : > { %v4719_v46 = vrot.slane %v4718_v20, 4 }
 0x2f3   : > { %v4720_v49 = vadd.f32 %v4719_v46, %v4718_v20  ;;  %v9977_v20 = vld [vmem:[%s10353_s19 + $0x88] sm:$0xff] }
 0x2f4   : > { %5042 = vmatpush.bf16.msra.mxu2 %v9977_v20 }
 0x2f5   : > { %v4721_v53 = vrot.slane %v4720_v49, 2 }
 0x2f6   : > { %v4517_v51 = vpop.f32.mrf.mxu0 }
 0x2f7   : > { %v4722_v58 = vadd.f32 %v4721_v53, %v4720_v49 }
 0x2f8   : > { %v4531_v52 = vpop.f32.mrf.mxu1  ;;  %5043 = vmatpush.bf16.msra.mxu2 %v9976_v55 }
 0x2f9   : > { %v4532_v54 = vadd.f32 %v4531_v52, %v4517_v51  ;;  %v4723_v1 = vrot.slane %v4722_v58, 1 }
 0x2fa   : > { %v4545_v59 = vpop.f32.mrf.mxu2 }
 0x2fb   : > { %v4546_v63 = vadd.f32 %v4545_v59, %v4532_v54  ;;  %v4559_v0 = vpop.f32.mrf.mxu3  ;;  %v4724_v33 = vadd.f32 %v4723_v1, %v4722_v58  ;;  %v4688_v1 = vperm.slane %v12278_v19, 2 }
 0x2fd   : > { %v4560_v22 = vadd.f32 %v4559_v0, %v4546_v63  ;;  %v4746_v4 = vmul.f32 0.00390625, %v4724_v33  ;;  %v9991_v63 = vld [vmem:[%s10353_s19 + $0xf8] sm:$0xff] }
 0x2fe   : > { %v4519_v21 = vpop.f32.mrf.mxu0  ;;  %5049 = vmatpush.bf16.msra.mxu3 %v9991_v63 }
 0x2ff   : > { %v4677_v3 = vadd.f32 %v4560_v22, %v12163_v37  ;;  %v4750_v7 = vpack.c.bf16 %v4746_v4, %v4746_v4 }
 0x300   : > { %v4533_v48 = vpop.f32.mrf.mxu1 }
 0x301   : > { %v4534_v11 = vadd.f32 %v4533_v48, %v4519_v21  ;;  %5018 = vmatmul.bf16.vlgmr.msra.gmra.mxu0 %v4750_v7  ;;  %v12312_v10 = vadd.f32 %v4687_v61, %v4677_v3  ;;  %v9990_v48 = vld [vmem:[%s10353_s19 + $0xf0] sm:$0xff]  ;;  %v9988_v7 = vld [vmem:[%s10353_s19 + $0xe0] sm:$0xff] }
 0x302   : > { %v4547_v2 = vpop.f32.mrf.mxu2  ;;  %5050 = vmatpush.bf16.msra.mxu3 %v9990_v48  ;;  %v12381_v48 = vld [vmem:[#allocation2 + $0x38] sm:$0xff] }
 0x303   : > { %v4548_v13 = vadd.f32 %v4547_v2, %v4534_v11  ;;  %v4561_v50 = vpop.f32.mrf.mxu3  ;;  %v4703_v37 = vmax.f32 %v12312_v10, 0.0  ;;  %v12348_v2 = vld [vmem:[#allocation2 + $0x18] sm:$0xff] }
 0x305   : > { %v4562_v8 = vadd.f32 %v4561_v50, %v4548_v13  ;;  %v4711_v32 = vadd.f32 %v12321_v57, %v4703_v37  ;;  %v12353_v50 = vld [vmem:[#allocation2 + $0x28] sm:$0xff] }
 0x306   : > { %5051 = vmatpush.bf16.msra.mxu3 %v9989_v56 }
 0x307   : > { %v4681_v34 = vadd.f32 %v4562_v8, %v12184_v28  ;;  %v9987_v8 = vld [vmem:[%s10353_s19 + $0xd8] sm:$0xff] }
 0x309   : > { %v12317_v12 = vadd.f32 %v4687_v61, %v4681_v34 }
 0x30a   : > { %5052 = vmatpush.bf16.msra.mxu3 %v9988_v7 }
 0x30b   : > { %v4707_v24 = vmax.f32 %v12317_v12, 0.0 }
 0x30d   : > { %v4715_v28 = vadd.f32 %v12326_v5, %v4707_v24 }
 0x30e   : > { %5053 = vmatpush.bf16.msra.mxu3 %v9987_v8 }
 0x30f   : > { %v4725_v36 = vadd.f32 %v4715_v28, %v4711_v32  ;;  %v9986_v28 = vld [vmem:[%s10353_s19 + $0xd0] sm:$0xff] }
 0x311   : > { %v4726_v6 = vrot.slane %v4725_v36, 4 }
 0x312   : > { %5054 = vmatpush.bf16.msra.mxu3 %v9986_v28 }
 0x313   : > { %v4727_v26 = vadd.f32 %v4726_v6, %v4725_v36  ;;  %v9985_v6 = vld [vmem:[%s10353_s19 + $0xc8] sm:$0xff] }
 0x315   : > { %v4728_v44 = vrot.slane %v4727_v26, 2 }
 0x316   : > { %v4573_v9 = vpop.f32.mrf.mxu0  ;;  %5055 = vmatpush.bf16.msra.mxu3 %v9985_v6 }
 0x317   : > { %v4729_v17 = vadd.f32 %v4728_v44, %v4727_v26 }
 0x318   : > { %v4587_v39 = vpop.f32.mrf.mxu1 }
 0x319   : > { %v4588_v31 = vadd.f32 %v4587_v39, %v4573_v9  ;;  %v4730_v49 = vrot.slane %v4729_v17, 1 }
 0x31a   : > { %v4601_v45 = vpop.f32.mrf.mxu2 }
 0x31b   : > { %v4602_v46 = vadd.f32 %v4601_v45, %v4588_v31  ;;  %v4615_v16 = vpop.f32.mrf.mxu3  ;;  %v4731_v53 = vadd.f32 %v4730_v49, %v4729_v17  ;;  %v9984_v31 = vld [vmem:[%s10353_s19 + $0xc0] sm:$0xff]  ;;  %v4689_v49 = vperm.slane %v12278_v19, 3 }
 0x31c   : > { %5056 = vmatpush.bf16.msra.mxu3 %v9984_v31 }
 0x31d   : > { %v4616_v51 = vadd.f32 %v4615_v16, %v4602_v46  ;;  %v4747_v59 = vmul.f32 0.00390625, %v4731_v53 }
 0x31e   : > { %v4575_v52 = vpop.f32.mrf.mxu0 }
 0x31f   : > { %v4678_v0 = vadd.f32 %v4616_v51, %v12240_v43  ;;  %v4751_v18 = vpack.c.bf16 %v4747_v59, %v4747_v59 }
 0x320   : > { %v4589_v54 = vpop.f32.mrf.mxu1 }
 0x321   : > { %v4590_v58 = vadd.f32 %v4589_v54, %v4575_v52  ;;  %5031 = vmatmul.bf16.vlgmr.msra.gmra.mxu1 %v4751_v18  ;;  %v12339_v11 = vadd.f32 %v4688_v1, %v4678_v0  ;;  %v5063_v54 = vld [vmem:[%s494_s0] sm:$0x1] }
 0x322   : > { %v4603_v22 = vpop.f32.mrf.mxu2 }
 0x323   : > { %v4604_v21 = vadd.f32 %v4603_v22, %v4590_v58  ;;  %v4617_v33 = vpop.f32.mrf.mxu3  ;;  %v4704_v43 = vmax.f32 %v12339_v11, 0.0  ;;  %v10235_v58 = vmov 0  }
 0x324   : > { %10162 = vset.pattern.permute.xlu0 %v10235_v58 }
 0x325   : > { %v4618_v4 = vadd.f32 %v4617_v33, %v4604_v21  ;;  %v4712_v13 = vadd.f32 %v12348_v2, %v4704_v43  ;;  %5066 = vperm.xlu0 %10162, %v5063_v54   ;;  %v12376_v21 = vld [vmem:[#allocation2 + $0x10] sm:$0xff] }
 0x327   : > { %v4682_v14 = vadd.f32 %v4618_v4, %v12258_v42 }
 0x329   : > { %v12344_v3 = vadd.f32 %v4688_v1, %v4682_v14 }
 0x32b   : > { %v4708_v61 = vmax.f32 %v12344_v3, 0.0 }
 0x32d   : > { %v4716_v42 = vadd.f32 %v12353_v50, %v4708_v61 }
 0x32f   : > { %v4732_v15 = vadd.f32 %v4716_v42, %v4712_v13 }
 0x331   : > { %v4733_v34 = vrot.slane %v4732_v15, 4 }
 0x333   : > { %v4734_v32 = vadd.f32 %v4733_v34, %v4732_v15 }
 0x335   : > { %v4735_v36 = vrot.slane %v4734_v32, 2 }
 0x336   : > { %v4629_v35 = vpop.f32.mrf.mxu0  ;;  %v4643_v25 = vpop.f32.mrf.mxu1 }
 0x337   : > { %v4644_v30 = vadd.f32 %v4643_v25, %v4629_v35  ;;  %v4736_v26 = vadd.f32 %v4735_v36, %v4734_v32  ;;  %v5073_v36 = vld [vmem:[%s10368_s23] sm:$0xff] }
 0x338   : > { %5075 = vst [vmem:[#allocation1] ss:$4 sm:$0xff] %v5073_v36 }
 0x339   : > { %v4737_v44 = vrot.slane %v4736_v26, 1 }
 0x33a   : > { %v4657_v9 = vpop.f32.mrf.mxu2 }
 0x33b   : > { %v4658_v39 = vadd.f32 %v4657_v9, %v4644_v30  ;;  %v4671_v40 = vpop.f32.mrf.mxu3  ;;  %v4738_v45 = vadd.f32 %v4737_v44, %v4736_v26  ;;  %v5145_v30 = vld [vmem:[%s10373_s20] sm:$0xff] }
 0x33d   : > { %v4672_v17 = vadd.f32 %v4671_v40, %v4658_v39  ;;  %v4748_v16 = vmul.f32 0.00390625, %v4738_v45 }
 0x33e   : > { %v4631_v20 = vpop.f32.mrf.mxu0  ;;  %v4645_v46 = vpop.f32.mrf.mxu1 }
 0x33f   : > { %v4679_v51 = vadd.f32 %v4672_v17, %v12266_v60  ;;  %v4646_v52 = vadd.f32 %v4645_v46, %v4631_v20  ;;  %v4752_v53 = vpack.c.bf16 %v4748_v16, %v4748_v16  ;;  %v5078_v6 = vld.sshfl [vmem:[#allocation1 + $0x10] sm:$0xff pattern:$0x73625140]  ;;  %v5079_v26 = vld.sshfl [vmem:[#allocation1 + $0x18] sm:$0xff pattern:$0x73625140] }
 0x340   : > { %v5089_v9 = vsel %vm5084_vm5, %v5078_v6, 0  ;;  %v5091_v39 = vsel %vm5084_vm5, %v5079_v26, 0  ;;  %v5076_v40 = vld.sshfl [vmem:[#allocation1] sm:$0xff pattern:$0x73625140] }
 0x341   : > { %5044 = vmatmul.bf16.vlgmr.msra.gmra.mxu2 %v4752_v53  ;;  %v12369_v0 = vadd.f32 %v4689_v49, %v4679_v51  ;;  %5139 = vmatpush.bf16.msrb.mxu3 %v5091_v39  ;;  %v5085_v44 = vsel %vm5084_vm5, %v5076_v40, 0  ;;  %v5077_v31 = vld.sshfl [vmem:[#allocation1 + $0x8] sm:$0xff pattern:$0x73625140] }
 0x342   : > { %v4659_v55 = vpop.f32.mrf.mxu2  ;;  %5126 = vmatpush.bf16.msrb.mxu2 %v5089_v9  ;;  %5100 = vmatpush.bf16.msrb.mxu0 %v5085_v44  ;;  %v5087_v17 = vsel %vm5084_vm5, %v5077_v31, 0  ;;  %5147 = vst [vmem:[#allocation1] ss:$4 sm:$0xff] %v5145_v30 }
 0x343   : > { %v4660_v59 = vadd.f32 %v4659_v55, %v4646_v52  ;;  %v4673_v63 = vpop.f32.mrf.mxu3  ;;  %v4705_v60 = vmax.f32 %v12369_v0, 0.0  ;;  %5113 = vmatpush.bf16.msrb.mxu1 %v5087_v17 }
 0x345   : > { %v4674_v1 = vadd.f32 %v4673_v63, %v4660_v59  ;;  %v4713_v33 = vadd.f32 %v12376_v21, %v4705_v60 }
 0x347   : > { %v4683_v19 = vadd.f32 %v4674_v1, %v12269_v62 }
 0x349   : > { %v12373_v18 = vadd.f32 %v4689_v49, %v4683_v19  ;;  %v5150_v20 = vld.sshfl [vmem:[#allocation1 + $0x10] sm:$0xff pattern:$0x73625140]  ;;  %v5151_v46 = vld.sshfl [vmem:[#allocation1 + $0x18] sm:$0xff pattern:$0x73625140] }
 0x34a   : > { %v5156_v49 = vsel %vm5084_vm5, %v5150_v20, 0  ;;  %v5158_v51 = vsel %vm5084_vm5, %v5151_v46, 0  ;;  %v5148_v52 = vld.sshfl [vmem:[#allocation1] sm:$0xff pattern:$0x73625140] }
 0x34b   : > { %v4709_v22 = vmax.f32 %v12373_v18, 0.0  ;;  %5193 = vmatpush.bf16.msra.mxu2 %v5156_v49  ;;  %v5152_v53 = vsel %vm5084_vm5, %v5148_v52, 0  ;;  %v5149_v54 = vld.sshfl [vmem:[#allocation1 + $0x8] sm:$0xff pattern:$0x73625140] }
 0x34c   : > { %5167 = vmatpush.bf16.msra.mxu0 %v5152_v53  ;;  %v5154_v55 = vsel %vm5084_vm5, %v5149_v54, 0 }
 0x34d   : > { %v4717_v4 = vadd.f32 %v12381_v48, %v4709_v22  ;;  %5180 = vmatpush.bf16.msra.mxu1 %v5154_v55 }
 0x34f   : > { %v4739_v62 = vadd.f32 %v4717_v4, %v4713_v33 }
 0x351   : > { %v4740_v14 = vrot.slane %v4739_v62, 4 }
 0x353   : > { %v4741_v56 = vadd.f32 %v4740_v14, %v4739_v62 }
 0x355   : > { %v4742_v7 = vrot.slane %v4741_v56, 2 }
 0x357   : > { %v4743_v13 = vadd.f32 %v4742_v7, %v4741_v56 }
 0x359   : > { %v4744_v42 = vrot.slane %v4743_v13, 1 }
 0x35b   : > { %v4745_v15 = vadd.f32 %v4744_v42, %v4743_v13 }
 0x35d   : > { %v4749_v8 = vmul.f32 0.00390625, %v4745_v15 }
 0x35f   : > { %v4753_v34 = vpack.c.bf16 %v4749_v8, %v4749_v8 }
 0x361   : > { %5057 = vmatmul.bf16.vlgmr.msra.gmra.mxu3 %v4753_v34 }
 0x362   : > { %5206 = vmatpush.bf16.msra.mxu3 %v5158_v51 }
 0x37e   : > { %v5019_v35 = vpop.f32.mrf.mxu0 }
 0x386   : > { %v5021_v25 = vpop.f32.mrf.mxu0 }
 0x397   : > { %v5067_v58 = vpop.permute.xlu0 %5066 }
 0x398   : > { %v5069_v1 = vperm.slane %v5067_v58, 0 }
 0x39e   : > { %v5032_v32 = vpop.f32.mrf.mxu1 }
 0x39f   : > { %v5033_v59 = vadd.f32 %v5032_v32, %v5019_v35 }
 0x3a6   : > { %v5034_v28 = vpop.f32.mrf.mxu1 }
 0x3c4   : > { %v5045_v45 = vpop.f32.mrf.mxu2 }
 0x3c5   : > { %v5046_v63 = vadd.f32 %v5045_v45, %v5033_v59 }
 0x3cc   : > { %v5047_v16 = vpop.f32.mrf.mxu2 }
 0x3e4   : > { %v5058_v19 = vpop.f32.mrf.mxu3 }
 0x3e5   : > { %v5059_v33 = vadd.f32 %v5058_v19, %v5046_v63 }
 0x3e7   : > { %vm5062_vm6 = vcmp.ge.f32.partialorder %v5059_v33, 0.0  ;;  %v5070_v4 = vmul.f32 %v5069_v1, %v5059_v33 }
 0x3e9   : > { %v5071_v62 = vsel %vm5062_vm6, %v5059_v33, %v5070_v4 }
 0x3ea   : > { %v5072_v14 = vpack.c.bf16 %v5071_v62, %v5071_v62 }
 0x3ec   : > { %v5060_v56 = vpop.f32.mrf.mxu3  ;;  %8919 = vmatmul.msk.bf16.vlgmr.msrb.gmra.mxu0 %vm5080_vm7, %v5072_v14  ;;  %8920 = vmatmul.msk.bf16.vlgmr.msrb.gmra.mxu1 %vm5080_vm7, %v5072_v14 }
 0x3ed   : > { %8921 = vmatmul.msk.bf16.vlgmr.msrb.gmra.mxu2 %vm5080_vm7, %v5072_v14  ;;  %8922 = vmatmul.msk.bf16.vlgmr.msrb.gmra.mxu3 %vm5080_vm7, %v5072_v14 }
 0x3fc   : > { %8923 = vmatmul.msk.bf16.vlgmr.msra.gmra.mxu0 %vm5080_vm7, %v5072_v14  ;;  %8924 = vmatmul.msk.bf16.vlgmr.msra.gmra.mxu1 %vm5080_vm7, %v5072_v14 }
 0x3fd   : > { %8925 = vmatmul.msk.bf16.vlgmr.msra.gmra.mxu2 %vm5080_vm7, %v5072_v14  ;;  %8926 = vmatmul.msk.bf16.vlgmr.msra.gmra.mxu3 %vm5080_vm7, %v5072_v14 }
 0x469   : > { %v5102_v7 = vpop.f32.mrf.mxu0  ;;  %v5115_v13 = vpop.f32.mrf.mxu1 }
 0x470   : > { %v5128_v42 = vpop.f32.mrf.mxu2  ;;  %v5141_v15 = vpop.f32.mrf.mxu3 }
 0x471   : > { %v5104_v8 = vpop.f32.mrf.mxu0  ;;  %v5117_v34 = vpop.f32.mrf.mxu1 }
 0x478   : > { %v5130_v35 = vpop.f32.mrf.mxu2  ;;  %v5143_v25 = vpop.f32.mrf.mxu3 }
 0x479   : > { %v5169_v32 = vpop.f32.mrf.mxu0  ;;  %v5182_v28 = vpop.f32.mrf.mxu1 }
 0x47a   : > { %v5212_v36 = vmax.f32 %v5102_v7, %v5169_v32  ;;  %v5213_v30 = vmax.f32 %v5115_v13, %v5182_v28 }
 0x47c   : > { %v5216_v6 = vsub.f32 %v5102_v7, %v5212_v36  ;;  %v5228_v26 = vsub.f32 %v5169_v32, %v5212_v36  ;;  %v5217_v9 = vsub.f32 %v5115_v13, %v5213_v30  ;;  %v5229_v39 = vsub.f32 %v5182_v28, %v5213_v30 }
 0x47e   : > { %v5220_v40 = vmul.f32 1.442695, %v5216_v6  ;;  %v5232_v44 = vmul.f32 1.442695, %v5228_v26  ;;  %v5222_v31 = vmul.f32 1.442695, %v5217_v9 }
 0x47f   : > { %v5234_v17 = vmul.f32 1.442695, %v5229_v39 }
 0x480   : > { %10163 = vpow2.f32 %v5220_v40  ;;  %v5195_v45 = vpop.f32.mrf.mxu2  ;;  %v5208_v20 = vpop.f32.mrf.mxu3 }
 0x481   : > { %10165 = vpow2.f32 %v5232_v44  ;;  %v5214_v46 = vmax.f32 %v5128_v42, %v5195_v45  ;;  %v5215_v16 = vmax.f32 %v5141_v15, %v5208_v20  ;;  %v5171_v49 = vpop.f32.mrf.mxu0  ;;  %v5184_v51 = vpop.f32.mrf.mxu1 }
 0x482   : > { %10167 = vpow2.f32 %v5222_v31 }
 0x483   : > { %10169 = vpow2.f32 %v5234_v17  ;;  %v5218_v52 = vsub.f32 %v5128_v42, %v5214_v46  ;;  %v5230_v53 = vsub.f32 %v5195_v45, %v5214_v46  ;;  %v5219_v54 = vsub.f32 %v5141_v15, %v5215_v16 }
 0x484   : > { %v5231_v55 = vsub.f32 %v5208_v20, %v5215_v16 }
 0x485   : > { %v5224_v58 = vmul.f32 1.442695, %v5218_v52  ;;  %v5236_v59 = vmul.f32 1.442695, %v5230_v53  ;;  %v5226_v63 = vmul.f32 1.442695, %v5219_v54 }
 0x486   : > { %v10164_v1 = vpop.eup %10163  ;;  %v5238_v33 = vmul.f32 1.442695, %v5231_v55 }
 0x487   : > { %v10166_v19 = vpop.eup %10165  ;;  %10171 = vpow2.f32 %v5224_v58 }
 0x488   : > { %v10168_v4 = vpop.eup %10167  ;;  %v5240_v62 = vadd.f32 %v10166_v19, %v10164_v1  ;;  %10173 = vpow2.f32 %v5236_v59  ;;  %v5197_v14 = vpop.f32.mrf.mxu2 }
 0x489   : > { %v5210_v56 = vpop.f32.mrf.mxu3  ;;  %v10170_v7 = vpop.eup %10169  ;;  %10175 = vpow2.f32 %v5226_v63 }
 0x48a   : > { %10177 = vrcp.f32 %v5240_v62  ;;  %v5241_v13 = vadd.f32 %v10170_v7, %v10168_v4 }
 0x48b   : > { %10179 = vpow2.f32 %v5238_v33 }
 0x48c   : > { %10181 = vrcp.f32 %v5241_v13 }
 0x48d   : > { %v10172_v42 = vpop.eup %10171 }
 0x48e   : > { %v10174_v15 = vpop.eup %10173 }
 0x48f   : > { %v10176_v8 = vpop.eup %10175  ;;  %v5242_v34 = vadd.f32 %v10174_v15, %v10172_v42 }
 0x490   : > { %v10178_v35 = vpop.eup %10177 }
 0x491   : > { %v10180_v25 = vpop.eup %10179  ;;  %v5248_v32 = vmul.f32 %v10178_v35, %v10164_v1  ;;  %v5264_v28 = vmul.f32 %v10178_v35, %v10166_v19  ;;  %10183 = vrcp.f32 %v5242_v34 }
 0x492   : > { %v10182_v36 = vpop.eup %10181  ;;  %v5243_v30 = vadd.f32 %v10180_v25, %v10176_v8 }
 0x493   : > { %v5252_v6 = vperm.slane %v5248_v32, 0  ;;  %v5268_v26 = vperm.slane %v5264_v28, 0  ;;  %v5249_v9 = vmul.f32 %v10182_v36, %v10168_v4  ;;  %v5265_v39 = vmul.f32 %v10182_v36, %v10170_v7 }
 0x494   : > { %10185 = vrcp.f32 %v5243_v30 }
 0x495   : > { %v5256_v40 = vmul.f32 %v12293_v29, %v5252_v6  ;;  %v5260_v44 = vmul.f32 %v12298_v41, %v5252_v6  ;;  %v5272_v31 = vmul.f32 %v5268_v26, %v4702_v23  ;;  %v5276_v17 = vmul.f32 %v5268_v26, %v4706_v47 }
 0x496   : > { %v5253_v45 = vperm.slane %v5249_v9, 0  ;;  %v5269_v20 = vperm.slane %v5265_v39, 0 }
 0x497   : > { %v10184_v46 = vpop.eup %10183  ;;  %v12402_v16 = vadd.f32 %v5272_v31, %v5256_v40  ;;  %v12404_v49 = vadd.f32 %v5276_v17, %v5260_v44 }
 0x498   : > { %v5257_v51 = vmul.f32 %v12321_v57, %v5253_v45  ;;  %v5261_v52 = vmul.f32 %v12326_v5, %v5253_v45  ;;  %v5273_v29 = vmul.f32 %v5269_v20, %v4703_v37  ;;  %v5277_v27 = vmul.f32 %v5269_v20, %v4707_v24 }
 0x499   : > { %v5250_v23 = vmul.f32 %v10184_v46, %v10172_v42  ;;  %v5266_v38 = vmul.f32 %v10184_v46, %v10174_v15 }
 0x49a   : > { %v10186_v47 = vpop.eup %10185  ;;  %v12412_v41 = vadd.f32 %v5273_v29, %v5257_v51  ;;  %v12414_v53 = vadd.f32 %v5277_v27, %v5261_v52 }
 0x49b   : > { %v5254_v54 = vperm.slane %v5250_v23, 0  ;;  %v5270_v55 = vperm.slane %v5266_v38, 0  ;;  %v5251_v58 = vmul.f32 %v10186_v47, %v10176_v8  ;;  %v5267_v59 = vmul.f32 %v10186_v47, %v10180_v25 }
 0x49d   : > { %v5258_v57 = vmul.f32 %v12348_v2, %v5254_v54  ;;  %v5262_v5 = vmul.f32 %v12353_v50, %v5254_v54  ;;  %v5274_v10 = vmul.f32 %v5270_v55, %v4704_v43  ;;  %v5278_v37 = vmul.f32 %v5270_v55, %v4708_v61 }
 0x49e   : > { %v5255_v12 = vperm.slane %v5251_v58, 0  ;;  %v5271_v24 = vperm.slane %v5267_v59, 0  ;;  %5291 = sbr.rel (%p8927_p8) target bundleno = 1195 (0x4ab), region = 72 }
 0x49f   : > { %v12422_v63 = vadd.f32 %v5274_v10, %v5258_v57  ;;  %v12424_v1 = vadd.f32 %v5278_v37, %v5262_v5 }
 0x4a0   : > { %v5259_v19 = vmul.f32 %v12376_v21, %v5255_v12  ;;  %v5263_v33 = vmul.f32 %v12381_v48, %v5255_v12  ;;  %v5275_v2 = vmul.f32 %v5271_v24, %v4705_v60  ;;  %v5279_v11 = vmul.f32 %v5271_v24, %v4709_v22 }
 0x4a2   : > { %v12432_v43 = vadd.f32 %v5275_v2, %v5259_v19  ;;  %v12434_v3 = vadd.f32 %v5279_v11, %v5263_v33 }
 0x4a3   : > { %5292 = vst [vmem:[#allocation2 + $0x30] sm:$0xff] %v12402_v16 }
 0x4a4   : > { %5293 = vst [vmem:[#allocation2] sm:$0xff] %v12412_v41 }
 0x4a5   : > { %5294 = vst [vmem:[#allocation2 + $0x18] sm:$0xff] %v12422_v63 }
 0x4a6   : > { %5295 = vst [vmem:[#allocation2 + $0x10] sm:$0xff] %v12432_v43 }
 0x4a7   : > { %5296 = vst [vmem:[#allocation2 + $0x8] sm:$0xff] %v12404_v49 }
 0x4a8   : > { %5297 = vst [vmem:[#allocation2 + $0x20] sm:$0xff] %v12414_v53 }
 0x4a9   : > { %5298 = vst [vmem:[#allocation2 + $0x28] sm:$0xff] %v12424_v1 }
 0x4aa   : > { %5299 = vst [vmem:[#allocation2 + $0x38] sm:$0xff] %v12434_v3 }
 0x4ab PF: > { %p8928_p9 = scmp.ne.s32.totalorder %s10217_s17, 1 }
 0x4ac   : > { %s13305_s24 = sld [smem:[#allocation10_spill]] (!%p8928_p9) }
 0x4ad   : > { %5303 = sbr.rel (%p8928_p9) target bundleno = 1481 (0x5c9), region = 76  ;;  %s13306_s27 = sld [smem:[#allocation11_spill]] (!%p8928_p9) }
 0x4b2   : > { %v9043_v61 = vld [vmem:[%s13305_s24 + $0xe0] sm:$0xf]  ;;  %v10022_v50 = vld [vmem:[%s13305_s24 + $0xec] sm:$0xf0] }
 0x4b3   : > { %v9171_v0 = vld [vmem:[%s13305_s24 + $0x1e0] sm:$0xf]  ;;  %v9044_v60 = vor.u32 %v10022_v50, %v9043_v61  ;;  %v10054_v18 = vld [vmem:[%s13305_s24 + $0x1ec] sm:$0xf0] }
 0x4b4   : > { %v9299_v22 = vld [vmem:[%s13305_s24 + $0x2e0] sm:$0xf]  ;;  %v10086_v21 = vld [vmem:[%s13305_s24 + $0x2ec] sm:$0xf0]  ;;  %v9172_v48 = vor.u32 %v10054_v18, %v9171_v0 }
 0x4b5   : > { %v9300_v4 = vor.u32 %v10086_v21, %v9299_v22  ;;  %v9427_v62 = vld [vmem:[%s13305_s24 + $0x3e0] sm:$0xf]  ;;  %v10118_v14 = vld [vmem:[%s13305_s24 + $0x3ec] sm:$0xf0]  ;;  %6086 = vmatpush.bf16.msra.mxu0 %v9044_v60 }
 0x4b6   : > { %v9027_v56 = vld [vmem:[%s13305_s24 + $0xc0] sm:$0xf]  ;;  %v9428_v7 = vor.u32 %v10118_v14, %v9427_v62  ;;  %v10018_v13 = vld [vmem:[%s13305_s24 + $0xcc] sm:$0xf0]  ;;  %6100 = vmatpush.bf16.msra.mxu1 %v9172_v48 }
 0x4b7   : > { %v9155_v42 = vld [vmem:[%s13305_s24 + $0x1c0] sm:$0xf]  ;;  %v10050_v15 = vld [vmem:[%s13305_s24 + $0x1cc] sm:$0xf0]  ;;  %6114 = vmatpush.bf16.msra.mxu2 %v9300_v4  ;;  %v9028_v8 = vor.u32 %v10018_v13, %v9027_v56 }
 0x4b8   : > { %v9156_v34 = vor.u32 %v10050_v15, %v9155_v42  ;;  %v9283_v35 = vld [vmem:[%s13305_s24 + $0x2c0] sm:$0xf]  ;;  %v10082_v25 = vld [vmem:[%s13305_s24 + $0x2cc] sm:$0xf0]  ;;  %6128 = vmatpush.bf16.msra.mxu3 %v9428_v7 }
 0x4b9   : > { %v9411_v32 = vld [vmem:[%s13305_s24 + $0x3c0] sm:$0xf]  ;;  %v9284_v28 = vor.u32 %v10082_v25, %v9283_v35  ;;  %v10114_v36 = vld [vmem:[%s13305_s24 + $0x3cc] sm:$0xf0]  ;;  %6087 = vmatpush.bf16.msra.mxu0 %v9028_v8 }
 0x4ba   : > { %v9011_v30 = vld [vmem:[%s13305_s24 + $0xa0] sm:$0xf]  ;;  %v10014_v6 = vld [vmem:[%s13305_s24 + $0xac] sm:$0xf0]  ;;  %v9412_v26 = vor.u32 %v10114_v36, %v9411_v32  ;;  %6101 = vmatpush.bf16.msra.mxu1 %v9156_v34 }
 0x4bb   : > { %v9139_v9 = vld [vmem:[%s13305_s24 + $0x1a0] sm:$0xf]  ;;  %v10046_v39 = vld [vmem:[%s13305_s24 + $0x1ac] sm:$0xf0]  ;;  %v9012_v44 = vor.u32 %v10014_v6, %v9011_v30  ;;  %6115 = vmatpush.bf16.msra.mxu2 %v9284_v28 }
 0x4bc   : > { %v9267_v40 = vld [vmem:[%s13305_s24 + $0x2a0] sm:$0xf]  ;;  %v10078_v31 = vld [vmem:[%s13305_s24 + $0x2ac] sm:$0xf0]  ;;  %v9140_v20 = vor.u32 %v10046_v39, %v9139_v9  ;;  %6129 = vmatpush.bf16.msra.mxu3 %v9412_v26 }
 0x4bd   : > { %v9395_v17 = vld [vmem:[%s13305_s24 + $0x3a0] sm:$0xf]  ;;  %v10110_v45 = vld [vmem:[%s13305_s24 + $0x3ac] sm:$0xf0]  ;;  %v9268_v46 = vor.u32 %v10078_v31, %v9267_v40  ;;  %6088 = vmatpush.bf16.msra.mxu0 %v9012_v44 }
 0x4be   : > { %v8995_v51 = vld [vmem:[%s13305_s24 + $0x80] sm:$0xf]  ;;  %v10010_v52 = vld [vmem:[%s13305_s24 + $0x8c] sm:$0xf0]  ;;  %v9396_v27 = vor.u32 %v10110_v45, %v9395_v17  ;;  %6102 = vmatpush.bf16.msra.mxu1 %v9140_v20 }
 0x4bf   : > { %v9123_v29 = vld [vmem:[%s13305_s24 + $0x180] sm:$0xf]  ;;  %v10042_v23 = vld [vmem:[%s13305_s24 + $0x18c] sm:$0xf0]  ;;  %v8996_v58 = vor.u32 %v10010_v52, %v8995_v51  ;;  %6116 = vmatpush.bf16.msra.mxu2 %v9268_v46  ;;  %v10020_v52 = vld [vmem:[%s13305_s24 + $0xe4] sm:$0xf] }
 0x4c0   : > { %v9251_v38 = vld [vmem:[%s13305_s24 + $0x280] sm:$0xf]  ;;  %v10074_v47 = vld [vmem:[%s13305_s24 + $0x28c] sm:$0xf0]  ;;  %v9124_v59 = vor.u32 %v10042_v23, %v9123_v29  ;;  %6130 = vmatpush.bf16.msra.mxu3 %v9396_v27  ;;  %v9045_v29 = vld [vmem:[%s13305_s24 + $0xf0] sm:$0xf0] }
 0x4c1   : > { %v9379_v54 = vld [vmem:[%s13305_s24 + $0x380] sm:$0xf]  ;;  %v10106_v55 = vld [vmem:[%s13305_s24 + $0x38c] sm:$0xf0]  ;;  %v9252_v57 = vor.u32 %v10074_v47, %v9251_v38  ;;  %6089 = vmatpush.bf16.msra.mxu0 %v8996_v58  ;;  %v10052_v27 = vld [vmem:[%s13305_s24 + $0x1e4] sm:$0xf] }
 0x4c2   : > { %v8979_v5 = vld [vmem:[%s13305_s24 + $0x60] sm:$0xf]  ;;  %v10006_v10 = vld [vmem:[%s13305_s24 + $0x6c] sm:$0xf0]  ;;  %v9380_v12 = vor.u32 %v10106_v55, %v9379_v54  ;;  %6103 = vmatpush.bf16.msra.mxu1 %v9124_v59  ;;  %v9173_v38 = vld [vmem:[%s13305_s24 + $0x1f0] sm:$0xf0] }
 0x4c3   : > { %v9107_v37 = vld [vmem:[%s13305_s24 + $0x160] sm:$0xf]  ;;  %v10038_v24 = vld [vmem:[%s13305_s24 + $0x16c] sm:$0xf0]  ;;  %v8980_v61 = vor.u32 %v10006_v10, %v8979_v5  ;;  %6117 = vmatpush.bf16.msra.mxu2 %v9252_v57  ;;  %v10084_v47 = vld [vmem:[%s13305_s24 + $0x2e4] sm:$0xf]  ;;  %v9048_v10 = vor.u32 %v10020_v52, %v9045_v29 }
 0x4c4   : > { %v9235_v19 = vld [vmem:[%s13305_s24 + $0x260] sm:$0xf]  ;;  %v10070_v33 = vld [vmem:[%s13305_s24 + $0x26c] sm:$0xf0]  ;;  %v9108_v50 = vor.u32 %v10038_v24, %v9107_v37  ;;  %6131 = vmatpush.bf16.msra.mxu3 %v9380_v12  ;;  %v9301_v54 = vld [vmem:[%s13305_s24 + $0x2f0] sm:$0xf0]  ;;  %v9176_v37 = vor.u32 %v10052_v27, %v9173_v38 }
 0x4c5   : > { %v9363_v2 = vld [vmem:[%s13305_s24 + $0x360] sm:$0xf]  ;;  %v10102_v11 = vld [vmem:[%s13305_s24 + $0x36c] sm:$0xf0]  ;;  %v9236_v0 = vor.u32 %v10070_v33, %v9235_v19  ;;  %6090 = vmatpush.bf16.msra.mxu0 %v8980_v61  ;;  %v10116_v59 = vld [vmem:[%s13305_s24 + $0x3e4] sm:$0xf]  ;;  %v9304_v12 = vor.u32 %v10084_v47, %v9301_v54 }
 0x4c6   : > { %v8963_v60 = vld [vmem:[%s13305_s24 + $0x40] sm:$0xf]  ;;  %v10002_v18 = vld [vmem:[%s13305_s24 + $0x4c] sm:$0xf0]  ;;  %v9364_v21 = vor.u32 %v10102_v11, %v9363_v2  ;;  %6104 = vmatpush.bf16.msra.mxu1 %v9108_v50  ;;  %v9429_v57 = vld [vmem:[%s13305_s24 + $0x3f0] sm:$0xf0] }
 0x4c7   : > { %v9091_v22 = vld [vmem:[%s13305_s24 + $0x140] sm:$0xf]  ;;  %v10034_v48 = vld [vmem:[%s13305_s24 + $0x14c] sm:$0xf0]  ;;  %v8964_v7 = vor.u32 %v10002_v18, %v8963_v60  ;;  %6118 = vmatpush.bf16.msra.mxu2 %v9236_v0  ;;  %v10016_v24 = vld [vmem:[%s13305_s24 + $0xc4] sm:$0xf]  ;;  %v9432_v2 = vor.u32 %v10116_v59, %v9429_v57  ;;  %v12682_v0 = vpack.c.bf16 %v12424_v1, %v12422_v63  ;;  %v12700_v1 = vpack.c.bf16 %v12414_v53, %v12412_v41 }
 0x4c8   : > { %v9219_v4 = vld [vmem:[%s13305_s24 + $0x240] sm:$0xf]  ;;  %v10066_v62 = vld [vmem:[%s13305_s24 + $0x24c] sm:$0xf0]  ;;  %v9092_v13 = vor.u32 %v10034_v48, %v9091_v22  ;;  %6132 = vmatpush.bf16.msra.mxu3 %v9364_v21  ;;  %v9029_v19 = vld [vmem:[%s13305_s24 + $0xd0] sm:$0xf0]  ;;  %v12692_v22 = vpack.c.bf16 %v12404_v49, %v12402_v16  ;;  %v12696_v21 = vpack.c.bf16 %v12434_v3, %v12432_v43 }
 0x4c9   : > { %v9347_v14 = vld [vmem:[%s13305_s24 + $0x340] sm:$0xf]  ;;  %v10098_v56 = vld [vmem:[%s13305_s24 + $0x34c] sm:$0xf0]  ;;  %v9220_v42 = vor.u32 %v10066_v62, %v9219_v4  ;;  %6091 = vmatpush.bf16.msra.mxu0 %v8964_v7  ;;  %v10048_v33 = vld [vmem:[%s13305_s24 + $0x1c4] sm:$0xf]  ;;  %v9032_v63 = vor.u32 %v10016_v24, %v9029_v19 }
 0x4ca   : > { %v8947_v15 = vld [vmem:[%s13305_s24 + $0x20] sm:$0xf]  ;;  %v9998_v8 = vld [vmem:[%s13305_s24 + $0x2c] sm:$0xf0]  ;;  %v9348_v35 = vor.u32 %v10098_v56, %v9347_v14  ;;  %6105 = vmatpush.bf16.msra.mxu1 %v9092_v13  ;;  %v9157_v11 = vld [vmem:[%s13305_s24 + $0x1d0] sm:$0xf0] }
 0x4cb   : > { %v9075_v34 = vld [vmem:[%s13305_s24 + $0x120] sm:$0xf]  ;;  %v10030_v25 = vld [vmem:[%s13305_s24 + $0x12c] sm:$0xf0]  ;;  %v8948_v6 = vor.u32 %v9998_v8, %v8947_v15  ;;  %6119 = vmatpush.bf16.msra.mxu2 %v9220_v42  ;;  %v10080_v61 = vld [vmem:[%s13305_s24 + $0x2c4] sm:$0xf]  ;;  %v9160_v48 = vor.u32 %v10048_v33, %v9157_v11 }
 0x4cc   : > { %v9203_v32 = vld [vmem:[%s13305_s24 + $0x220] sm:$0xf]  ;;  %v10062_v28 = vld [vmem:[%s13305_s24 + $0x22c] sm:$0xf0]  ;;  %v9076_v39 = vor.u32 %v10030_v25, %v9075_v34  ;;  %6133 = vmatpush.bf16.msra.mxu3 %v9348_v35  ;;  %v9285_v50 = vld [vmem:[%s13305_s24 + $0x2d0] sm:$0xf0] }
 0x4cd   : > { %v9331_v36 = vld [vmem:[%s13305_s24 + $0x320] sm:$0xf]  ;;  %v10094_v30 = vld [vmem:[%s13305_s24 + $0x32c] sm:$0xf0]  ;;  %v9204_v40 = vor.u32 %v10062_v28, %v9203_v32  ;;  %6092 = vmatpush.bf16.msra.mxu0 %v8948_v6  ;;  %v10112_v60 = vld [vmem:[%s13305_s24 + $0x3c4] sm:$0xf]  ;;  %v9288_v4 = vor.u32 %v10080_v61, %v9285_v50 }
 0x4ce   : > { %v8931_v26 = vld [vmem:[%s13305_s24] sm:$0xf]  ;;  %v9994_v9 = vld [vmem:[%s13305_s24 + $0xc] sm:$0xf0]  ;;  %v9332_v45 = vor.u32 %v10094_v30, %v9331_v36  ;;  %6106 = vmatpush.bf16.msra.mxu1 %v9076_v39  ;;  %v9413_v18 = vld [vmem:[%s13305_s24 + $0x3d0] sm:$0xf0] }
 0x4cf   : > { %v9059_v44 = vld [vmem:[%s13305_s24 + $0x100] sm:$0xf]  ;;  %v10026_v31 = vld [vmem:[%s13305_s24 + $0x10c] sm:$0xf0]  ;;  %v8932_v23 = vor.u32 %v9994_v9, %v8931_v26  ;;  %6120 = vmatpush.bf16.msra.mxu2 %v9204_v40  ;;  %v10012_v16 = vld [vmem:[%s13305_s24 + $0xa4] sm:$0xf]  ;;  %v9416_v3 = vor.u32 %v10112_v60, %v9413_v18 }
 0x4d0   : > { %v9187_v17 = vld [vmem:[%s13305_s24 + $0x200] sm:$0xf]  ;;  %v10058_v20 = vld [vmem:[%s13305_s24 + $0x20c] sm:$0xf0]  ;;  %v9060_v55 = vor.u32 %v10026_v31, %v9059_v44  ;;  %6134 = vmatpush.bf16.msra.mxu3 %v9332_v45  ;;  %v9013_v49 = vld [vmem:[%s13305_s24 + $0xb0] sm:$0xf0] }
 0x4d1   : > { %v9315_v46 = vld [vmem:[%s13305_s24 + $0x300] sm:$0xf]  ;;  %v10090_v51 = vld [vmem:[%s13305_s24 + $0x30c] sm:$0xf0]  ;;  %v9188_v58 = vor.u32 %v10058_v20, %v9187_v17  ;;  %6093 = vmatpush.bf16.msra.mxu0 %v8932_v23  ;;  %v10044_v43 = vld [vmem:[%s13305_s24 + $0x1a4] sm:$0xf]  ;;  %v9016_v7 = vor.u32 %v10012_v16, %v9013_v49 }
 0x4d2   : > { %v9316_v5 = vor.u32 %v10090_v51, %v9315_v46  ;;  %6107 = vmatpush.bf16.msra.mxu1 %v9060_v55  ;;  %v9141_v41 = vld [vmem:[%s13305_s24 + $0x1b0] sm:$0xf0]  ;;  %v10076_v53 = vld [vmem:[%s13305_s24 + $0x2a4] sm:$0xf] }
 0x4d3   : > { %6121 = vmatpush.bf16.msra.mxu2 %v9188_v58  ;;  %v9269_v62 = vld [vmem:[%s13305_s24 + $0x2b0] sm:$0xf0]  ;;  %v10108_v14 = vld [vmem:[%s13305_s24 + $0x3a4] sm:$0xf]  ;;  %v9144_v13 = vor.u32 %v10044_v43, %v9141_v41 }
 0x4d4   : > { %6135 = vmatpush.bf16.msra.mxu3 %v9316_v5  ;;  %v9397_v56 = vld [vmem:[%s13305_s24 + $0x3b0] sm:$0xf0]  ;;  %6094 = vmatmul.bf16.vlgmr.msra.gmra.mxu0 %v12692_v22  ;;  %v9272_v42 = vor.u32 %v10076_v53, %v9269_v62  ;;  %v10008_v15 = vld [vmem:[%s13305_s24 + $0x84] sm:$0xf] }
 0x4d5   : > { %6142 = vmatpush.bf16.msrb.mxu0 %v9048_v10  ;;  %6108 = vmatmul.bf16.vlgmr.msra.gmra.mxu1 %v12700_v1  ;;  %v8997_v8 = vld [vmem:[%s13305_s24 + $0x90] sm:$0xf0]  ;;  %v10040_v34 = vld [vmem:[%s13305_s24 + $0x184] sm:$0xf]  ;;  %v9400_v35 = vor.u32 %v10108_v14, %v9397_v56 }
 0x4d6   : > { %6156 = vmatpush.bf16.msrb.mxu1 %v9176_v37  ;;  %6122 = vmatmul.bf16.vlgmr.msra.gmra.mxu2 %v12682_v0  ;;  %v9125_v25 = vld [vmem:[%s13305_s24 + $0x190] sm:$0xf0]  ;;  %v10072_v32 = vld [vmem:[%s13305_s24 + $0x284] sm:$0xf]  ;;  %v9000_v6 = vor.u32 %v10008_v15, %v8997_v8  ;;  %v10055_v8 = vld [vmem:[%s13305_s24 + $0x1f4] sm:$0xf0] }
 0x4d7   : > { %6170 = vmatpush.bf16.msrb.mxu2 %v9304_v12  ;;  %6136 = vmatmul.bf16.vlgmr.msra.gmra.mxu3 %v12696_v21  ;;  %v9253_v28 = vld [vmem:[%s13305_s24 + $0x290] sm:$0xf0]  ;;  %v10104_v36 = vld [vmem:[%s13305_s24 + $0x384] sm:$0xf]  ;;  %v9128_v26 = vor.u32 %v10040_v34, %v9125_v25  ;;  %v9307_v34 = vld [vmem:[%s13305_s24 + $0x2e8] sm:$0xf] }
 0x4d8   : > { %6184 = vmatpush.bf16.msrb.mxu3 %v9432_v2  ;;  %v9381_v30 = vld [vmem:[%s13305_s24 + $0x390] sm:$0xf0]  ;;  %v9256_v9 = vor.u32 %v10072_v32, %v9253_v28  ;;  %v10004_v39 = vld [vmem:[%s13305_s24 + $0x64] sm:$0xf]  ;;  %v9435_v28 = vld [vmem:[%s13305_s24 + $0x3e8] sm:$0xf] }
 0x4d9   : > { %6143 = vmatpush.bf16.msrb.mxu0 %v9032_v63  ;;  %v8981_v40 = vld [vmem:[%s13305_s24 + $0x70] sm:$0xf0]  ;;  %v10036_v44 = vld [vmem:[%s13305_s24 + $0x164] sm:$0xf]  ;;  %v9384_v31 = vor.u32 %v10104_v36, %v9381_v30  ;;  %v10119_v36 = vld [vmem:[%s13305_s24 + $0x3f4] sm:$0xf0] }
 0x4da   : > { %6157 = vmatpush.bf16.msrb.mxu1 %v9160_v48  ;;  %v9109_v17 = vld [vmem:[%s13305_s24 + $0x170] sm:$0xf0]  ;;  %v10068_v45 = vld [vmem:[%s13305_s24 + $0x264] sm:$0xf]  ;;  %v8984_v52 = vor.u32 %v10004_v39, %v8981_v40  ;;  %v9035_v39 = vld [vmem:[%s13305_s24 + $0xc8] sm:$0xf] }
 0x4db   : > { %6171 = vmatpush.bf16.msrb.mxu2 %v9288_v4  ;;  %v9237_v20 = vld [vmem:[%s13305_s24 + $0x270] sm:$0xf0]  ;;  %v10100_v46 = vld [vmem:[%s13305_s24 + $0x364] sm:$0xf]  ;;  %v9112_v29 = vor.u32 %v10036_v44, %v9109_v17  ;;  %v10019_v40 = vld [vmem:[%s13305_s24 + $0xd4] sm:$0xf0] }
 0x4dc   : > { %6185 = vmatpush.bf16.msrb.mxu3 %v9416_v3  ;;  %v9365_v51 = vld [vmem:[%s13305_s24 + $0x370] sm:$0xf0]  ;;  %v9240_v27 = vor.u32 %v10068_v45, %v9237_v20  ;;  %v10000_v23 = vld [vmem:[%s13305_s24 + $0x44] sm:$0xf]  ;;  %v9163_v44 = vld [vmem:[%s13305_s24 + $0x1c8] sm:$0xf] }
 0x4dd   : > { %6144 = vmatpush.bf16.msrb.mxu0 %v9016_v7  ;;  %v8965_v38 = vld [vmem:[%s13305_s24 + $0x50] sm:$0xf0]  ;;  %v10032_v47 = vld [vmem:[%s13305_s24 + $0x144] sm:$0xf]  ;;  %v9368_v54 = vor.u32 %v10100_v46, %v9365_v51  ;;  %v9051_v7 = vld [vmem:[%s13305_s24 + $0xe8] sm:$0xf] }
 0x4de   : > { %6158 = vmatpush.bf16.msrb.mxu1 %v9144_v13  ;;  %v9093_v55 = vld [vmem:[%s13305_s24 + $0x150] sm:$0xf0]  ;;  %v10064_v58 = vld [vmem:[%s13305_s24 + $0x244] sm:$0xf]  ;;  %v8968_v10 = vor.u32 %v10000_v23, %v8965_v38  ;;  %v10023_v13 = vld [vmem:[%s13305_s24 + $0xf4] sm:$0xf0] }
 0x4df   : > { %6172 = vmatpush.bf16.msrb.mxu2 %v9272_v42  ;;  %v9221_v59 = vld [vmem:[%s13305_s24 + $0x250] sm:$0xf0]  ;;  %v10096_v57 = vld [vmem:[%s13305_s24 + $0x344] sm:$0xf]  ;;  %v9096_v37 = vor.u32 %v10032_v47, %v9093_v55  ;;  %v9179_v42 = vld [vmem:[%s13305_s24 + $0x1e8] sm:$0xf] }
 0x4e0   : > { %6186 = vmatpush.bf16.msrb.mxu3 %v9400_v35  ;;  %v9349_v5 = vld [vmem:[%s13305_s24 + $0x350] sm:$0xf0]  ;;  %v9224_v12 = vor.u32 %v10064_v58, %v9221_v59  ;;  %v9996_v24 = vld [vmem:[%s13305_s24 + $0x24] sm:$0xf]  ;;  %v10087_v35 = vld [vmem:[%s13305_s24 + $0x2f4] sm:$0xf0] }
 0x4e1   : > { %6145 = vmatpush.bf16.msrb.mxu0 %v9000_v6  ;;  %v8949_v19 = vld [vmem:[%s13305_s24 + $0x30] sm:$0xf0]  ;;  %v10028_v33 = vld [vmem:[%s13305_s24 + $0x124] sm:$0xf]  ;;  %v9352_v2 = vor.u32 %v10096_v57, %v9349_v5  ;;  %v9052_v6 = vor.u32 %v10023_v13, %v9051_v7  ;;  %v10051_v17 = vld [vmem:[%s13305_s24 + $0x1d4] sm:$0xf0] }
 0x4e2   : > { %6159 = vmatpush.bf16.msrb.mxu1 %v9128_v26  ;;  %v9077_v11 = vld [vmem:[%s13305_s24 + $0x130] sm:$0xf0]  ;;  %v10060_v61 = vld [vmem:[%s13305_s24 + $0x224] sm:$0xf]  ;;  %v8952_v63 = vor.u32 %v9996_v24, %v8949_v19  ;;  %v9180_v26 = vor.u32 %v10055_v8, %v9179_v42  ;;  %v9291_v45 = vld [vmem:[%s13305_s24 + $0x2c8] sm:$0xf] }
 0x4e3   : > { %6173 = vmatpush.bf16.msrb.mxu2 %v9256_v9  ;;  %v9205_v50 = vld [vmem:[%s13305_s24 + $0x230] sm:$0xf0]  ;;  %v10092_v60 = vld [vmem:[%s13305_s24 + $0x324] sm:$0xf]  ;;  %v9080_v16 = vor.u32 %v10028_v33, %v9077_v11  ;;  %v9308_v9 = vor.u32 %v10087_v35, %v9307_v34  ;;  %v10083_v20 = vld [vmem:[%s13305_s24 + $0x2d4] sm:$0xf0] }
 0x4e4   : > { %6187 = vmatpush.bf16.msrb.mxu3 %v9384_v31  ;;  %v9333_v18 = vld [vmem:[%s13305_s24 + $0x330] sm:$0xf0]  ;;  %v9992_v48 = vld [vmem:[%s13305_s24 + $0x4] sm:$0xf]  ;;  %v9208_v49 = vor.u32 %v10060_v61, %v9205_v50  ;;  %v9436_v31 = vor.u32 %v10119_v36, %v9435_v28  ;;  %v9419_v46 = vld [vmem:[%s13305_s24 + $0x3c8] sm:$0xf] }
 0x4e5   : > { %6146 = vmatpush.bf16.msrb.mxu0 %v8984_v52  ;;  %v8933_v4 = vld [vmem:[%s13305_s24 + $0x10] sm:$0xf0]  ;;  %v10024_v43 = vld [vmem:[%s13305_s24 + $0x104] sm:$0xf]  ;;  %v9336_v53 = vor.u32 %v10092_v60, %v9333_v18  ;;  %v10115_v51 = vld [vmem:[%s13305_s24 + $0x3d4] sm:$0xf0]  ;;  %v9036_v52 = vor.u32 %v10019_v40, %v9035_v39 }
 0x4e6   : > { %6160 = vmatpush.bf16.msrb.mxu1 %v9112_v29  ;;  %v9061_v3 = vld [vmem:[%s13305_s24 + $0x110] sm:$0xf0]  ;;  %v10056_v41 = vld [vmem:[%s13305_s24 + $0x204] sm:$0xf]  ;;  %v8936_v15 = vor.u32 %v9992_v48, %v8933_v4  ;;  %v9164_v29 = vor.u32 %v10051_v17, %v9163_v44  ;;  %v9019_v23 = vld [vmem:[%s13305_s24 + $0xa8] sm:$0xf] }
 0x4e7   : > { %6174 = vmatpush.bf16.msrb.mxu2 %v9240_v27  ;;  %v9189_v62 = vld [vmem:[%s13305_s24 + $0x210] sm:$0xf0]  ;;  %v10088_v14 = vld [vmem:[%s13305_s24 + $0x304] sm:$0xf]  ;;  %v9064_v25 = vor.u32 %v10024_v43, %v9061_v3  ;;  %v9292_v27 = vor.u32 %v10083_v20, %v9291_v45  ;;  %v10015_v38 = vld [vmem:[%s13305_s24 + $0xb4] sm:$0xf0] }
 0x4e8   : > { %6188 = vmatpush.bf16.msrb.mxu3 %v9368_v54  ;;  %v9317_v56 = vld [vmem:[%s13305_s24 + $0x310] sm:$0xf0]  ;;  %v9192_v32 = vor.u32 %v10056_v41, %v9189_v62  ;;  %v9147_v47 = vld [vmem:[%s13305_s24 + $0x1a8] sm:$0xf]  ;;  %v9420_v54 = vor.u32 %v10115_v51, %v9419_v46  ;;  %v10047_v55 = vld [vmem:[%s13305_s24 + $0x1b4] sm:$0xf0] }
 0x4e9   : > { %6147 = vmatpush.bf16.msrb.mxu0 %v8968_v10  ;;  %v9320_v30 = vor.u32 %v10088_v14, %v9317_v56  ;;  %v9275_v58 = vld [vmem:[%s13305_s24 + $0x2a8] sm:$0xf]  ;;  %v10079_v59 = vld [vmem:[%s13305_s24 + $0x2b4] sm:$0xf0]  ;;  %v9020_v10 = vor.u32 %v10015_v38, %v9019_v23 }
 0x4ea   : > { %6161 = vmatpush.bf16.msrb.mxu1 %v9096_v37  ;;  %v9403_v57 = vld [vmem:[%s13305_s24 + $0x3a8] sm:$0xf]  ;;  %v10111_v5 = vld [vmem:[%s13305_s24 + $0x3b4] sm:$0xf0]  ;;  %v9148_v37 = vor.u32 %v10047_v55, %v9147_v47 }
 0x4eb   : > { %6175 = vmatpush.bf16.msrb.mxu2 %v9224_v12  ;;  %v9276_v12 = vor.u32 %v10079_v59, %v9275_v58  ;;  %v9003_v24 = vld [vmem:[%s13305_s24 + $0x88] sm:$0xf]  ;;  %v10011_v19 = vld [vmem:[%s13305_s24 + $0x94] sm:$0xf0] }
 0x4ec   : > { %6189 = vmatpush.bf16.msrb.mxu3 %v9352_v2  ;;  %v9131_v33 = vld [vmem:[%s13305_s24 + $0x188] sm:$0xf]  ;;  %v9404_v2 = vor.u32 %v10111_v5, %v9403_v57  ;;  %v10043_v11 = vld [vmem:[%s13305_s24 + $0x194] sm:$0xf0] }
 0x4ed   : > { %6148 = vmatpush.bf16.msrb.mxu0 %v8952_v63  ;;  %v9259_v61 = vld [vmem:[%s13305_s24 + $0x288] sm:$0xf]  ;;  %v10075_v50 = vld [vmem:[%s13305_s24 + $0x294] sm:$0xf0]  ;;  %v9004_v63 = vor.u32 %v10011_v19, %v9003_v24  ;;  %v9132_v48 = vor.u32 %v10043_v11, %v9131_v33  ;;  %v9181_v19 = vld [vmem:[%s13305_s24 + $0x1f8] sm:$0xf0] }
 0x4ee   : > { %6162 = vmatpush.bf16.msrb.mxu1 %v9080_v16  ;;  %v9387_v60 = vld [vmem:[%s13305_s24 + $0x388] sm:$0xf]  ;;  %v10107_v18 = vld [vmem:[%s13305_s24 + $0x394] sm:$0xf0]  ;;  %v9260_v4 = vor.u32 %v10075_v50, %v9259_v61  ;;  %v10085_v33 = vld [vmem:[%s13305_s24 + $0x2ec] sm:$0xf] }
 0x4ef   : > { %6176 = vmatpush.bf16.msrb.mxu2 %v9208_v49  ;;  %v8987_v16 = vld [vmem:[%s13305_s24 + $0x68] sm:$0xf]  ;;  %v10007_v49 = vld [vmem:[%s13305_s24 + $0x74] sm:$0xf0]  ;;  %v9388_v3 = vor.u32 %v10107_v18, %v9387_v60  ;;  %v10117_v50 = vld [vmem:[%s13305_s24 + $0x3ec] sm:$0xf] }
 0x4f0   : > { %6190 = vmatpush.bf16.msrb.mxu3 %v9336_v53  ;;  %v9115_v43 = vld [vmem:[%s13305_s24 + $0x168] sm:$0xf]  ;;  %v10039_v41 = vld [vmem:[%s13305_s24 + $0x174] sm:$0xf0]  ;;  %v8988_v7 = vor.u32 %v10007_v49, %v8987_v16  ;;  %v9437_v60 = vld [vmem:[%s13305_s24 + $0x3f8] sm:$0xf0] }
 0x4f1   : > { %6149 = vmatpush.bf16.msrb.mxu0 %v8936_v15  ;;  %v9243_v53 = vld [vmem:[%s13305_s24 + $0x268] sm:$0xf]  ;;  %v10071_v62 = vld [vmem:[%s13305_s24 + $0x274] sm:$0xf0]  ;;  %v9116_v13 = vor.u32 %v10039_v41, %v9115_v43  ;;  %v10017_v16 = vld [vmem:[%s13305_s24 + $0xcc] sm:$0xf] }
 0x4f2   : > { %6163 = vmatpush.bf16.msrb.mxu1 %v9064_v25  ;;  %v9371_v14 = vld [vmem:[%s13305_s24 + $0x368] sm:$0xf]  ;;  %v10103_v56 = vld [vmem:[%s13305_s24 + $0x374] sm:$0xf0]  ;;  %v9244_v42 = vor.u32 %v10071_v62, %v9243_v53  ;;  %v9037_v49 = vld [vmem:[%s13305_s24 + $0xd8] sm:$0xf0] }
 0x4f3   : > { %6177 = vmatpush.bf16.msrb.mxu2 %v9192_v32  ;;  %v8971_v15 = vld [vmem:[%s13305_s24 + $0x48] sm:$0xf]  ;;  %v10003_v8 = vld [vmem:[%s13305_s24 + $0x54] sm:$0xf0]  ;;  %v9372_v35 = vor.u32 %v10103_v56, %v9371_v14  ;;  %v10049_v43 = vld [vmem:[%s13305_s24 + $0x1cc] sm:$0xf] }
 0x4f4   : > { %6191 = vmatpush.bf16.msrb.mxu3 %v9320_v30  ;;  %6150 = vmatmul.bf16.vlgmr.msrb.gmra.mxu0 %v12692_v22  ;;  %v9099_v34 = vld [vmem:[%s13305_s24 + $0x148] sm:$0xf]  ;;  %v10035_v25 = vld [vmem:[%s13305_s24 + $0x154] sm:$0xf0]  ;;  %v9165_v41 = vld [vmem:[%s13305_s24 + $0x1d8] sm:$0xf0] }
 0x4f5   : > { %6198 = vmatpush.bf16.msra.mxu0 %v9052_v6  ;;  %6164 = vmatmul.bf16.vlgmr.msrb.gmra.mxu1 %v12700_v1  ;;  %v9227_v32 = vld [vmem:[%s13305_s24 + $0x248] sm:$0xf]  ;;  %v10067_v28 = vld [vmem:[%s13305_s24 + $0x254] sm:$0xf0]  ;;  %v8972_v6 = vor.u32 %v10003_v8, %v8971_v15  ;;  %v10081_v53 = vld [vmem:[%s13305_s24 + $0x2cc] sm:$0xf] }
 0x4f6   : > { %6212 = vmatpush.bf16.msra.mxu1 %v9180_v26  ;;  %6178 = vmatmul.bf16.vlgmr.msrb.gmra.mxu2 %v12682_v0  ;;  %v9355_v36 = vld [vmem:[%s13305_s24 + $0x348] sm:$0xf]  ;;  %v10099_v30 = vld [vmem:[%s13305_s24 + $0x354] sm:$0xf0]  ;;  %v9100_v26 = vor.u32 %v10035_v25, %v9099_v34  ;;  %v9293_v62 = vld [vmem:[%s13305_s24 + $0x2d8] sm:$0xf0] }
 0x4f7   : > { %6226 = vmatpush.bf16.msra.mxu2 %v9308_v9  ;;  %6192 = vmatmul.bf16.vlgmr.msrb.gmra.mxu3 %v12696_v21  ;;  %v9228_v9 = vor.u32 %v10067_v28, %v9227_v32  ;;  %v8955_v39 = vld [vmem:[%s13305_s24 + $0x28] sm:$0xf]  ;;  %v9999_v40 = vld [vmem:[%s13305_s24 + $0x34] sm:$0xf0]  ;;  %v10113_v14 = vld [vmem:[%s13305_s24 + $0x3cc] sm:$0xf] }
 0x4f8   : > { %6240 = vmatpush.bf16.msra.mxu3 %v9436_v31  ;;  %v9083_v44 = vld [vmem:[%s13305_s24 + $0x128] sm:$0xf]  ;;  %v9356_v31 = vor.u32 %v10099_v30, %v9355_v36  ;;  %v10031_v17 = vld [vmem:[%s13305_s24 + $0x134] sm:$0xf0]  ;;  %v9421_v56 = vld [vmem:[%s13305_s24 + $0x3d8] sm:$0xf0] }
 0x4f9   : > { %6199 = vmatpush.bf16.msra.mxu0 %v9036_v52  ;;  %v9211_v45 = vld [vmem:[%s13305_s24 + $0x228] sm:$0xf]  ;;  %v10063_v20 = vld [vmem:[%s13305_s24 + $0x234] sm:$0xf0]  ;;  %v8956_v52 = vor.u32 %v9999_v40, %v8955_v39  ;;  %v9084_v23 = vor.u32 %v10031_v17, %v9083_v44  ;;  %v10013_v15 = vld [vmem:[%s13305_s24 + $0xac] sm:$0xf] }
 0x4fa   : > { %6213 = vmatpush.bf16.msra.mxu1 %v9164_v29  ;;  %v9339_v46 = vld [vmem:[%s13305_s24 + $0x328] sm:$0xf]  ;;  %v10095_v51 = vld [vmem:[%s13305_s24 + $0x334] sm:$0xf0]  ;;  %v9212_v38 = vor.u32 %v10063_v20, %v9211_v45  ;;  %v9021_v8 = vld [vmem:[%s13305_s24 + $0xb8] sm:$0xf0] }
 0x4fb   : > { %6227 = vmatpush.bf16.msra.mxu2 %v9292_v27  ;;  %v8939_v29 = vld [vmem:[%s13305_s24 + $0x8] sm:$0xf]  ;;  %v9995_v27 = vld [vmem:[%s13305_s24 + $0x14] sm:$0xf0]  ;;  %v9340_v58 = vor.u32 %v10095_v51, %v9339_v46  ;;  %v10045_v34 = vld [vmem:[%s13305_s24 + $0x1ac] sm:$0xf] }
 0x4fc   : > { %6241 = vmatpush.bf16.msra.mxu3 %v9420_v54  ;;  %v9067_v47 = vld [vmem:[%s13305_s24 + $0x108] sm:$0xf]  ;;  %v10027_v54 = vld [vmem:[%s13305_s24 + $0x114] sm:$0xf0]  ;;  %v8940_v24 = vor.u32 %v9995_v27, %v8939_v29  ;;  %v9149_v25 = vld [vmem:[%s13305_s24 + $0x1b8] sm:$0xf0] }
 0x4fd   : > { %6200 = vmatpush.bf16.msra.mxu0 %v9020_v10  ;;  %v9195_v55 = vld [vmem:[%s13305_s24 + $0x208] sm:$0xf]  ;;  %v10059_v59 = vld [vmem:[%s13305_s24 + $0x214] sm:$0xf0]  ;;  %v10021_v10 = vld [vmem:[%s13305_s24 + $0xec] sm:$0xf]  ;;  %v9068_v11 = vor.u32 %v10027_v54, %v9067_v47 }
 0x4fe   : > { %6214 = vmatpush.bf16.msra.mxu1 %v9148_v37  ;;  %v9323_v57 = vld [vmem:[%s13305_s24 + $0x308] sm:$0xf]  ;;  %v10091_v5 = vld [vmem:[%s13305_s24 + $0x314] sm:$0xf0]  ;;  %v9053_v37 = vld [vmem:[%s13305_s24 + $0xf8] sm:$0xf0]  ;;  %v9196_v61 = vor.u32 %v10059_v59, %v9195_v55 }
 0x4ff   : > { %6228 = vmatpush.bf16.msra.mxu2 %v9276_v12  ;;  %v10053_v12 = vld [vmem:[%s13305_s24 + $0x1ec] sm:$0xf]  ;;  %v9324_v18 = vor.u32 %v10091_v5, %v9323_v57  ;;  %v9277_v28 = vld [vmem:[%s13305_s24 + $0x2b8] sm:$0xf0] }
 0x500   : > { %6242 = vmatpush.bf16.msra.mxu3 %v9404_v2  ;;  %v9309_v2 = vld [vmem:[%s13305_s24 + $0x2f8] sm:$0xf0]  ;;  %v10077_v32 = vld [vmem:[%s13305_s24 + $0x2ac] sm:$0xf] }
 0x501   : > { %6201 = vmatpush.bf16.msra.mxu0 %v9004_v63  ;;  %v9056_v63 = vor.u32 %v10021_v10, %v9053_v37  ;;  %v10109_v36 = vld [vmem:[%s13305_s24 + $0x3ac] sm:$0xf]  ;;  %v9405_v30 = vld [vmem:[%s13305_s24 + $0x3b8] sm:$0xf0] }
 0x502   : > { %6215 = vmatpush.bf16.msra.mxu1 %v9132_v48  ;;  %v9184_v48 = vor.u32 %v10053_v12, %v9181_v19  ;;  %v10009_v39 = vld [vmem:[%s13305_s24 + $0x8c] sm:$0xf]  ;;  %v9005_v40 = vld [vmem:[%s13305_s24 + $0x98] sm:$0xf0] }
 0x503   : > { %6229 = vmatpush.bf16.msra.mxu2 %v9260_v4  ;;  %v9312_v4 = vor.u32 %v10085_v33, %v9309_v2  ;;  %v10041_v44 = vld [vmem:[%s13305_s24 + $0x18c] sm:$0xf]  ;;  %v9133_v17 = vld [vmem:[%s13305_s24 + $0x198] sm:$0xf0] }
 0x504   : > { %6243 = vmatpush.bf16.msra.mxu3 %v9388_v3  ;;  %v9440_v3 = vor.u32 %v10117_v50, %v9437_v60  ;;  %v10073_v45 = vld [vmem:[%s13305_s24 + $0x28c] sm:$0xf]  ;;  %v9261_v20 = vld [vmem:[%s13305_s24 + $0x298] sm:$0xf0]  ;;  %v9136_v29 = vor.u32 %v10041_v44, %v9133_v17 }
 0x505   : > { %6202 = vmatpush.bf16.msra.mxu0 %v8988_v7  ;;  %v9040_v7 = vor.u32 %v10017_v16, %v9037_v49  ;;  %v10105_v46 = vld [vmem:[%s13305_s24 + $0x38c] sm:$0xf]  ;;  %v9389_v51 = vld [vmem:[%s13305_s24 + $0x398] sm:$0xf0]  ;;  %v9264_v27 = vor.u32 %v10073_v45, %v9261_v20 }
 0x506   : > { %6216 = vmatpush.bf16.msra.mxu1 %v9116_v13  ;;  %v9168_v13 = vor.u32 %v10049_v43, %v9165_v41  ;;  %v10037_v47 = vld [vmem:[%s13305_s24 + $0x16c] sm:$0xf]  ;;  %v9392_v54 = vor.u32 %v10105_v46, %v9389_v51  ;;  %v9117_v55 = vld [vmem:[%s13305_s24 + $0x178] sm:$0xf0] }
 0x507   : > { %6230 = vmatpush.bf16.msra.mxu2 %v9244_v42  ;;  %v9296_v42 = vor.u32 %v10081_v53, %v9293_v62  ;;  %v9245_v59 = vld [vmem:[%s13305_s24 + $0x278] sm:$0xf0]  ;;  %v10101_v57 = vld [vmem:[%s13305_s24 + $0x36c] sm:$0xf]  ;;  %v9120_v37 = vor.u32 %v10037_v47, %v9117_v55  ;;  %v6314_v55 = vld [vmem:[#allocation3 + $0x28] sm:$0xff] }
 0x508   : > { %6244 = vmatpush.bf16.msra.mxu3 %v9372_v35  ;;  %v9424_v35 = vor.u32 %v10113_v14, %v9421_v56  ;;  %v9373_v5 = vld [vmem:[%s13305_s24 + $0x378] sm:$0xf0]  ;;  %v10033_v33 = vld [vmem:[%s13305_s24 + $0x14c] sm:$0xf] }
 0x509   : > { %6203 = vmatpush.bf16.msra.mxu0 %v8972_v6  ;;  %v9024_v6 = vor.u32 %v10013_v15, %v9021_v8  ;;  %v8973_v19 = vld [vmem:[%s13305_s24 + $0x58] sm:$0xf0]  ;;  %v9376_v2 = vor.u32 %v10101_v57, %v9373_v5  ;;  %v10097_v60 = vld [vmem:[%s13305_s24 + $0x34c] sm:$0xf] }
 0x50a   : > { %6217 = vmatpush.bf16.msra.mxu1 %v9100_v26  ;;  %v9152_v26 = vor.u32 %v10045_v34, %v9149_v25  ;;  %v9229_v50 = vld [vmem:[%s13305_s24 + $0x258] sm:$0xf0]  ;;  %v9997_v16 = vld [vmem:[%s13305_s24 + $0x2c] sm:$0xf] }
 0x50b   : > { %6231 = vmatpush.bf16.msra.mxu2 %v9228_v9  ;;  %v9280_v9 = vor.u32 %v10077_v32, %v9277_v28  ;;  %v8957_v49 = vld [vmem:[%s13305_s24 + $0x38] sm:$0xf0]  ;;  %v10029_v43 = vld [vmem:[%s13305_s24 + $0x12c] sm:$0xf] }
 0x50c   : > { %6245 = vmatpush.bf16.msra.mxu3 %v9356_v31  ;;  %v9408_v31 = vor.u32 %v10109_v36, %v9405_v30  ;;  %v9085_v41 = vld [vmem:[%s13305_s24 + $0x138] sm:$0xf0]  ;;  %v10061_v53 = vld [vmem:[%s13305_s24 + $0x22c] sm:$0xf] }
 0x50d   : > { %6204 = vmatpush.bf16.msra.mxu0 %v8956_v52  ;;  %v9008_v52 = vor.u32 %v10009_v39, %v9005_v40  ;;  %v9213_v62 = vld [vmem:[%s13305_s24 + $0x238] sm:$0xf0]  ;;  %v10093_v14 = vld [vmem:[%s13305_s24 + $0x32c] sm:$0xf]  ;;  %v13249_v40 = vld [vmem:[%s13306_s27] sm:$0xf] }
 0x50e   : > { %6218 = vmatpush.bf16.msra.mxu1 %v9084_v23  ;;  %v10005_v23 = vld [vmem:[%s13305_s24 + $0x6c] sm:$0xf]  ;;  %v9341_v56 = vld [vmem:[%s13305_s24 + $0x338] sm:$0xf0]  ;;  %v5438_v44 = vperm.slane %v13249_v40, 0  ;;  %v5439_v57 = vperm.slane %v13249_v40, 1 }
 0x50f   : > { %6232 = vmatpush.bf16.msra.mxu2 %v9212_v38  ;;  %v8989_v38 = vld [vmem:[%s13305_s24 + $0x78] sm:$0xf0]  ;;  %v9993_v15 = vld [vmem:[%s13305_s24 + $0xc] sm:$0xf] }
 0x510   : > { %6246 = vmatpush.bf16.msra.mxu3 %v9340_v58  ;;  %v10069_v58 = vld [vmem:[%s13305_s24 + $0x26c] sm:$0xf]  ;;  %v8992_v10 = vor.u32 %v10005_v23, %v8989_v38  ;;  %v8941_v8 = vld [vmem:[%s13305_s24 + $0x18] sm:$0xf0] }
 0x511   : > { %6205 = vmatpush.bf16.msra.mxu0 %v8940_v24  ;;  %v9248_v12 = vor.u32 %v10069_v58, %v9245_v59  ;;  %v10001_v24 = vld [vmem:[%s13305_s24 + $0x4c] sm:$0xf]  ;;  %v9069_v25 = vld [vmem:[%s13305_s24 + $0x118] sm:$0xf0] }
 0x512   : > { %6219 = vmatpush.bf16.msra.mxu1 %v9068_v11  ;;  %v9101_v11 = vld [vmem:[%s13305_s24 + $0x158] sm:$0xf0]  ;;  %v10025_v34 = vld [vmem:[%s13305_s24 + $0x10c] sm:$0xf] }
 0x513   : > { %6233 = vmatpush.bf16.msra.mxu2 %v9196_v61  ;;  %v10065_v61 = vld [vmem:[%s13305_s24 + $0x24c] sm:$0xf]  ;;  %v9197_v28 = vld [vmem:[%s13305_s24 + $0x218] sm:$0xf0] }
 0x514   : > { %6247 = vmatpush.bf16.msra.mxu3 %v9324_v18  ;;  %6206 = vmatmul.bf16.vlgmr.msra.gmra.mxu0 %v12692_v22  ;;  %v9357_v18 = vld [vmem:[%s13305_s24 + $0x358] sm:$0xf0]  ;;  %v10057_v32 = vld [vmem:[%s13305_s24 + $0x20c] sm:$0xf] }
 0x515   : > { %6254 = vmatpush.bf16.msrb.mxu0 %v9056_v63  ;;  %6220 = vmatmul.bf16.vlgmr.msra.gmra.mxu1 %v12700_v1  ;;  %v8976_v63 = vor.u32 %v10001_v24, %v8973_v19  ;;  %v10089_v36 = vld [vmem:[%s13305_s24 + $0x30c] sm:$0xf]  ;;  %v9325_v30 = vld [vmem:[%s13305_s24 + $0x318] sm:$0xf0] }
 0x516   : > { %6268 = vmatpush.bf16.msrb.mxu1 %v9184_v48  ;;  %6234 = vmatmul.bf16.vlgmr.msra.gmra.mxu2 %v12682_v0  ;;  %v9104_v48 = vor.u32 %v10033_v33, %v9101_v11  ;;  %v9328_v39 = vor.u32 %v10089_v36, %v9325_v30  ;;  %v6310_v51 = vld [vmem:[#allocation3] sm:$0xff] }
 0x517   : > { %6282 = vmatpush.bf16.msrb.mxu2 %v9312_v4  ;;  %6248 = vmatmul.bf16.vlgmr.msra.gmra.mxu3 %v12696_v21  ;;  %v9232_v4 = vor.u32 %v10065_v61, %v9229_v50 }
 0x518   : > { %6296 = vmatpush.bf16.msrb.mxu3 %v9440_v3  ;;  %v9360_v3 = vor.u32 %v10097_v60, %v9357_v18 }
 0x519   : > { %6255 = vmatpush.bf16.msrb.mxu0 %v9040_v7  ;;  %v8960_v7 = vor.u32 %v9997_v16, %v8957_v49  ;;  %v6315_v49 = vld [vmem:[#allocation3 + $0x8] sm:$0xff] }
 0x51a   : > { %6269 = vmatpush.bf16.msrb.mxu1 %v9168_v13  ;;  %v9088_v13 = vor.u32 %v10029_v43, %v9085_v41  ;;  %v5440_v41 = vperm.slane %v13249_v40, 2 }
 0x51b   : > { %6283 = vmatpush.bf16.msrb.mxu2 %v9296_v42  ;;  %v9216_v42 = vor.u32 %v10061_v53, %v9213_v62 }
 0x51c   : > { %6297 = vmatpush.bf16.msrb.mxu3 %v9424_v35  ;;  %v9344_v35 = vor.u32 %v10093_v14, %v9341_v56 }
 0x51d   : > { %6256 = vmatpush.bf16.msrb.mxu0 %v9024_v6  ;;  %v8944_v6 = vor.u32 %v9993_v15, %v8941_v8  ;;  %v6312_v15 = vld [vmem:[#allocation3 + $0x10] sm:$0xff] }
 0x51e   : > { %6270 = vmatpush.bf16.msrb.mxu1 %v9152_v26  ;;  %v9072_v26 = vor.u32 %v10025_v34, %v9069_v25 }
 0x51f   : > { %6284 = vmatpush.bf16.msrb.mxu2 %v9280_v9  ;;  %v9200_v9 = vor.u32 %v10057_v32, %v9197_v28 }
 0x520   : > { %6298 = vmatpush.bf16.msrb.mxu3 %v9408_v31 }
 0x521   : > { %6257 = vmatpush.bf16.msrb.mxu0 %v9008_v52 }
 0x522   : > { %6271 = vmatpush.bf16.msrb.mxu1 %v9136_v29 }
 0x523   : > { %6285 = vmatpush.bf16.msrb.mxu2 %v9264_v27 }
 0x524   : > { %6299 = vmatpush.bf16.msrb.mxu3 %v9392_v54 }
 0x525   : > { %6258 = vmatpush.bf16.msrb.mxu0 %v8992_v10 }
 0x526   : > { %6272 = vmatpush.bf16.msrb.mxu1 %v9120_v37 }
 0x527   : > { %6286 = vmatpush.bf16.msrb.mxu2 %v9248_v12 }
 0x528   : > { %6300 = vmatpush.bf16.msrb.mxu3 %v9376_v2  ;;  %v6311_v2 = vld [vmem:[#allocation3 + $0x18] sm:$0xff] }
 0x529   : > { %6259 = vmatpush.bf16.msrb.mxu0 %v8976_v63 }
 0x52a   : > { %6273 = vmatpush.bf16.msrb.mxu1 %v9104_v48 }
 0x52b   : > { %6287 = vmatpush.bf16.msrb.mxu2 %v9232_v4 }
 0x52c   : > { %6301 = vmatpush.bf16.msrb.mxu3 %v9360_v3 }
 0x52d   : > { %6260 = vmatpush.bf16.msrb.mxu0 %v8960_v7 }
 0x52e   : > { %6274 = vmatpush.bf16.msrb.mxu1 %v9088_v13 }
 0x52f   : > { %6288 = vmatpush.bf16.msrb.mxu2 %v9216_v42 }
 0x530   : > { %6302 = vmatpush.bf16.msrb.mxu3 %v9344_v35 }
 0x531   : > { %6261 = vmatpush.bf16.msrb.mxu0 %v8944_v6 }
 0x532   : > { %6275 = vmatpush.bf16.msrb.mxu1 %v9072_v26  ;;  %v6316_v26 = vld [vmem:[#allocation3 + $0x30] sm:$0xff] }
 0x533   : > { %6289 = vmatpush.bf16.msrb.mxu2 %v9200_v9 }
 0x534   : > { %6303 = vmatpush.bf16.msrb.mxu3 %v9328_v39  ;;  %6262 = vmatmul.bf16.vlgmr.msrb.gmra.mxu0 %v12692_v22 }
 0x535   : > { %6276 = vmatmul.bf16.vlgmr.msrb.gmra.mxu1 %v12700_v1 }
 0x536   : > { %6290 = vmatmul.bf16.vlgmr.msrb.gmra.mxu2 %v12682_v0 }
 0x537   : > { %6304 = vmatmul.bf16.vlgmr.msrb.gmra.mxu3 %v12696_v21 }
 0x551   : > { %v6095_v31 = vpop.f32.mrf.mxu0 }
 0x552   : > { %v6096_v17 = vadd.f32 %v6095_v31, %v5438_v44  ;;  %v6109_v45 = vpop.f32.mrf.mxu1 }
 0x554   : > { %v6110_v20 = vadd.f32 %v6109_v45, %v6096_v17 }
 0x559   : > { %v6123_v46 = vpop.f32.mrf.mxu2  ;;  %v6097_v52 = vpop.f32.mrf.mxu0 }
 0x55a   : > { %v6124_v22 = vadd.f32 %v6123_v46, %v6110_v20  ;;  %v6137_v1 = vpop.f32.mrf.mxu3  ;;  %v6098_v21 = vadd.f32 %v6097_v52, %v5438_v44  ;;  %v6111_v29 = vpop.f32.mrf.mxu1  ;;  %v5441_v44 = vperm.slane %v13249_v40, 3  ;;  %v6317_v40 = vld [vmem:[#allocation3 + $0x38] sm:$0xff] }
 0x55c   : > { %v6138_v0 = vadd.f32 %v6137_v1, %v6124_v22  ;;  %v6112_v23 = vadd.f32 %v6111_v29, %v6098_v21 }
 0x55e   : > { %v6318_v27 = vadd.f32 %v6310_v51, %v6138_v0  ;;  %v6313_v0 = vld [vmem:[#allocation3 + $0x20] sm:$0xff] }
 0x560   : > { %6326 = vst [vmem:[%s10363_s29] sm:$0xff] %v6318_v27 }
 0x561   : > { %v6125_v38 = vpop.f32.mrf.mxu2 }
 0x562   : > { %v6126_v47 = vadd.f32 %v6125_v38, %v6112_v23  ;;  %v6139_v54 = vpop.f32.mrf.mxu3 }
 0x564   : > { %v6140_v58 = vadd.f32 %v6139_v54, %v6126_v47 }
 0x566   : > { %v6322_v59 = vadd.f32 %v6314_v55, %v6140_v58 }
 0x568   : > { %6330 = vst [vmem:[%s10363_s29 + $0x20] sm:$0xff] %v6322_v59 }
 0x571   : > { %v6151_v5 = vpop.f32.mrf.mxu0 }
 0x572   : > { %v6152_v10 = vadd.f32 %v6151_v5, %v5439_v57  ;;  %v6165_v37 = vpop.f32.mrf.mxu1 }
 0x574   : > { %v6166_v12 = vadd.f32 %v6165_v37, %v6152_v10 }
 0x579   : > { %v6179_v24 = vpop.f32.mrf.mxu2  ;;  %v6153_v61 = vpop.f32.mrf.mxu0 }
 0x57a   : > { %v6180_v19 = vadd.f32 %v6179_v24, %v6166_v12  ;;  %v6193_v33 = vpop.f32.mrf.mxu3  ;;  %v6154_v50 = vadd.f32 %v6153_v61, %v5439_v57  ;;  %v6167_v60 = vpop.f32.mrf.mxu1 }
 0x57c   : > { %v6194_v11 = vadd.f32 %v6193_v33, %v6180_v19  ;;  %v6168_v63 = vadd.f32 %v6167_v60, %v6154_v50 }
 0x57e   : > { %v6319_v18 = vadd.f32 %v6311_v2, %v6194_v11 }
 0x580   : > { %6327 = vst [vmem:[%s10363_s29 + $0x8] sm:$0xff] %v6319_v18 }
 0x581   : > { %v6181_v48 = vpop.f32.mrf.mxu2 }
 0x582   : > { %v6182_v4 = vadd.f32 %v6181_v48, %v6168_v63  ;;  %v6195_v16 = vpop.f32.mrf.mxu3 }
 0x584   : > { %v6196_v43 = vadd.f32 %v6195_v16, %v6182_v4 }
 0x586   : > { %v6323_v3 = vadd.f32 %v6315_v49, %v6196_v43 }
 0x588   : > { %6331 = vst [vmem:[%s10363_s29 + $0x28] sm:$0xff] %v6323_v3 }
 0x591   : > { %v6207_v53 = vpop.f32.mrf.mxu0 }
 0x592   : > { %v6208_v62 = vadd.f32 %v6207_v53, %v5440_v41  ;;  %v6221_v14 = vpop.f32.mrf.mxu1 }
 0x594   : > { %v6222_v56 = vadd.f32 %v6221_v14, %v6208_v62 }
 0x599   : > { %v6235_v7 = vpop.f32.mrf.mxu2  ;;  %v6209_v34 = vpop.f32.mrf.mxu0 }
 0x59a   : > { %v6236_v13 = vadd.f32 %v6235_v7, %v6222_v56  ;;  %v6249_v42 = vpop.f32.mrf.mxu3  ;;  %v6210_v35 = vadd.f32 %v6209_v34, %v5440_v41  ;;  %v6223_v25 = vpop.f32.mrf.mxu1 }
 0x59c   : > { %v6250_v8 = vadd.f32 %v6249_v42, %v6236_v13  ;;  %v6224_v28 = vadd.f32 %v6223_v25, %v6210_v35 }
 0x59e   : > { %v6320_v32 = vadd.f32 %v6312_v15, %v6250_v8 }
 0x5a0   : > { %6328 = vst [vmem:[%s10363_s29 + $0x10] sm:$0xff] %v6320_v32 }
 0x5a1   : > { %v6237_v36 = vpop.f32.mrf.mxu2 }
 0x5a2   : > { %v6238_v30 = vadd.f32 %v6237_v36, %v6224_v28  ;;  %v6251_v6 = vpop.f32.mrf.mxu3 }
 0x5a4   : > { %v6252_v9 = vadd.f32 %v6251_v6, %v6238_v30 }
 0x5a6   : > { %v6324_v39 = vadd.f32 %v6316_v26, %v6252_v9 }
 0x5a8   : > { %6332 = vst [vmem:[%s10363_s29 + $0x30] sm:$0xff] %v6324_v39 }
 0x5b1   : > { %v6263_v31 = vpop.f32.mrf.mxu0 }
 0x5b2   : > { %v6264_v17 = vadd.f32 %v6263_v31, %v5441_v44  ;;  %v6277_v45 = vpop.f32.mrf.mxu1 }
 0x5b4   : > { %v6278_v20 = vadd.f32 %v6277_v45, %v6264_v17 }
 0x5b9   : > { %v6291_v46 = vpop.f32.mrf.mxu2  ;;  %v6265_v51 = vpop.f32.mrf.mxu0 }
 0x5ba   : > { %v6292_v22 = vadd.f32 %v6291_v46, %v6278_v20  ;;  %v6305_v1 = vpop.f32.mrf.mxu3  ;;  %v6266_v21 = vadd.f32 %v6265_v51, %v5441_v44  ;;  %v6279_v27 = vpop.f32.mrf.mxu1 }
 0x5bc   : > { %v6306_v52 = vadd.f32 %v6305_v1, %v6292_v22  ;;  %v6280_v23 = vadd.f32 %v6279_v27, %v6266_v21 }
 0x5be   : > { %v6321_v29 = vadd.f32 %v6313_v0, %v6306_v52 }
 0x5c0   : > { %6329 = vst [vmem:[%s10363_s29 + $0x18] sm:$0xff] %v6321_v29 }
 0x5c1   : > { %v6293_v38 = vpop.f32.mrf.mxu2 }
 0x5c2   : > { %v6294_v47 = vadd.f32 %v6293_v38, %v6280_v23  ;;  %v6307_v54 = vpop.f32.mrf.mxu3 }
 0x5c4   : > { %v6308_v55 = vadd.f32 %v6307_v54, %v6294_v47 }
 0x5c6   : > { %v6325_v58 = vadd.f32 %v6317_v40, %v6308_v55 }
 0x5c8   : > { %6333 = vst [vmem:[%s10363_s29 + $0x38] sm:$0xff] %v6325_v58 }
 0x5c9 PF: > { %s13307_s13 = sld [smem:[#allocation6_spill]] }
 0x5ca   : > { %s13308_s17 = sld [smem:[#allocation4_spill]] }
 0x5cb   : > { %s13309_s18 = sld [smem:[#allocation5_spill]] }
 0x5cc   : > { %s13310_s19 = sld [smem:[#allocation7_spill]] }
 0x5cd   : > { %s13311_s20 = sld [smem:[#allocation8_spill]] }
 0x5cf   : > { %s21_s21 = sadd.s32 1, %s13307_s13  }
 0x5d0   : > { %p18_p10 = scmp.ge.s32.totalorder %s21_s21, 6  }
 0x5d2   :  { %20 = sbr.rel (!%p18_p10) target bundleno = 4 (0x4), region = 126 }

</bundles_post_ra>
